<compile_context>
chip_gen: v5e
topology: v5e:2x2
jax: 0.10.0
libtpu: 0.0.40
codegen_flags: <defaults>
</compile_context>

<pallas_src>
import numpy as np
import jax
import jax.numpy as jnp
from jax import lax
from jax.experimental import pallas as pl
from jax.experimental.pallas import tpu as pltpu

_SUB = 8                   # sublanes per batch tile
_LANE = 128                # lanes per batch tile
_TILE = _SUB * _LANE       # batch elements handled per grid step (one vreg tile)


# ----------------------------------------------------------------------------
# tiny helpers over Python lists of (8,128) tiles: every contraction dim is a
# tiny (<= n_sc = 6) Python-unrolled dim, so all math is full-vreg VPU work.
# ----------------------------------------------------------------------------
def _rowdot(row, vec):
    """sum_k row[k] * vec[k]  (lists of (8,128) tiles)."""
    acc = row[0] * vec[0]
    for k in range(1, len(vec)):
        acc = acc + row[k] * vec[k]
    return acc


def _col(M, j):
    """Column j of a nested-list matrix (free transpose by reindexing)."""
    return [M[i][j] for i in range(len(M))]


def _sym_pack(M, n):
    """Upper triangle of a symmetric nested-list matrix as a flat tuple."""
    return tuple(M[i][j] for i in range(n) for j in range(i, n))


def _sym_unpack(flat, n):
    """Flat upper triangle -> nested list with the lower triangle aliased."""
    M = [[None] * n for _ in range(n)]
    idx = 0
    for i in range(n):
        for j in range(i, n):
            M[i][j] = flat[idx]
            M[j][i] = flat[idx]
            idx += 1
    return M


def _recip(x):
    """EUP approximate reciprocal + one Newton-Raphson step (~f32 accuracy)."""
    r = pl.reciprocal(x, approx=True)
    return r * (2.0 - x * r)


def _neg_spd_solve(Quu, Qux, qu):
    """K = -Quu^{-1} Qux, k = -Quu^{-1} qu via unrolled Gauss-Jordan (Quu SPD).

    All pivots / eliminations are lane- and sublane-parallel over the batch tile.
    """
    nc = len(Quu)
    m = len(Qux[0])
    A = [list(Quu[i]) for i in range(nc)]
    R = [list(Qux[i]) for i in range(nc)]
    r = list(qu)
    for i in range(nc):
        inv = _recip(A[i][i])
        A[i] = [a * inv for a in A[i]]
        R[i] = [x * inv for x in R[i]]
        r[i] = r[i] * inv
        for j in range(nc):
            if j != i:
                fct = A[j][i]
                A[j] = [A[j][kk] - fct * A[i][kk] for kk in range(nc)]
                R[j] = [R[j][kk] - fct * R[i][kk] for kk in range(m)]
                r[j] = r[j] - fct * r[i]
    K = [[-R[i][j] for j in range(m)] for i in range(nc)]
    k = [-r[i] for i in range(nc)]
    return K, k


# ----------------------------------------------------------------------------
# Pallas kernel: one LQR subproblem solve (== the LQRStep of one iLQR iteration)
# ----------------------------------------------------------------------------
def _lqr_step_kernel(xinit_ref, C_ref, c_ref, F_ref, f_ref, xnom_ref, unom_ref,
                     xnew_ref, unew_ref, cost_ref, dunorm_ref, Kk_scr):
    T = xnom_ref.shape[0]
    ns = xnom_ref.shape[1]
    nc = unom_ref.shape[1]

    zt = jnp.zeros(cost_ref.shape, jnp.float32)      # one (8,128) zero tile

    def load_cost(t):
        # C is a quadratic-cost Hessian and assumed symmetric: load only the
        # upper triangles and alias the lower (free Python-list reindexing).
        Cxx = [[None] * ns for _ in range(ns)]
        for a in range(ns):
            for b in range(a, ns):
                v = C_ref[t, a, b]
                Cxx[a][b] = v
                Cxx[b][a] = v
        Cxu = [[C_ref[t, a, ns + b] for b in range(nc)] for a in range(ns)]
        Cuu = [[None] * nc for _ in range(nc)]
        for a in range(nc):
            for b in range(a, nc):
                v = C_ref[t, ns + a, ns + b]
                Cuu[a][b] = v
                Cuu[b][a] = v
        cx = [c_ref[t, a] for a in range(ns)]
        cu = [c_ref[t, ns + a] for a in range(nc)]
        return Cxx, Cxu, Cuu, cx, cu

    def load_dyn(t):
        Fx = [[F_ref[t, a, b] for b in range(ns)] for a in range(ns)]
        Fu = [[F_ref[t, a, ns + b] for b in range(nc)] for a in range(ns)]
        fd = [f_ref[t, a] for a in range(ns)]
        return Fx, Fu, fd

    def load_nom(t):
        xn = [xnom_ref[t, a] for a in range(ns)]
        un = [unom_ref[t, a] for a in range(nc)]
        return xn, un

    # ---------------- backward Riccati sweep (delta space) ----------------
    # V is symmetric and carried as its packed upper triangle.  With V=v=0 the
    # generic Q = C + F^T V F formula is exact at the terminal step too, so the
    # loop body needs no special-casing.
    V0 = tuple(zt for _ in range(ns * (ns + 1) // 2))
    v0 = tuple(zt for _ in range(ns))

    def bwd_body(i, carry):
        Vp, vt = carry
        t = T - 1 - i
        V = _sym_unpack(Vp, ns)
        v = list(vt)
        Cxx, Cxu, Cuu, cx, cu = load_cost(t)
        Fx, Fu, _ = load_dyn(t)
        xn, un = load_nom(t)

        # linear term of the quadratic model about the nominal trajectory
        cxt = [cx[a] + _rowdot(Cxx[a], xn) + _rowdot(Cxu[a], un) for a in range(ns)]
        cut = [cu[a] + _rowdot(_col(Cxu, a), xn) + _rowdot(Cuu[a], un) for a in range(nc)]

        # shared V*F products
        VFx = [[_rowdot(V[a], _col(Fx, b)) for b in range(ns)] for a in range(ns)]
        VFu = [[_rowdot(V[a], _col(Fu, b)) for b in range(nc)] for a in range(ns)]

        # Q blocks (Qxx / Quu symmetric -> upper triangles only, lower aliased)
        Qxx = [[None] * ns for _ in range(ns)]
        for a in range(ns):
            for b in range(a, ns):
                q = Cxx[a][b] + _rowdot(_col(Fx, a), _col(VFx, b))
                Qxx[a][b] = q
                Qxx[b][a] = q
        Qxu = [[Cxu[a][b] + _rowdot(_col(Fx, a), _col(VFu, b)) for b in range(nc)]
               for a in range(ns)]
        Quu = [[None] * nc for _ in range(nc)]
        for a in range(nc):
            for b in range(a, nc):
                q = Cuu[a][b] + _rowdot(_col(Fu, a), _col(VFu, b))
                Quu[a][b] = q
                Quu[b][a] = q
        qx = [cxt[a] + _rowdot(_col(Fx, a), v) for a in range(ns)]
        qu = [cut[a] + _rowdot(_col(Fu, a), v) for a in range(nc)]

        # K = -Quu^{-1} Qux, k = -Quu^{-1} qu   (Qux = Qxu^T: free reindexing)
        Qux = [[Qxu[b][a] for b in range(ns)] for a in range(nc)]
        K, k = _neg_spd_solve(Quu, Qux, qu)

        # spill gains to VMEM scratch (bounds vreg live ranges; re-read in rollout)
        for a in range(nc):
            for b in range(ns):
                Kk_scr[t, a, b] = K[a][b]
            Kk_scr[t, a, ns] = k[a]

        # simplified exact updates (valid for the minimizing K, k and symmetric Q):
        #   V <- Qxx + Qxu K,   v <- qx + Qxu k
        Vn = [[None] * ns for _ in range(ns)]
        for a in range(ns):
            for b in range(a, ns):
                val = Qxx[a][b] + _rowdot(Qxu[a], _col(K, b))
                Vn[a][b] = val
                Vn[b][a] = val
        vn = [qx[a] + _rowdot(Qxu[a], k) for a in range(ns)]
        return (_sym_pack(Vn, ns), tuple(vn))

    lax.fori_loop(0, T, bwd_body, (V0, v0))

    # ---------------- forward rollout under the linearized dynamics, alpha = 1 ----
    # TODO(synk): backtracking line search (linesearch_decay / max_linesearch_iter)
    #             and box-constrained control clamping (u_lower/u_upper) from the
    #             Control-Limited DDP paper are not implemented.
    dx0 = tuple(xinit_ref[a] - xnom_ref[0, a] for a in range(ns))

    def fwd_body(t, carry):
        dxv_t, cst, dusq = carry
        dxv = list(dxv_t)
        Cxx, Cxu, Cuu, cx, cu = load_cost(t)
        Fx, Fu, fd = load_dyn(t)
        xn, un = load_nom(t)
        K = [[Kk_scr[t, a, b] for b in range(ns)] for a in range(nc)]
        k = [Kk_scr[t, a, ns] for a in range(nc)]

        du = [_rowdot(K[a], dxv) + k[a] for a in range(nc)]
        u_new = [un[a] + du[a] for a in range(nc)]
        x_new = [xn[a] + dxv[a] for a in range(ns)]
        for a in range(ns):
            xnew_ref[t, a] = x_new[a]
        for a in range(nc):
            unew_ref[t, a] = u_new[a]

        # trajectory cost: 0.5 tau^T C tau + c^T tau (symmetric C)
        gx = [_rowdot(Cxx[a], x_new) + _rowdot(Cxu[a], u_new) for a in range(ns)]
        gu = [_rowdot(_col(Cxu, a), x_new) + _rowdot(Cuu[a], u_new) for a in range(nc)]
        quad = _rowdot(x_new, gx) + _rowdot(u_new, gu)
        lin = _rowdot(cx, x_new) + _rowdot(cu, u_new)
        cst = cst + 0.5 * quad + lin
        dusq = dusq + _rowdot(du, du)

        # next-step deviation; on the final step the carry is discarded and the
        # clamped index only keeps the xnom load in bounds.
        tn = jnp.minimum(t + 1, T - 1)
        x_next = [_rowdot(Fx[a], x_new) + _rowdot(Fu[a], u_new) + fd[a] for a in range(ns)]
        dx_next = tuple(x_next[a] - xnom_ref[tn, a] for a in range(ns))
        return (dx_next, cst, dusq)

    _, cst, dusq = lax.fori_loop(0, T, fwd_body, (dx0, zt, zt))

    cost_ref[...] = cst
    dunorm_ref[...] = jnp.sqrt(dusq)     # EUP path


# ----------------------------------------------------------------------------
# wrapper: padding / (sublane, lane) batch packing, BlockSpecs, batch grid
# ----------------------------------------------------------------------------
def _round_up(x, m):
    return (x + m - 1) // m * m


def _pad_lanes(a, nbp):
    """Edge-replicate the last batch column up to nbp lanes.

    Replication (NOT zero filling) is essential: it keeps Quu SPD in padded
    lanes so the in-kernel Gauss-Jordan solve never divides by zero.
    """
    nb = a.shape[-1]
    if nb == nbp:
        return a
    pad = jnp.broadcast_to(a[..., -1:], a.shape[:-1] + (nbp - nb,))
    return jnp.concatenate([a, pad], axis=-1)


def _lqr_step_pallas(x_init, C, c, F, f, x_nom, u_nom, n_state, n_ctrl):
    """One delta-space LQR subproblem solve (the LQRStep of TrajCostMPC).

    Batch-last layout; a trailing batch dim of 1 means batch-invariant (it is
    broadcast wrapper-side to one (8,128) tile and pinned to block 0).  Full
    batch arrays are edge-padded to a 1024 multiple and packed as (·, 8, 128).
    """
    ns, nc = n_state, n_ctrl
    n_sc = ns + nc
    T = x_nom.shape[0]
    nb = x_nom.shape[-1]
    nbp = max(_TILE, _round_up(nb, _TILE))
    n_rows = nbp // _LANE

    def prep(a, feat):
        a = jnp.asarray(a, jnp.float32)
        nfeat = len(feat)
        if a.shape[-1] == 1 and nb != 1:
            # batch-invariant: one lane/sublane-dense constant tile, block pinned to 0
            arr = jnp.broadcast_to(a[..., None], feat + (_SUB, _LANE))
            imap = lambda g, n=nfeat: (0,) * (n + 2)
        else:
            arr = _pad_lanes(a, nbp).reshape(feat + (n_rows, _LANE))
            imap = lambda g, n=nfeat: (0,) * n + (g, 0)
        return arr, pl.BlockSpec(feat + (_SUB, _LANE), imap)

    arrs, in_specs = [], []
    for a, feat in ((x_init, (ns,)), (C, (T, n_sc, n_sc)), (c, (T, n_sc)),
                    (F, (T, ns, n_sc)), (f, (T, ns)),
                    (x_nom, (T, ns)), (u_nom, (T, nc))):
        arr, sp = prep(a, feat)
        arrs.append(arr)
        in_specs.append(sp)

    out_specs = (
        pl.BlockSpec((T, ns, _SUB, _LANE), lambda g: (0, 0, g, 0)),
        pl.BlockSpec((T, nc, _SUB, _LANE), lambda g: (0, 0, g, 0)),
        pl.BlockSpec((_SUB, _LANE), lambda g: (g, 0)),
        pl.BlockSpec((_SUB, _LANE), lambda g: (g, 0)),
    )
    out_shape = (
        jax.ShapeDtypeStruct((T, ns, n_rows, _LANE), jnp.float32),
        jax.ShapeDtypeStruct((T, nc, n_rows, _LANE), jnp.float32),
        jax.ShapeDtypeStruct((n_rows, _LANE), jnp.float32),
        jax.ShapeDtypeStruct((n_rows, _LANE), jnp.float32),
    )

    x_new, u_new, cost, dunorm = pl.pallas_call(
        _lqr_step_kernel,
        grid=(nbp // _TILE,),
        in_specs=in_specs,
        out_specs=out_specs,
        out_shape=out_shape,
        scratch_shapes=[pltpu.VMEM((T, nc, ns + 1, _SUB, _LANE), jnp.float32)],
        compiler_params=pltpu.CompilerParams(
            dimension_semantics=("parallel",)),   # batch tiles shard across TCs (v7x)
    )(*arrs)

    x_new = x_new.reshape(T, ns, nbp)[..., :nb]
    u_new = u_new.reshape(T, nc, nbp)[..., :nb]
    cost = cost.reshape(nbp)[:nb]
    dunorm = dunorm.reshape(nbp)[:nb]
    return x_new, u_new, cost, dunorm


# ----------------------------------------------------------------------------
# dynamics / cost objects (deterministic synthetic parameters), batch-last layout
# ----------------------------------------------------------------------------
class LinDx:
    """x_{t+1} = A x_t + B u_t + bias; x: (ns, nb), u: (nc, nb)."""

    def __init__(self, A, B, bias):
        self.A, self.B, self.bias = A, B, bias

    def __call__(self, x, u):
        return self.A @ x + self.B @ u + self.bias[:, None]

    def linearized(self, x, u, diff=False):
        # TODO(synk): generic nonlinear dynamics would need an in-kernel rollout /
        #             Jacobian; kept in JAX because `dx` is a user-provided callable.
        T = x.shape[0]
        Fj = jnp.concatenate([self.A, self.B], axis=1)                  # (ns, n_sc)
        F = jnp.broadcast_to(Fj[None, :, :, None], (T,) + Fj.shape + (1,))
        f = jnp.broadcast_to(self.bias[None, :, None], (T, self.bias.shape[0], 1))
        return F.astype(jnp.float32), f.astype(jnp.float32)             # batch-invariant


class QuadTrajCost:
    """sum_t 0.5 tau_t^T C_t tau_t + c_t^T tau_t (exact quadratic), batch-last."""

    def __init__(self, C, c):
        self.C, self.c = C, c          # (T, n_sc, n_sc, nb|1), (T, n_sc, nb|1)

    def approx_quadratic(self, x, u, cost_inputs, diff=False):
        return self.C, self.c


def get_traj(T, u, x_init, dynamics):
    """Roll out the true dynamics: u (T, nc, nb), x_init (ns, nb) -> x (T, ns, nb)."""
    xs = [x_init]
    for t in range(T - 1):
        xs.append(dynamics(xs[t], u[t]))
    return jnp.stack(xs, axis=0)


# ----------------------------------------------------------------------------
# TrajCostMPC forward: whole iLQR loop runs on-device inside one lax.while_loop,
# at padded (lane/sublane-packed) batch width throughout.
# ----------------------------------------------------------------------------
class TrajCostMPC:
    def __init__(self, n_state, n_ctrl, T, u_lower=None, u_upper=None, u_init=None,
                 lqr_iter=10, eps=1e-7, n_batch=None, linesearch_decay=0.2,
                 max_linesearch_iter=10, exit_unconverged=True, detach_unconverged=True,
                 not_improved_lim=5, best_cost_eps=1e-4):
        assert (u_lower is None) == (u_upper is None)
        assert max_linesearch_iter > 0
        if u_lower is not None:
            # TODO(synk): box constraints require the projected-Newton QP of
            #             Control-Limited DDP; not implemented in this kernel.
            raise NotImplementedError("u_lower/u_upper box constraints not implemented")
        self.n_state, self.n_ctrl, self.T = n_state, n_ctrl, T
        self.u_init = u_init
        self.lqr_iter = lqr_iter
        self.eps = eps
        self.n_batch = n_batch
        self.linesearch_decay = linesearch_decay
        self.max_linesearch_iter = max_linesearch_iter
        self.exit_unconverged = exit_unconverged
        self.detach_unconverged = detach_unconverged
        self.not_improved_lim = not_improved_lim
        self.best_cost_eps = best_cost_eps

    def forward(self, x_init, cost, dx, cost_inputs, return_converged=False):
        if self.n_batch is None:
            raise ValueError('MPC Error: Could not infer batch size, pass in as n_batch')
        n_batch = self.n_batch
        assert x_init.ndim == 2 and x_init.shape[0] == n_batch
        T, ns, nc = self.T, self.n_state, self.n_ctrl
        nbp = max(_TILE, _round_up(n_batch, _TILE))

        # pad the batch once (edge replication) and keep the padded width through
        # the whole iLQR while-loop; slice back to n_batch only at the very end.
        x0 = _pad_lanes(jnp.asarray(x_init, jnp.float32).T, nbp)        # (ns, nbp)
        if self.u_init is None:
            u0 = jnp.zeros((T, nc, nbp), jnp.float32)
        else:
            u0 = _pad_lanes(
                jnp.transpose(jnp.asarray(self.u_init, jnp.float32), (0, 2, 1)), nbp)

        eps = self.eps
        best_cost_eps = self.best_cost_eps
        not_improved_lim = self.not_improved_lim
        lqr_iter = self.lqr_iter

        def body(carry):
            it, n_not_improved, u, bx, bu, bcosts, bdu, done = carry
            x = get_traj(T, u, x0, dx)
            F, f = dx.linearized(x, u, diff=False)
            Cq, cq = cost.approx_quadratic(x, u, cost_inputs, diff=False)
            x_new, u_new, costs, du_norm = _lqr_step_pallas(x0, Cq, cq, F, f, x, u, ns, nc)
            improved = jnp.any(costs <= bcosts - best_cost_eps)
            n_not_improved = jnp.where(jnp.logical_and(it > 0, improved),
                                       jnp.zeros((), jnp.int32), n_not_improved + 1)
            take = costs <= bcosts
            bx = jnp.where(take[None, None, :], x_new, bx)
            bu = jnp.where(take[None, None, :], u_new, bu)
            bcosts = jnp.where(take, costs, bcosts)
            bdu = jnp.where(take, du_norm, bdu)
            done = jnp.logical_or(jnp.max(du_norm) < eps,
                                  n_not_improved > not_improved_lim)
            return (it + 1, n_not_improved, u_new, bx, bu, bcosts, bdu, done)

        def cond(carry):
            it, _, _, _, _, _, _, done = carry
            return jnp.logical_and(it < lqr_iter, jnp.logical_not(done))

        carry0 = (jnp.zeros((), jnp.int32), jnp.zeros((), jnp.int32), u0,
                  jnp.zeros((T, ns, nbp), jnp.float32),
                  jnp.zeros((T, nc, nbp), jnp.float32),
                  jnp.full((nbp,), jnp.inf, jnp.float32),
                  jnp.full((nbp,), jnp.inf, jnp.float32),
                  jnp.zeros((), jnp.bool_))
        _, _, _, bx, bu, bcosts, bdu, _ = jax.lax.while_loop(cond, body, carry0)

        bx = bx[..., :n_batch]
        bu = bu[..., :n_batch]
        bcosts = bcosts[:n_batch]
        bdu = bdu[:n_batch]
        x_out = jnp.transpose(bx, (0, 2, 1))                             # (T, nb, ns)
        u_out = jnp.transpose(bu, (0, 2, 1))                             # (T, nb, nc)
        converged_mask = bdu < self.eps
        # TODO(synk): the final no_op_forward LQR re-solve and the detach of
        #             unconverged examples are autograd-only (forward values
        #             unchanged); a custom_vjp would be needed for gradients.
        if self.detach_unconverged and self.exit_unconverged:
            if not bool(jnp.all(converged_mask)):    # host sync only on the assert path
                raise AssertionError('LQR did not converge to a fixed point.')
        if return_converged:
            return x_out, u_out, bcosts, converged_mask
        return x_out, u_out, bcosts

    __call__ = forward


# ----------------------------------------------------------------------------
# pure-JAX reference for one LQR step (torch-style layout; cross-check only)
# ----------------------------------------------------------------------------
def _lqr_step_ref(x_init, C, c, F, f, x_nom, u_nom, ns, nc):
    T, nb = c.shape[0], c.shape[1]
    tau = jnp.concatenate([x_nom, u_nom], axis=-1)
    V = jnp.zeros((nb, ns, ns))
    v = jnp.zeros((nb, ns))
    Ks, ks = [None] * T, [None] * T
    for t in reversed(range(T)):
        ct = c[t] + jnp.einsum('bij,bj->bi', C[t], tau[t])
        if t == T - 1:
            Q, q = C[t], ct
        else:
            Ft = F[t]
            Q = C[t] + jnp.einsum('bki,bkl,blj->bij', Ft, V, Ft)
            q = ct + jnp.einsum('bki,bk->bi', Ft, v)
        Quu, Qux = Q[:, ns:, ns:], Q[:, ns:, :ns]
        Qxu, Qxx = Q[:, :ns, ns:], Q[:, :ns, :ns]
        qu, qx = q[:, ns:], q[:, :ns]
        Kt = -jnp.linalg.solve(Quu, Qux)
        kt = -jnp.linalg.solve(Quu, qu[..., None])[..., 0]
        Ks[t], ks[t] = Kt, kt
        V = (Qxx + Qxu @ Kt + jnp.einsum('bki,bkj->bij', Kt, Qux)
             + jnp.einsum('bki,bkl,blj->bij', Kt, Quu, Kt))
        v = (qx + jnp.einsum('bij,bj->bi', Qxu, kt) + jnp.einsum('bki,bk->bi', Kt, qu)
             + jnp.einsum('bki,bkl,bl->bi', Kt, Quu, kt))
    dxv = x_init - x_nom[0]
    xs, us = [], []
    cst = jnp.zeros((nb,))
    dusq = jnp.zeros((nb,))
    for t in range(T):
        du = jnp.einsum('bij,bj->bi', Ks[t], dxv) + ks[t]
        u_t = u_nom[t] + du
        x_t = x_nom[t] + dxv
        xs.append(x_t)
        us.append(u_t)
        taut = jnp.concatenate([x_t, u_t], -1)
        cst = cst + 0.5 * jnp.einsum('bi,bij,bj->b', taut, C[t], taut) + jnp.sum(c[t] * taut, -1)
        dusq = dusq + jnp.sum(du * du, -1)
        if t < T - 1:
            xnext = jnp.einsum('bij,bj->bi', F[t], taut) + f[t]
            dxv = xnext - x_nom[t + 1]
    return jnp.stack(xs), jnp.stack(us), cst, jnp.sqrt(dusq)


# ----------------------------------------------------------------------------
if __name__ == "__main__":
    n_state, n_ctrl, T, n_batch = 4, 2, 8, 2
    n_sc = n_state + n_ctrl

    key = jax.random.PRNGKey(0)
    k1, k2, k3, k4, k5, k6 = jax.random.split(key, 6)
    A = (0.9 * jnp.eye(n_state) + 0.05 * jax.random.normal(k1, (n_state, n_state))).astype(jnp.float32)
    Bm = (0.2 * jax.random.normal(k2, (n_state, n_ctrl))).astype(jnp.float32)
    bias = (0.05 * jax.random.normal(k3, (n_state,))).astype(jnp.float32)

    L = 0.1 * jax.random.normal(k4, (n_sc, n_sc))
    C0 = (jnp.diag(jnp.concatenate([jnp.ones((n_state,)), 0.1 * jnp.ones((n_ctrl,))]))
          + L @ L.T).astype(jnp.float32)   # symmetric SPD quadratic cost
    # time/batch-invariant quadratic term kept compact (batch dim = 1): no T*nb copies
    C_bl = jnp.broadcast_to(C0[None, :, :, None], (T, n_sc, n_sc, 1)).astype(jnp.float32)
    c_tb = (0.1 * jax.random.normal(k5, (T, n_batch, n_sc))).astype(jnp.float32)  # torch layout
    c_bl = jnp.transpose(c_tb, (0, 2, 1))                                         # (T, n_sc, nb)
    x_init = jax.random.normal(k6, (n_batch, n_state)).astype(jnp.float32)

    dx = LinDx(A, Bm, bias)
    cost = QuadTrajCost(C_bl, c_bl)

    # ---- cross-check one Pallas LQR step against a pure-JAX reference ----
    u0 = jnp.zeros((T, n_ctrl, n_batch), jnp.float32)
    x0 = x_init.T
    xtraj = get_traj(T, u0, x0, dx)
    F0, f0 = dx.linearized(xtraj, u0)
    xk, uk, ck, dk = _lqr_step_pallas(x0, C_bl, c_bl, F0, f0, xtraj, u0, n_state, n_ctrl)
    jax.block_until_ready((xk, uk, ck, dk))

    C_t = jnp.broadcast_to(C0, (T, n_batch, n_sc, n_sc))
    F_t = jnp.broadcast_to(jnp.concatenate([A, Bm], axis=1), (T, n_batch, n_state, n_sc))
    f_t = jnp.broadcast_to(bias, (T, n_batch, n_state))
    xr, ur, cr, dr = _lqr_step_ref(x_init, C_t, c_tb, F_t, f_t,
                                   jnp.transpose(xtraj, (0, 2, 1)),
                                   jnp.transpose(u0, (0, 2, 1)), n_state, n_ctrl)
    np.testing.assert_allclose(np.asarray(jnp.transpose(xk, (0, 2, 1))), np.asarray(xr),
                               rtol=2e-3, atol=2e-3)
    np.testing.assert_allclose(np.asarray(jnp.transpose(uk, (0, 2, 1))), np.asarray(ur),
                               rtol=2e-3, atol=2e-3)
    np.testing.assert_allclose(np.asarray(ck), np.asarray(cr), rtol=2e-3, atol=2e-3)
    np.testing.assert_allclose(np.asarray(dk), np.asarray(dr), rtol=2e-3, atol=2e-3)

    # ---- full TrajCostMPC forward (on-device iLQR loop) ----
    mpc = TrajCostMPC(n_state, n_ctrl, T, lqr_iter=10, eps=1e-5, n_batch=n_batch,
                      exit_unconverged=False)
    x, u, costs = mpc(x_init, cost, dx, cost_inputs=None)
    jax.block_until_ready((x, u, costs))
    assert x.shape == (T, n_batch, n_state)
    assert u.shape == (T, n_batch, n_ctrl)
    assert costs.shape == (n_batch,)
    assert np.all(np.isfinite(np.asarray(costs)))
    print("KERNEL_OK")
</pallas_src>

<mosaic_0001>
module attributes {stable_mosaic.version = 11 : i64} {
  func.func @_lqr_step_kernel(%arg0: i32, %arg1: memref<4x8x128xf32, #tpu.memory_space<vmem>>, %arg2: memref<8x6x6x8x128xf32, #tpu.memory_space<vmem>>, %arg3: memref<8x6x8x128xf32, #tpu.memory_space<vmem>>, %arg4: memref<8x4x6x8x128xf32, #tpu.memory_space<vmem>>, %arg5: memref<8x4x8x128xf32, #tpu.memory_space<vmem>>, %arg6: memref<8x4x8x128xf32, #tpu.memory_space<vmem>>, %arg7: memref<8x2x8x128xf32, #tpu.memory_space<vmem>>, %arg8: memref<8x4x8x128xf32, #tpu.memory_space<vmem>>, %arg9: memref<8x2x8x128xf32, #tpu.memory_space<vmem>>, %arg10: memref<8x128xf32, #tpu.memory_space<vmem>>, %arg11: memref<8x128xf32, #tpu.memory_space<vmem>>, %arg12: memref<8x2x5x8x128xf32, #tpu.memory_space<vmem>>) attributes {dimension_semantics = [#tpu.dimension_semantics<parallel>], iteration_bounds = array<i64: 1>, scalar_prefetch = 0 : i64, scratch_operands = 1 : i64, tpu.core_type = #tpu.core_type<tc>, window_params = [{transform_indices = @transform_0, window_bounds = array<i64: 4, 8, 128>}, {pipeline_mode = #tpu.pipeline_mode<synchronous>, transform_indices = @transform_1, window_bounds = array<i64: 8, 6, 6, 8, 128>}, {transform_indices = @transform_2, window_bounds = array<i64: 8, 6, 8, 128>}, {pipeline_mode = #tpu.pipeline_mode<synchronous>, transform_indices = @transform_3, window_bounds = array<i64: 8, 4, 6, 8, 128>}, {pipeline_mode = #tpu.pipeline_mode<synchronous>, transform_indices = @transform_4, window_bounds = array<i64: 8, 4, 8, 128>}, {transform_indices = @transform_5, window_bounds = array<i64: 8, 4, 8, 128>}, {transform_indices = @transform_6, window_bounds = array<i64: 8, 2, 8, 128>}, {transform_indices = @transform_7, window_bounds = array<i64: 8, 4, 8, 128>}, {transform_indices = @transform_8, window_bounds = array<i64: 8, 2, 8, 128>}, {transform_indices = @transform_9, window_bounds = array<i64: 8, 128>}, {transform_indices = @transform_10, window_bounds = array<i64: 8, 128>}]} {
    %cst = arith.constant 0.000000e+00 : f32
    %0 = vector.broadcast %cst : f32 to vector<8x128xf32>
    %c0_i32 = arith.constant 0 : i32
    %c8_i32 = arith.constant 8 : i32
    %1 = arith.addi %c0_i32, %c8_i32 : i32
    %c1_i32 = arith.constant 1 : i32
    %2:14 = scf.for %arg13 = %c0_i32 to %1 step %c1_i32 iter_args(%arg14 = %0, %arg15 = %0, %arg16 = %0, %arg17 = %0, %arg18 = %0, %arg19 = %0, %arg20 = %0, %arg21 = %0, %arg22 = %0, %arg23 = %0, %arg24 = %0, %arg25 = %0, %arg26 = %0, %arg27 = %0) -> (vector<8x128xf32>, vector<8x128xf32>, vector<8x128xf32>, vector<8x128xf32>, vector<8x128xf32>, vector<8x128xf32>, vector<8x128xf32>, vector<8x128xf32>, vector<8x128xf32>, vector<8x128xf32>, vector<8x128xf32>, vector<8x128xf32>, vector<8x128xf32>, vector<8x128xf32>)  : i32 {
      %c7_i32 = arith.constant 7 : i32
      %28 = arith.subi %c7_i32, %arg13 : i32
      %29 = arith.index_cast %28 : i32 to index
      %c0_33 = arith.constant 0 : index
      %c0_34 = arith.constant 0 : index
      %c0_35 = arith.constant 0 : index
      %c0_36 = arith.constant 0 : index
      %30 = vector.load %arg2[%29, %c0_33, %c0_34, %c0_35, %c0_36] : memref<8x6x6x8x128xf32, #tpu.memory_space<vmem>>, vector<1x1x1x8x128xf32>
      %31 = vector.shape_cast %30 : vector<1x1x1x8x128xf32> to vector<8x128xf32>
      %32 = arith.index_cast %28 : i32 to index
      %c0_37 = arith.constant 0 : index
      %c1_38 = arith.constant 1 : index
      %c0_39 = arith.constant 0 : index
      %c0_40 = arith.constant 0 : index
      %33 = vector.load %arg2[%32, %c0_37, %c1_38, %c0_39, %c0_40] : memref<8x6x6x8x128xf32, #tpu.memory_space<vmem>>, vector<1x1x1x8x128xf32>
      %34 = vector.shape_cast %33 : vector<1x1x1x8x128xf32> to vector<8x128xf32>
      %35 = arith.index_cast %28 : i32 to index
      %c0_41 = arith.constant 0 : index
      %c2_42 = arith.constant 2 : index
      %c0_43 = arith.constant 0 : index
      %c0_44 = arith.constant 0 : index
      %36 = vector.load %arg2[%35, %c0_41, %c2_42, %c0_43, %c0_44] : memref<8x6x6x8x128xf32, #tpu.memory_space<vmem>>, vector<1x1x1x8x128xf32>
      %37 = vector.shape_cast %36 : vector<1x1x1x8x128xf32> to vector<8x128xf32>
      %38 = arith.index_cast %28 : i32 to index
      %c0_45 = arith.constant 0 : index
      %c3_46 = arith.constant 3 : index
      %c0_47 = arith.constant 0 : index
      %c0_48 = arith.constant 0 : index
      %39 = vector.load %arg2[%38, %c0_45, %c3_46, %c0_47, %c0_48] : memref<8x6x6x8x128xf32, #tpu.memory_space<vmem>>, vector<1x1x1x8x128xf32>
      %40 = vector.shape_cast %39 : vector<1x1x1x8x128xf32> to vector<8x128xf32>
      %41 = arith.index_cast %28 : i32 to index
      %c1_49 = arith.constant 1 : index
      %c1_50 = arith.constant 1 : index
      %c0_51 = arith.constant 0 : index
      %c0_52 = arith.constant 0 : index
      %42 = vector.load %arg2[%41, %c1_49, %c1_50, %c0_51, %c0_52] : memref<8x6x6x8x128xf32, #tpu.memory_space<vmem>>, vector<1x1x1x8x128xf32>
      %43 = vector.shape_cast %42 : vector<1x1x1x8x128xf32> to vector<8x128xf32>
      %44 = arith.index_cast %28 : i32 to index
      %c1_53 = arith.constant 1 : index
      %c2_54 = arith.constant 2 : index
      %c0_55 = arith.constant 0 : index
      %c0_56 = arith.constant 0 : index
      %45 = vector.load %arg2[%44, %c1_53, %c2_54, %c0_55, %c0_56] : memref<8x6x6x8x128xf32, #tpu.memory_space<vmem>>, vector<1x1x1x8x128xf32>
      %46 = vector.shape_cast %45 : vector<1x1x1x8x128xf32> to vector<8x128xf32>
      %47 = arith.index_cast %28 : i32 to index
      %c1_57 = arith.constant 1 : index
      %c3_58 = arith.constant 3 : index
      %c0_59 = arith.constant 0 : index
      %c0_60 = arith.constant 0 : index
      %48 = vector.load %arg2[%47, %c1_57, %c3_58, %c0_59, %c0_60] : memref<8x6x6x8x128xf32, #tpu.memory_space<vmem>>, vector<1x1x1x8x128xf32>
      %49 = vector.shape_cast %48 : vector<1x1x1x8x128xf32> to vector<8x128xf32>
      %50 = arith.index_cast %28 : i32 to index
      %c2_61 = arith.constant 2 : index
      %c2_62 = arith.constant 2 : index
      %c0_63 = arith.constant 0 : index
      %c0_64 = arith.constant 0 : index
      %51 = vector.load %arg2[%50, %c2_61, %c2_62, %c0_63, %c0_64] : memref<8x6x6x8x128xf32, #tpu.memory_space<vmem>>, vector<1x1x1x8x128xf32>
      %52 = vector.shape_cast %51 : vector<1x1x1x8x128xf32> to vector<8x128xf32>
      %53 = arith.index_cast %28 : i32 to index
      %c2_65 = arith.constant 2 : index
      %c3_66 = arith.constant 3 : index
      %c0_67 = arith.constant 0 : index
      %c0_68 = arith.constant 0 : index
      %54 = vector.load %arg2[%53, %c2_65, %c3_66, %c0_67, %c0_68] : memref<8x6x6x8x128xf32, #tpu.memory_space<vmem>>, vector<1x1x1x8x128xf32>
      %55 = vector.shape_cast %54 : vector<1x1x1x8x128xf32> to vector<8x128xf32>
      %56 = arith.index_cast %28 : i32 to index
      %c3_69 = arith.constant 3 : index
      %c3_70 = arith.constant 3 : index
      %c0_71 = arith.constant 0 : index
      %c0_72 = arith.constant 0 : index
      %57 = vector.load %arg2[%56, %c3_69, %c3_70, %c0_71, %c0_72] : memref<8x6x6x8x128xf32, #tpu.memory_space<vmem>>, vector<1x1x1x8x128xf32>
      %58 = vector.shape_cast %57 : vector<1x1x1x8x128xf32> to vector<8x128xf32>
      %59 = arith.index_cast %28 : i32 to index
      %c0_73 = arith.constant 0 : index
      %c4 = arith.constant 4 : index
      %c0_74 = arith.constant 0 : index
      %c0_75 = arith.constant 0 : index
      %60 = vector.load %arg2[%59, %c0_73, %c4, %c0_74, %c0_75] : memref<8x6x6x8x128xf32, #tpu.memory_space<vmem>>, vector<1x1x1x8x128xf32>
      %61 = vector.shape_cast %60 : vector<1x1x1x8x128xf32> to vector<8x128xf32>
      %62 = arith.index_cast %28 : i32 to index
      %c0_76 = arith.constant 0 : index
      %c5 = arith.constant 5 : index
      %c0_77 = arith.constant 0 : index
      %c0_78 = arith.constant 0 : index
      %63 = vector.load %arg2[%62, %c0_76, %c5, %c0_77, %c0_78] : memref<8x6x6x8x128xf32, #tpu.memory_space<vmem>>, vector<1x1x1x8x128xf32>
      %64 = vector.shape_cast %63 : vector<1x1x1x8x128xf32> to vector<8x128xf32>
      %65 = arith.index_cast %28 : i32 to index
      %c1_79 = arith.constant 1 : index
      %c4_80 = arith.constant 4 : index
      %c0_81 = arith.constant 0 : index
      %c0_82 = arith.constant 0 : index
      %66 = vector.load %arg2[%65, %c1_79, %c4_80, %c0_81, %c0_82] : memref<8x6x6x8x128xf32, #tpu.memory_space<vmem>>, vector<1x1x1x8x128xf32>
      %67 = vector.shape_cast %66 : vector<1x1x1x8x128xf32> to vector<8x128xf32>
      %68 = arith.index_cast %28 : i32 to index
      %c1_83 = arith.constant 1 : index
      %c5_84 = arith.constant 5 : index
      %c0_85 = arith.constant 0 : index
      %c0_86 = arith.constant 0 : index
      %69 = vector.load %arg2[%68, %c1_83, %c5_84, %c0_85, %c0_86] : memref<8x6x6x8x128xf32, #tpu.memory_space<vmem>>, vector<1x1x1x8x128xf32>
      %70 = vector.shape_cast %69 : vector<1x1x1x8x128xf32> to vector<8x128xf32>
      %71 = arith.index_cast %28 : i32 to index
      %c2_87 = arith.constant 2 : index
      %c4_88 = arith.constant 4 : index
      %c0_89 = arith.constant 0 : index
      %c0_90 = arith.constant 0 : index
      %72 = vector.load %arg2[%71, %c2_87, %c4_88, %c0_89, %c0_90] : memref<8x6x6x8x128xf32, #tpu.memory_space<vmem>>, vector<1x1x1x8x128xf32>
      %73 = vector.shape_cast %72 : vector<1x1x1x8x128xf32> to vector<8x128xf32>
      %74 = arith.index_cast %28 : i32 to index
      %c2_91 = arith.constant 2 : index
      %c5_92 = arith.constant 5 : index
      %c0_93 = arith.constant 0 : index
      %c0_94 = arith.constant 0 : index
      %75 = vector.load %arg2[%74, %c2_91, %c5_92, %c0_93, %c0_94] : memref<8x6x6x8x128xf32, #tpu.memory_space<vmem>>, vector<1x1x1x8x128xf32>
      %76 = vector.shape_cast %75 : vector<1x1x1x8x128xf32> to vector<8x128xf32>
      %77 = arith.index_cast %28 : i32 to index
      %c3_95 = arith.constant 3 : index
      %c4_96 = arith.constant 4 : index
      %c0_97 = arith.constant 0 : index
      %c0_98 = arith.constant 0 : index
      %78 = vector.load %arg2[%77, %c3_95, %c4_96, %c0_97, %c0_98] : memref<8x6x6x8x128xf32, #tpu.memory_space<vmem>>, vector<1x1x1x8x128xf32>
      %79 = vector.shape_cast %78 : vector<1x1x1x8x128xf32> to vector<8x128xf32>
      %80 = arith.index_cast %28 : i32 to index
      %c3_99 = arith.constant 3 : index
      %c5_100 = arith.constant 5 : index
      %c0_101 = arith.constant 0 : index
      %c0_102 = arith.constant 0 : index
      %81 = vector.load %arg2[%80, %c3_99, %c5_100, %c0_101, %c0_102] : memref<8x6x6x8x128xf32, #tpu.memory_space<vmem>>, vector<1x1x1x8x128xf32>
      %82 = vector.shape_cast %81 : vector<1x1x1x8x128xf32> to vector<8x128xf32>
      %83 = arith.index_cast %28 : i32 to index
      %c4_103 = arith.constant 4 : index
      %c4_104 = arith.constant 4 : index
      %c0_105 = arith.constant 0 : index
      %c0_106 = arith.constant 0 : index
      %84 = vector.load %arg2[%83, %c4_103, %c4_104, %c0_105, %c0_106] : memref<8x6x6x8x128xf32, #tpu.memory_space<vmem>>, vector<1x1x1x8x128xf32>
      %85 = vector.shape_cast %84 : vector<1x1x1x8x128xf32> to vector<8x128xf32>
      %86 = arith.index_cast %28 : i32 to index
      %c4_107 = arith.constant 4 : index
      %c5_108 = arith.constant 5 : index
      %c0_109 = arith.constant 0 : index
      %c0_110 = arith.constant 0 : index
      %87 = vector.load %arg2[%86, %c4_107, %c5_108, %c0_109, %c0_110] : memref<8x6x6x8x128xf32, #tpu.memory_space<vmem>>, vector<1x1x1x8x128xf32>
      %88 = vector.shape_cast %87 : vector<1x1x1x8x128xf32> to vector<8x128xf32>
      %89 = arith.index_cast %28 : i32 to index
      %c5_111 = arith.constant 5 : index
      %c5_112 = arith.constant 5 : index
      %c0_113 = arith.constant 0 : index
      %c0_114 = arith.constant 0 : index
      %90 = vector.load %arg2[%89, %c5_111, %c5_112, %c0_113, %c0_114] : memref<8x6x6x8x128xf32, #tpu.memory_space<vmem>>, vector<1x1x1x8x128xf32>
      %91 = vector.shape_cast %90 : vector<1x1x1x8x128xf32> to vector<8x128xf32>
      %92 = arith.index_cast %28 : i32 to index
      %c0_115 = arith.constant 0 : index
      %c0_116 = arith.constant 0 : index
      %c0_117 = arith.constant 0 : index
      %93 = vector.load %arg3[%92, %c0_115, %c0_116, %c0_117] : memref<8x6x8x128xf32, #tpu.memory_space<vmem>>, vector<1x1x8x128xf32>
      %94 = vector.shape_cast %93 : vector<1x1x8x128xf32> to vector<8x128xf32>
      %95 = arith.index_cast %28 : i32 to index
      %c1_118 = arith.constant 1 : index
      %c0_119 = arith.constant 0 : index
      %c0_120 = arith.constant 0 : index
      %96 = vector.load %arg3[%95, %c1_118, %c0_119, %c0_120] : memref<8x6x8x128xf32, #tpu.memory_space<vmem>>, vector<1x1x8x128xf32>
      %97 = vector.shape_cast %96 : vector<1x1x8x128xf32> to vector<8x128xf32>
      %98 = arith.index_cast %28 : i32 to index
      %c2_121 = arith.constant 2 : index
      %c0_122 = arith.constant 0 : index
      %c0_123 = arith.constant 0 : index
      %99 = vector.load %arg3[%98, %c2_121, %c0_122, %c0_123] : memref<8x6x8x128xf32, #tpu.memory_space<vmem>>, vector<1x1x8x128xf32>
      %100 = vector.shape_cast %99 : vector<1x1x8x128xf32> to vector<8x128xf32>
      %101 = arith.index_cast %28 : i32 to index
      %c3_124 = arith.constant 3 : index
      %c0_125 = arith.constant 0 : index
      %c0_126 = arith.constant 0 : index
      %102 = vector.load %arg3[%101, %c3_124, %c0_125, %c0_126] : memref<8x6x8x128xf32, #tpu.memory_space<vmem>>, vector<1x1x8x128xf32>
      %103 = vector.shape_cast %102 : vector<1x1x8x128xf32> to vector<8x128xf32>
      %104 = arith.index_cast %28 : i32 to index
      %c4_127 = arith.constant 4 : index
      %c0_128 = arith.constant 0 : index
      %c0_129 = arith.constant 0 : index
      %105 = vector.load %arg3[%104, %c4_127, %c0_128, %c0_129] : memref<8x6x8x128xf32, #tpu.memory_space<vmem>>, vector<1x1x8x128xf32>
      %106 = vector.shape_cast %105 : vector<1x1x8x128xf32> to vector<8x128xf32>
      %107 = arith.index_cast %28 : i32 to index
      %c5_130 = arith.constant 5 : index
      %c0_131 = arith.constant 0 : index
      %c0_132 = arith.constant 0 : index
      %108 = vector.load %arg3[%107, %c5_130, %c0_131, %c0_132] : memref<8x6x8x128xf32, #tpu.memory_space<vmem>>, vector<1x1x8x128xf32>
      %109 = vector.shape_cast %108 : vector<1x1x8x128xf32> to vector<8x128xf32>
      %110 = arith.index_cast %28 : i32 to index
      %c0_133 = arith.constant 0 : index
      %c0_134 = arith.constant 0 : index
      %c0_135 = arith.constant 0 : index
      %c0_136 = arith.constant 0 : index
      %111 = vector.load %arg4[%110, %c0_133, %c0_134, %c0_135, %c0_136] : memref<8x4x6x8x128xf32, #tpu.memory_space<vmem>>, vector<1x1x1x8x128xf32>
      %112 = vector.shape_cast %111 : vector<1x1x1x8x128xf32> to vector<8x128xf32>
      %113 = arith.index_cast %28 : i32 to index
      %c0_137 = arith.constant 0 : index
      %c1_138 = arith.constant 1 : index
      %c0_139 = arith.constant 0 : index
      %c0_140 = arith.constant 0 : index
      %114 = vector.load %arg4[%113, %c0_137, %c1_138, %c0_139, %c0_140] : memref<8x4x6x8x128xf32, #tpu.memory_space<vmem>>, vector<1x1x1x8x128xf32>
      %115 = vector.shape_cast %114 : vector<1x1x1x8x128xf32> to vector<8x128xf32>
      %116 = arith.index_cast %28 : i32 to index
      %c0_141 = arith.constant 0 : index
      %c2_142 = arith.constant 2 : index
      %c0_143 = arith.constant 0 : index
      %c0_144 = arith.constant 0 : index
      %117 = vector.load %arg4[%116, %c0_141, %c2_142, %c0_143, %c0_144] : memref<8x4x6x8x128xf32, #tpu.memory_space<vmem>>, vector<1x1x1x8x128xf32>
      %118 = vector.shape_cast %117 : vector<1x1x1x8x128xf32> to vector<8x128xf32>
      %119 = arith.index_cast %28 : i32 to index
      %c0_145 = arith.constant 0 : index
      %c3_146 = arith.constant 3 : index
      %c0_147 = arith.constant 0 : index
      %c0_148 = arith.constant 0 : index
      %120 = vector.load %arg4[%119, %c0_145, %c3_146, %c0_147, %c0_148] : memref<8x4x6x8x128xf32, #tpu.memory_space<vmem>>, vector<1x1x1x8x128xf32>
      %121 = vector.shape_cast %120 : vector<1x1x1x8x128xf32> to vector<8x128xf32>
      %122 = arith.index_cast %28 : i32 to index
      %c1_149 = arith.constant 1 : index
      %c0_150 = arith.constant 0 : index
      %c0_151 = arith.constant 0 : index
      %c0_152 = arith.constant 0 : index
      %123 = vector.load %arg4[%122, %c1_149, %c0_150, %c0_151, %c0_152] : memref<8x4x6x8x128xf32, #tpu.memory_space<vmem>>, vector<1x1x1x8x128xf32>
      %124 = vector.shape_cast %123 : vector<1x1x1x8x128xf32> to vector<8x128xf32>
      %125 = arith.index_cast %28 : i32 to index
      %c1_153 = arith.constant 1 : index
      %c1_154 = arith.constant 1 : index
      %c0_155 = arith.constant 0 : index
      %c0_156 = arith.constant 0 : index
      %126 = vector.load %arg4[%125, %c1_153, %c1_154, %c0_155, %c0_156] : memref<8x4x6x8x128xf32, #tpu.memory_space<vmem>>, vector<1x1x1x8x128xf32>
      %127 = vector.shape_cast %126 : vector<1x1x1x8x128xf32> to vector<8x128xf32>
      %128 = arith.index_cast %28 : i32 to index
      %c1_157 = arith.constant 1 : index
      %c2_158 = arith.constant 2 : index
      %c0_159 = arith.constant 0 : index
      %c0_160 = arith.constant 0 : index
      %129 = vector.load %arg4[%128, %c1_157, %c2_158, %c0_159, %c0_160] : memref<8x4x6x8x128xf32, #tpu.memory_space<vmem>>, vector<1x1x1x8x128xf32>
      %130 = vector.shape_cast %129 : vector<1x1x1x8x128xf32> to vector<8x128xf32>
      %131 = arith.index_cast %28 : i32 to index
      %c1_161 = arith.constant 1 : index
      %c3_162 = arith.constant 3 : index
      %c0_163 = arith.constant 0 : index
      %c0_164 = arith.constant 0 : index
      %132 = vector.load %arg4[%131, %c1_161, %c3_162, %c0_163, %c0_164] : memref<8x4x6x8x128xf32, #tpu.memory_space<vmem>>, vector<1x1x1x8x128xf32>
      %133 = vector.shape_cast %132 : vector<1x1x1x8x128xf32> to vector<8x128xf32>
      %134 = arith.index_cast %28 : i32 to index
      %c2_165 = arith.constant 2 : index
      %c0_166 = arith.constant 0 : index
      %c0_167 = arith.constant 0 : index
      %c0_168 = arith.constant 0 : index
      %135 = vector.load %arg4[%134, %c2_165, %c0_166, %c0_167, %c0_168] : memref<8x4x6x8x128xf32, #tpu.memory_space<vmem>>, vector<1x1x1x8x128xf32>
      %136 = vector.shape_cast %135 : vector<1x1x1x8x128xf32> to vector<8x128xf32>
      %137 = arith.index_cast %28 : i32 to index
      %c2_169 = arith.constant 2 : index
      %c1_170 = arith.constant 1 : index
      %c0_171 = arith.constant 0 : index
      %c0_172 = arith.constant 0 : index
      %138 = vector.load %arg4[%137, %c2_169, %c1_170, %c0_171, %c0_172] : memref<8x4x6x8x128xf32, #tpu.memory_space<vmem>>, vector<1x1x1x8x128xf32>
      %139 = vector.shape_cast %138 : vector<1x1x1x8x128xf32> to vector<8x128xf32>
      %140 = arith.index_cast %28 : i32 to index
      %c2_173 = arith.constant 2 : index
      %c2_174 = arith.constant 2 : index
      %c0_175 = arith.constant 0 : index
      %c0_176 = arith.constant 0 : index
      %141 = vector.load %arg4[%140, %c2_173, %c2_174, %c0_175, %c0_176] : memref<8x4x6x8x128xf32, #tpu.memory_space<vmem>>, vector<1x1x1x8x128xf32>
      %142 = vector.shape_cast %141 : vector<1x1x1x8x128xf32> to vector<8x128xf32>
      %143 = arith.index_cast %28 : i32 to index
      %c2_177 = arith.constant 2 : index
      %c3_178 = arith.constant 3 : index
      %c0_179 = arith.constant 0 : index
      %c0_180 = arith.constant 0 : index
      %144 = vector.load %arg4[%143, %c2_177, %c3_178, %c0_179, %c0_180] : memref<8x4x6x8x128xf32, #tpu.memory_space<vmem>>, vector<1x1x1x8x128xf32>
      %145 = vector.shape_cast %144 : vector<1x1x1x8x128xf32> to vector<8x128xf32>
      %146 = arith.index_cast %28 : i32 to index
      %c3_181 = arith.constant 3 : index
      %c0_182 = arith.constant 0 : index
      %c0_183 = arith.constant 0 : index
      %c0_184 = arith.constant 0 : index
      %147 = vector.load %arg4[%146, %c3_181, %c0_182, %c0_183, %c0_184] : memref<8x4x6x8x128xf32, #tpu.memory_space<vmem>>, vector<1x1x1x8x128xf32>
      %148 = vector.shape_cast %147 : vector<1x1x1x8x128xf32> to vector<8x128xf32>
      %149 = arith.index_cast %28 : i32 to index
      %c3_185 = arith.constant 3 : index
      %c1_186 = arith.constant 1 : index
      %c0_187 = arith.constant 0 : index
      %c0_188 = arith.constant 0 : index
      %150 = vector.load %arg4[%149, %c3_185, %c1_186, %c0_187, %c0_188] : memref<8x4x6x8x128xf32, #tpu.memory_space<vmem>>, vector<1x1x1x8x128xf32>
      %151 = vector.shape_cast %150 : vector<1x1x1x8x128xf32> to vector<8x128xf32>
      %152 = arith.index_cast %28 : i32 to index
      %c3_189 = arith.constant 3 : index
      %c2_190 = arith.constant 2 : index
      %c0_191 = arith.constant 0 : index
      %c0_192 = arith.constant 0 : index
      %153 = vector.load %arg4[%152, %c3_189, %c2_190, %c0_191, %c0_192] : memref<8x4x6x8x128xf32, #tpu.memory_space<vmem>>, vector<1x1x1x8x128xf32>
      %154 = vector.shape_cast %153 : vector<1x1x1x8x128xf32> to vector<8x128xf32>
      %155 = arith.index_cast %28 : i32 to index
      %c3_193 = arith.constant 3 : index
      %c3_194 = arith.constant 3 : index
      %c0_195 = arith.constant 0 : index
      %c0_196 = arith.constant 0 : index
      %156 = vector.load %arg4[%155, %c3_193, %c3_194, %c0_195, %c0_196] : memref<8x4x6x8x128xf32, #tpu.memory_space<vmem>>, vector<1x1x1x8x128xf32>
      %157 = vector.shape_cast %156 : vector<1x1x1x8x128xf32> to vector<8x128xf32>
      %158 = arith.index_cast %28 : i32 to index
      %c0_197 = arith.constant 0 : index
      %c4_198 = arith.constant 4 : index
      %c0_199 = arith.constant 0 : index
      %c0_200 = arith.constant 0 : index
      %159 = vector.load %arg4[%158, %c0_197, %c4_198, %c0_199, %c0_200] : memref<8x4x6x8x128xf32, #tpu.memory_space<vmem>>, vector<1x1x1x8x128xf32>
      %160 = vector.shape_cast %159 : vector<1x1x1x8x128xf32> to vector<8x128xf32>
      %161 = arith.index_cast %28 : i32 to index
      %c0_201 = arith.constant 0 : index
      %c5_202 = arith.constant 5 : index
      %c0_203 = arith.constant 0 : index
      %c0_204 = arith.constant 0 : index
      %162 = vector.load %arg4[%161, %c0_201, %c5_202, %c0_203, %c0_204] : memref<8x4x6x8x128xf32, #tpu.memory_space<vmem>>, vector<1x1x1x8x128xf32>
      %163 = vector.shape_cast %162 : vector<1x1x1x8x128xf32> to vector<8x128xf32>
      %164 = arith.index_cast %28 : i32 to index
      %c1_205 = arith.constant 1 : index
      %c4_206 = arith.constant 4 : index
      %c0_207 = arith.constant 0 : index
      %c0_208 = arith.constant 0 : index
      %165 = vector.load %arg4[%164, %c1_205, %c4_206, %c0_207, %c0_208] : memref<8x4x6x8x128xf32, #tpu.memory_space<vmem>>, vector<1x1x1x8x128xf32>
      %166 = vector.shape_cast %165 : vector<1x1x1x8x128xf32> to vector<8x128xf32>
      %167 = arith.index_cast %28 : i32 to index
      %c1_209 = arith.constant 1 : index
      %c5_210 = arith.constant 5 : index
      %c0_211 = arith.constant 0 : index
      %c0_212 = arith.constant 0 : index
      %168 = vector.load %arg4[%167, %c1_209, %c5_210, %c0_211, %c0_212] : memref<8x4x6x8x128xf32, #tpu.memory_space<vmem>>, vector<1x1x1x8x128xf32>
      %169 = vector.shape_cast %168 : vector<1x1x1x8x128xf32> to vector<8x128xf32>
      %170 = arith.index_cast %28 : i32 to index
      %c2_213 = arith.constant 2 : index
      %c4_214 = arith.constant 4 : index
      %c0_215 = arith.constant 0 : index
      %c0_216 = arith.constant 0 : index
      %171 = vector.load %arg4[%170, %c2_213, %c4_214, %c0_215, %c0_216] : memref<8x4x6x8x128xf32, #tpu.memory_space<vmem>>, vector<1x1x1x8x128xf32>
      %172 = vector.shape_cast %171 : vector<1x1x1x8x128xf32> to vector<8x128xf32>
      %173 = arith.index_cast %28 : i32 to index
      %c2_217 = arith.constant 2 : index
      %c5_218 = arith.constant 5 : index
      %c0_219 = arith.constant 0 : index
      %c0_220 = arith.constant 0 : index
      %174 = vector.load %arg4[%173, %c2_217, %c5_218, %c0_219, %c0_220] : memref<8x4x6x8x128xf32, #tpu.memory_space<vmem>>, vector<1x1x1x8x128xf32>
      %175 = vector.shape_cast %174 : vector<1x1x1x8x128xf32> to vector<8x128xf32>
      %176 = arith.index_cast %28 : i32 to index
      %c3_221 = arith.constant 3 : index
      %c4_222 = arith.constant 4 : index
      %c0_223 = arith.constant 0 : index
      %c0_224 = arith.constant 0 : index
      %177 = vector.load %arg4[%176, %c3_221, %c4_222, %c0_223, %c0_224] : memref<8x4x6x8x128xf32, #tpu.memory_space<vmem>>, vector<1x1x1x8x128xf32>
      %178 = vector.shape_cast %177 : vector<1x1x1x8x128xf32> to vector<8x128xf32>
      %179 = arith.index_cast %28 : i32 to index
      %c3_225 = arith.constant 3 : index
      %c5_226 = arith.constant 5 : index
      %c0_227 = arith.constant 0 : index
      %c0_228 = arith.constant 0 : index
      %180 = vector.load %arg4[%179, %c3_225, %c5_226, %c0_227, %c0_228] : memref<8x4x6x8x128xf32, #tpu.memory_space<vmem>>, vector<1x1x1x8x128xf32>
      %181 = vector.shape_cast %180 : vector<1x1x1x8x128xf32> to vector<8x128xf32>
      %182 = arith.index_cast %28 : i32 to index
      %c0_229 = arith.constant 0 : index
      %c0_230 = arith.constant 0 : index
      %c0_231 = arith.constant 0 : index
      %183 = vector.load %arg6[%182, %c0_229, %c0_230, %c0_231] : memref<8x4x8x128xf32, #tpu.memory_space<vmem>>, vector<1x1x8x128xf32>
      %184 = vector.shape_cast %183 : vector<1x1x8x128xf32> to vector<8x128xf32>
      %185 = arith.index_cast %28 : i32 to index
      %c1_232 = arith.constant 1 : index
      %c0_233 = arith.constant 0 : index
      %c0_234 = arith.constant 0 : index
      %186 = vector.load %arg6[%185, %c1_232, %c0_233, %c0_234] : memref<8x4x8x128xf32, #tpu.memory_space<vmem>>, vector<1x1x8x128xf32>
      %187 = vector.shape_cast %186 : vector<1x1x8x128xf32> to vector<8x128xf32>
      %188 = arith.index_cast %28 : i32 to index
      %c2_235 = arith.constant 2 : index
      %c0_236 = arith.constant 0 : index
      %c0_237 = arith.constant 0 : index
      %189 = vector.load %arg6[%188, %c2_235, %c0_236, %c0_237] : memref<8x4x8x128xf32, #tpu.memory_space<vmem>>, vector<1x1x8x128xf32>
      %190 = vector.shape_cast %189 : vector<1x1x8x128xf32> to vector<8x128xf32>
      %191 = arith.index_cast %28 : i32 to index
      %c3_238 = arith.constant 3 : index
      %c0_239 = arith.constant 0 : index
      %c0_240 = arith.constant 0 : index
      %192 = vector.load %arg6[%191, %c3_238, %c0_239, %c0_240] : memref<8x4x8x128xf32, #tpu.memory_space<vmem>>, vector<1x1x8x128xf32>
      %193 = vector.shape_cast %192 : vector<1x1x8x128xf32> to vector<8x128xf32>
      %194 = arith.index_cast %28 : i32 to index
      %c0_241 = arith.constant 0 : index
      %c0_242 = arith.constant 0 : index
      %c0_243 = arith.constant 0 : index
      %195 = vector.load %arg7[%194, %c0_241, %c0_242, %c0_243] : memref<8x2x8x128xf32, #tpu.memory_space<vmem>>, vector<1x1x8x128xf32>
      %196 = vector.shape_cast %195 : vector<1x1x8x128xf32> to vector<8x128xf32>
      %197 = arith.index_cast %28 : i32 to index
      %c1_244 = arith.constant 1 : index
      %c0_245 = arith.constant 0 : index
      %c0_246 = arith.constant 0 : index
      %198 = vector.load %arg7[%197, %c1_244, %c0_245, %c0_246] : memref<8x2x8x128xf32, #tpu.memory_space<vmem>>, vector<1x1x8x128xf32>
      %199 = vector.shape_cast %198 : vector<1x1x8x128xf32> to vector<8x128xf32>
      %200 = arith.mulf %31, %184 : vector<8x128xf32>
      %201 = arith.mulf %34, %187 : vector<8x128xf32>
      %202 = arith.addf %200, %201 : vector<8x128xf32>
      %203 = arith.mulf %37, %190 : vector<8x128xf32>
      %204 = arith.addf %202, %203 : vector<8x128xf32>
      %205 = arith.mulf %40, %193 : vector<8x128xf32>
      %206 = arith.addf %204, %205 : vector<8x128xf32>
      %207 = arith.addf %94, %206 : vector<8x128xf32>
      %208 = arith.mulf %61, %196 : vector<8x128xf32>
      %209 = arith.mulf %64, %199 : vector<8x128xf32>
      %210 = arith.addf %208, %209 : vector<8x128xf32>
      %211 = arith.addf %207, %210 : vector<8x128xf32>
      %212 = arith.mulf %34, %184 : vector<8x128xf32>
      %213 = arith.mulf %43, %187 : vector<8x128xf32>
      %214 = arith.addf %212, %213 : vector<8x128xf32>
      %215 = arith.mulf %46, %190 : vector<8x128xf32>
      %216 = arith.addf %214, %215 : vector<8x128xf32>
      %217 = arith.mulf %49, %193 : vector<8x128xf32>
      %218 = arith.addf %216, %217 : vector<8x128xf32>
      %219 = arith.addf %97, %218 : vector<8x128xf32>
      %220 = arith.mulf %67, %196 : vector<8x128xf32>
      %221 = arith.mulf %70, %199 : vector<8x128xf32>
      %222 = arith.addf %220, %221 : vector<8x128xf32>
      %223 = arith.addf %219, %222 : vector<8x128xf32>
      %224 = arith.mulf %37, %184 : vector<8x128xf32>
      %225 = arith.mulf %46, %187 : vector<8x128xf32>
      %226 = arith.addf %224, %225 : vector<8x128xf32>
      %227 = arith.mulf %52, %190 : vector<8x128xf32>
      %228 = arith.addf %226, %227 : vector<8x128xf32>
      %229 = arith.mulf %55, %193 : vector<8x128xf32>
      %230 = arith.addf %228, %229 : vector<8x128xf32>
      %231 = arith.addf %100, %230 : vector<8x128xf32>
      %232 = arith.mulf %73, %196 : vector<8x128xf32>
      %233 = arith.mulf %76, %199 : vector<8x128xf32>
      %234 = arith.addf %232, %233 : vector<8x128xf32>
      %235 = arith.addf %231, %234 : vector<8x128xf32>
      %236 = arith.mulf %40, %184 : vector<8x128xf32>
      %237 = arith.mulf %49, %187 : vector<8x128xf32>
      %238 = arith.addf %236, %237 : vector<8x128xf32>
      %239 = arith.mulf %55, %190 : vector<8x128xf32>
      %240 = arith.addf %238, %239 : vector<8x128xf32>
      %241 = arith.mulf %58, %193 : vector<8x128xf32>
      %242 = arith.addf %240, %241 : vector<8x128xf32>
      %243 = arith.addf %103, %242 : vector<8x128xf32>
      %244 = arith.mulf %79, %196 : vector<8x128xf32>
      %245 = arith.mulf %82, %199 : vector<8x128xf32>
      %246 = arith.addf %244, %245 : vector<8x128xf32>
      %247 = arith.addf %243, %246 : vector<8x128xf32>
      %248 = arith.mulf %61, %184 : vector<8x128xf32>
      %249 = arith.mulf %67, %187 : vector<8x128xf32>
      %250 = arith.addf %248, %249 : vector<8x128xf32>
      %251 = arith.mulf %73, %190 : vector<8x128xf32>
      %252 = arith.addf %250, %251 : vector<8x128xf32>
      %253 = arith.mulf %79, %193 : vector<8x128xf32>
      %254 = arith.addf %252, %253 : vector<8x128xf32>
      %255 = arith.addf %106, %254 : vector<8x128xf32>
      %256 = arith.mulf %85, %196 : vector<8x128xf32>
      %257 = arith.mulf %88, %199 : vector<8x128xf32>
      %258 = arith.addf %256, %257 : vector<8x128xf32>
      %259 = arith.addf %255, %258 : vector<8x128xf32>
      %260 = arith.mulf %64, %184 : vector<8x128xf32>
      %261 = arith.mulf %70, %187 : vector<8x128xf32>
      %262 = arith.addf %260, %261 : vector<8x128xf32>
      %263 = arith.mulf %76, %190 : vector<8x128xf32>
      %264 = arith.addf %262, %263 : vector<8x128xf32>
      %265 = arith.mulf %82, %193 : vector<8x128xf32>
      %266 = arith.addf %264, %265 : vector<8x128xf32>
      %267 = arith.addf %109, %266 : vector<8x128xf32>
      %268 = arith.mulf %88, %196 : vector<8x128xf32>
      %269 = arith.mulf %91, %199 : vector<8x128xf32>
      %270 = arith.addf %268, %269 : vector<8x128xf32>
      %271 = arith.addf %267, %270 : vector<8x128xf32>
      %272 = arith.mulf %arg14, %112 : vector<8x128xf32>
      %273 = arith.mulf %arg15, %124 : vector<8x128xf32>
      %274 = arith.addf %272, %273 : vector<8x128xf32>
      %275 = arith.mulf %arg16, %136 : vector<8x128xf32>
      %276 = arith.addf %274, %275 : vector<8x128xf32>
      %277 = arith.mulf %arg17, %148 : vector<8x128xf32>
      %278 = arith.addf %276, %277 : vector<8x128xf32>
      %279 = arith.mulf %arg14, %115 : vector<8x128xf32>
      %280 = arith.mulf %arg15, %127 : vector<8x128xf32>
      %281 = arith.addf %279, %280 : vector<8x128xf32>
      %282 = arith.mulf %arg16, %139 : vector<8x128xf32>
      %283 = arith.addf %281, %282 : vector<8x128xf32>
      %284 = arith.mulf %arg17, %151 : vector<8x128xf32>
      %285 = arith.addf %283, %284 : vector<8x128xf32>
      %286 = arith.mulf %arg14, %118 : vector<8x128xf32>
      %287 = arith.mulf %arg15, %130 : vector<8x128xf32>
      %288 = arith.addf %286, %287 : vector<8x128xf32>
      %289 = arith.mulf %arg16, %142 : vector<8x128xf32>
      %290 = arith.addf %288, %289 : vector<8x128xf32>
      %291 = arith.mulf %arg17, %154 : vector<8x128xf32>
      %292 = arith.addf %290, %291 : vector<8x128xf32>
      %293 = arith.mulf %arg14, %121 : vector<8x128xf32>
      %294 = arith.mulf %arg15, %133 : vector<8x128xf32>
      %295 = arith.addf %293, %294 : vector<8x128xf32>
      %296 = arith.mulf %arg16, %145 : vector<8x128xf32>
      %297 = arith.addf %295, %296 : vector<8x128xf32>
      %298 = arith.mulf %arg17, %157 : vector<8x128xf32>
      %299 = arith.addf %297, %298 : vector<8x128xf32>
      %300 = arith.mulf %arg15, %112 : vector<8x128xf32>
      %301 = arith.mulf %arg18, %124 : vector<8x128xf32>
      %302 = arith.addf %300, %301 : vector<8x128xf32>
      %303 = arith.mulf %arg19, %136 : vector<8x128xf32>
      %304 = arith.addf %302, %303 : vector<8x128xf32>
      %305 = arith.mulf %arg20, %148 : vector<8x128xf32>
      %306 = arith.addf %304, %305 : vector<8x128xf32>
      %307 = arith.mulf %arg15, %115 : vector<8x128xf32>
      %308 = arith.mulf %arg18, %127 : vector<8x128xf32>
      %309 = arith.addf %307, %308 : vector<8x128xf32>
      %310 = arith.mulf %arg19, %139 : vector<8x128xf32>
      %311 = arith.addf %309, %310 : vector<8x128xf32>
      %312 = arith.mulf %arg20, %151 : vector<8x128xf32>
      %313 = arith.addf %311, %312 : vector<8x128xf32>
      %314 = arith.mulf %arg15, %118 : vector<8x128xf32>
      %315 = arith.mulf %arg18, %130 : vector<8x128xf32>
      %316 = arith.addf %314, %315 : vector<8x128xf32>
      %317 = arith.mulf %arg19, %142 : vector<8x128xf32>
      %318 = arith.addf %316, %317 : vector<8x128xf32>
      %319 = arith.mulf %arg20, %154 : vector<8x128xf32>
      %320 = arith.addf %318, %319 : vector<8x128xf32>
      %321 = arith.mulf %arg15, %121 : vector<8x128xf32>
      %322 = arith.mulf %arg18, %133 : vector<8x128xf32>
      %323 = arith.addf %321, %322 : vector<8x128xf32>
      %324 = arith.mulf %arg19, %145 : vector<8x128xf32>
      %325 = arith.addf %323, %324 : vector<8x128xf32>
      %326 = arith.mulf %arg20, %157 : vector<8x128xf32>
      %327 = arith.addf %325, %326 : vector<8x128xf32>
      %328 = arith.mulf %arg16, %112 : vector<8x128xf32>
      %329 = arith.mulf %arg19, %124 : vector<8x128xf32>
      %330 = arith.addf %328, %329 : vector<8x128xf32>
      %331 = arith.mulf %arg21, %136 : vector<8x128xf32>
      %332 = arith.addf %330, %331 : vector<8x128xf32>
      %333 = arith.mulf %arg22, %148 : vector<8x128xf32>
      %334 = arith.addf %332, %333 : vector<8x128xf32>
      %335 = arith.mulf %arg16, %115 : vector<8x128xf32>
      %336 = arith.mulf %arg19, %127 : vector<8x128xf32>
      %337 = arith.addf %335, %336 : vector<8x128xf32>
      %338 = arith.mulf %arg21, %139 : vector<8x128xf32>
      %339 = arith.addf %337, %338 : vector<8x128xf32>
      %340 = arith.mulf %arg22, %151 : vector<8x128xf32>
      %341 = arith.addf %339, %340 : vector<8x128xf32>
      %342 = arith.mulf %arg16, %118 : vector<8x128xf32>
      %343 = arith.mulf %arg19, %130 : vector<8x128xf32>
      %344 = arith.addf %342, %343 : vector<8x128xf32>
      %345 = arith.mulf %arg21, %142 : vector<8x128xf32>
      %346 = arith.addf %344, %345 : vector<8x128xf32>
      %347 = arith.mulf %arg22, %154 : vector<8x128xf32>
      %348 = arith.addf %346, %347 : vector<8x128xf32>
      %349 = arith.mulf %arg16, %121 : vector<8x128xf32>
      %350 = arith.mulf %arg19, %133 : vector<8x128xf32>
      %351 = arith.addf %349, %350 : vector<8x128xf32>
      %352 = arith.mulf %arg21, %145 : vector<8x128xf32>
      %353 = arith.addf %351, %352 : vector<8x128xf32>
      %354 = arith.mulf %arg22, %157 : vector<8x128xf32>
      %355 = arith.addf %353, %354 : vector<8x128xf32>
      %356 = arith.mulf %arg17, %112 : vector<8x128xf32>
      %357 = arith.mulf %arg20, %124 : vector<8x128xf32>
      %358 = arith.addf %356, %357 : vector<8x128xf32>
      %359 = arith.mulf %arg22, %136 : vector<8x128xf32>
      %360 = arith.addf %358, %359 : vector<8x128xf32>
      %361 = arith.mulf %arg23, %148 : vector<8x128xf32>
      %362 = arith.addf %360, %361 : vector<8x128xf32>
      %363 = arith.mulf %arg17, %115 : vector<8x128xf32>
      %364 = arith.mulf %arg20, %127 : vector<8x128xf32>
      %365 = arith.addf %363, %364 : vector<8x128xf32>
      %366 = arith.mulf %arg22, %139 : vector<8x128xf32>
      %367 = arith.addf %365, %366 : vector<8x128xf32>
      %368 = arith.mulf %arg23, %151 : vector<8x128xf32>
      %369 = arith.addf %367, %368 : vector<8x128xf32>
      %370 = arith.mulf %arg17, %118 : vector<8x128xf32>
      %371 = arith.mulf %arg20, %130 : vector<8x128xf32>
      %372 = arith.addf %370, %371 : vector<8x128xf32>
      %373 = arith.mulf %arg22, %142 : vector<8x128xf32>
      %374 = arith.addf %372, %373 : vector<8x128xf32>
      %375 = arith.mulf %arg23, %154 : vector<8x128xf32>
      %376 = arith.addf %374, %375 : vector<8x128xf32>
      %377 = arith.mulf %arg17, %121 : vector<8x128xf32>
      %378 = arith.mulf %arg20, %133 : vector<8x128xf32>
      %379 = arith.addf %377, %378 : vector<8x128xf32>
      %380 = arith.mulf %arg22, %145 : vector<8x128xf32>
      %381 = arith.addf %379, %380 : vector<8x128xf32>
      %382 = arith.mulf %arg23, %157 : vector<8x128xf32>
      %383 = arith.addf %381, %382 : vector<8x128xf32>
      %384 = arith.mulf %arg14, %160 : vector<8x128xf32>
      %385 = arith.mulf %arg15, %166 : vector<8x128xf32>
      %386 = arith.addf %384, %385 : vector<8x128xf32>
      %387 = arith.mulf %arg16, %172 : vector<8x128xf32>
      %388 = arith.addf %386, %387 : vector<8x128xf32>
      %389 = arith.mulf %arg17, %178 : vector<8x128xf32>
      %390 = arith.addf %388, %389 : vector<8x128xf32>
      %391 = arith.mulf %arg14, %163 : vector<8x128xf32>
      %392 = arith.mulf %arg15, %169 : vector<8x128xf32>
      %393 = arith.addf %391, %392 : vector<8x128xf32>
      %394 = arith.mulf %arg16, %175 : vector<8x128xf32>
      %395 = arith.addf %393, %394 : vector<8x128xf32>
      %396 = arith.mulf %arg17, %181 : vector<8x128xf32>
      %397 = arith.addf %395, %396 : vector<8x128xf32>
      %398 = arith.mulf %arg15, %160 : vector<8x128xf32>
      %399 = arith.mulf %arg18, %166 : vector<8x128xf32>
      %400 = arith.addf %398, %399 : vector<8x128xf32>
      %401 = arith.mulf %arg19, %172 : vector<8x128xf32>
      %402 = arith.addf %400, %401 : vector<8x128xf32>
      %403 = arith.mulf %arg20, %178 : vector<8x128xf32>
      %404 = arith.addf %402, %403 : vector<8x128xf32>
      %405 = arith.mulf %arg15, %163 : vector<8x128xf32>
      %406 = arith.mulf %arg18, %169 : vector<8x128xf32>
      %407 = arith.addf %405, %406 : vector<8x128xf32>
      %408 = arith.mulf %arg19, %175 : vector<8x128xf32>
      %409 = arith.addf %407, %408 : vector<8x128xf32>
      %410 = arith.mulf %arg20, %181 : vector<8x128xf32>
      %411 = arith.addf %409, %410 : vector<8x128xf32>
      %412 = arith.mulf %arg16, %160 : vector<8x128xf32>
      %413 = arith.mulf %arg19, %166 : vector<8x128xf32>
      %414 = arith.addf %412, %413 : vector<8x128xf32>
      %415 = arith.mulf %arg21, %172 : vector<8x128xf32>
      %416 = arith.addf %414, %415 : vector<8x128xf32>
      %417 = arith.mulf %arg22, %178 : vector<8x128xf32>
      %418 = arith.addf %416, %417 : vector<8x128xf32>
      %419 = arith.mulf %arg16, %163 : vector<8x128xf32>
      %420 = arith.mulf %arg19, %169 : vector<8x128xf32>
      %421 = arith.addf %419, %420 : vector<8x128xf32>
      %422 = arith.mulf %arg21, %175 : vector<8x128xf32>
      %423 = arith.addf %421, %422 : vector<8x128xf32>
      %424 = arith.mulf %arg22, %181 : vector<8x128xf32>
      %425 = arith.addf %423, %424 : vector<8x128xf32>
      %426 = arith.mulf %arg17, %160 : vector<8x128xf32>
      %427 = arith.mulf %arg20, %166 : vector<8x128xf32>
      %428 = arith.addf %426, %427 : vector<8x128xf32>
      %429 = arith.mulf %arg22, %172 : vector<8x128xf32>
      %430 = arith.addf %428, %429 : vector<8x128xf32>
      %431 = arith.mulf %arg23, %178 : vector<8x128xf32>
      %432 = arith.addf %430, %431 : vector<8x128xf32>
      %433 = arith.mulf %arg17, %163 : vector<8x128xf32>
      %434 = arith.mulf %arg20, %169 : vector<8x128xf32>
      %435 = arith.addf %433, %434 : vector<8x128xf32>
      %436 = arith.mulf %arg22, %175 : vector<8x128xf32>
      %437 = arith.addf %435, %436 : vector<8x128xf32>
      %438 = arith.mulf %arg23, %181 : vector<8x128xf32>
      %439 = arith.addf %437, %438 : vector<8x128xf32>
      %440 = arith.mulf %112, %278 : vector<8x128xf32>
      %441 = arith.mulf %124, %306 : vector<8x128xf32>
      %442 = arith.addf %440, %441 : vector<8x128xf32>
      %443 = arith.mulf %136, %334 : vector<8x128xf32>
      %444 = arith.addf %442, %443 : vector<8x128xf32>
      %445 = arith.mulf %148, %362 : vector<8x128xf32>
      %446 = arith.addf %444, %445 : vector<8x128xf32>
      %447 = arith.addf %31, %446 : vector<8x128xf32>
      %448 = arith.mulf %112, %285 : vector<8x128xf32>
      %449 = arith.mulf %124, %313 : vector<8x128xf32>
      %450 = arith.addf %448, %449 : vector<8x128xf32>
      %451 = arith.mulf %136, %341 : vector<8x128xf32>
      %452 = arith.addf %450, %451 : vector<8x128xf32>
      %453 = arith.mulf %148, %369 : vector<8x128xf32>
      %454 = arith.addf %452, %453 : vector<8x128xf32>
      %455 = arith.addf %34, %454 : vector<8x128xf32>
      %456 = arith.mulf %112, %292 : vector<8x128xf32>
      %457 = arith.mulf %124, %320 : vector<8x128xf32>
      %458 = arith.addf %456, %457 : vector<8x128xf32>
      %459 = arith.mulf %136, %348 : vector<8x128xf32>
      %460 = arith.addf %458, %459 : vector<8x128xf32>
      %461 = arith.mulf %148, %376 : vector<8x128xf32>
      %462 = arith.addf %460, %461 : vector<8x128xf32>
      %463 = arith.addf %37, %462 : vector<8x128xf32>
      %464 = arith.mulf %112, %299 : vector<8x128xf32>
      %465 = arith.mulf %124, %327 : vector<8x128xf32>
      %466 = arith.addf %464, %465 : vector<8x128xf32>
      %467 = arith.mulf %136, %355 : vector<8x128xf32>
      %468 = arith.addf %466, %467 : vector<8x128xf32>
      %469 = arith.mulf %148, %383 : vector<8x128xf32>
      %470 = arith.addf %468, %469 : vector<8x128xf32>
      %471 = arith.addf %40, %470 : vector<8x128xf32>
      %472 = arith.mulf %115, %285 : vector<8x128xf32>
      %473 = arith.mulf %127, %313 : vector<8x128xf32>
      %474 = arith.addf %472, %473 : vector<8x128xf32>
      %475 = arith.mulf %139, %341 : vector<8x128xf32>
      %476 = arith.addf %474, %475 : vector<8x128xf32>
      %477 = arith.mulf %151, %369 : vector<8x128xf32>
      %478 = arith.addf %476, %477 : vector<8x128xf32>
      %479 = arith.addf %43, %478 : vector<8x128xf32>
      %480 = arith.mulf %115, %292 : vector<8x128xf32>
      %481 = arith.mulf %127, %320 : vector<8x128xf32>
      %482 = arith.addf %480, %481 : vector<8x128xf32>
      %483 = arith.mulf %139, %348 : vector<8x128xf32>
      %484 = arith.addf %482, %483 : vector<8x128xf32>
      %485 = arith.mulf %151, %376 : vector<8x128xf32>
      %486 = arith.addf %484, %485 : vector<8x128xf32>
      %487 = arith.addf %46, %486 : vector<8x128xf32>
      %488 = arith.mulf %115, %299 : vector<8x128xf32>
      %489 = arith.mulf %127, %327 : vector<8x128xf32>
      %490 = arith.addf %488, %489 : vector<8x128xf32>
      %491 = arith.mulf %139, %355 : vector<8x128xf32>
      %492 = arith.addf %490, %491 : vector<8x128xf32>
      %493 = arith.mulf %151, %383 : vector<8x128xf32>
      %494 = arith.addf %492, %493 : vector<8x128xf32>
      %495 = arith.addf %49, %494 : vector<8x128xf32>
      %496 = arith.mulf %118, %292 : vector<8x128xf32>
      %497 = arith.mulf %130, %320 : vector<8x128xf32>
      %498 = arith.addf %496, %497 : vector<8x128xf32>
      %499 = arith.mulf %142, %348 : vector<8x128xf32>
      %500 = arith.addf %498, %499 : vector<8x128xf32>
      %501 = arith.mulf %154, %376 : vector<8x128xf32>
      %502 = arith.addf %500, %501 : vector<8x128xf32>
      %503 = arith.addf %52, %502 : vector<8x128xf32>
      %504 = arith.mulf %118, %299 : vector<8x128xf32>
      %505 = arith.mulf %130, %327 : vector<8x128xf32>
      %506 = arith.addf %504, %505 : vector<8x128xf32>
      %507 = arith.mulf %142, %355 : vector<8x128xf32>
      %508 = arith.addf %506, %507 : vector<8x128xf32>
      %509 = arith.mulf %154, %383 : vector<8x128xf32>
      %510 = arith.addf %508, %509 : vector<8x128xf32>
      %511 = arith.addf %55, %510 : vector<8x128xf32>
      %512 = arith.mulf %121, %299 : vector<8x128xf32>
      %513 = arith.mulf %133, %327 : vector<8x128xf32>
      %514 = arith.addf %512, %513 : vector<8x128xf32>
      %515 = arith.mulf %145, %355 : vector<8x128xf32>
      %516 = arith.addf %514, %515 : vector<8x128xf32>
      %517 = arith.mulf %157, %383 : vector<8x128xf32>
      %518 = arith.addf %516, %517 : vector<8x128xf32>
      %519 = arith.addf %58, %518 : vector<8x128xf32>
      %520 = arith.mulf %112, %390 : vector<8x128xf32>
      %521 = arith.mulf %124, %404 : vector<8x128xf32>
      %522 = arith.addf %520, %521 : vector<8x128xf32>
      %523 = arith.mulf %136, %418 : vector<8x128xf32>
      %524 = arith.addf %522, %523 : vector<8x128xf32>
      %525 = arith.mulf %148, %432 : vector<8x128xf32>
      %526 = arith.addf %524, %525 : vector<8x128xf32>
      %527 = arith.addf %61, %526 : vector<8x128xf32>
      %528 = arith.mulf %112, %397 : vector<8x128xf32>
      %529 = arith.mulf %124, %411 : vector<8x128xf32>
      %530 = arith.addf %528, %529 : vector<8x128xf32>
      %531 = arith.mulf %136, %425 : vector<8x128xf32>
      %532 = arith.addf %530, %531 : vector<8x128xf32>
      %533 = arith.mulf %148, %439 : vector<8x128xf32>
      %534 = arith.addf %532, %533 : vector<8x128xf32>
      %535 = arith.addf %64, %534 : vector<8x128xf32>
      %536 = arith.mulf %115, %390 : vector<8x128xf32>
      %537 = arith.mulf %127, %404 : vector<8x128xf32>
      %538 = arith.addf %536, %537 : vector<8x128xf32>
      %539 = arith.mulf %139, %418 : vector<8x128xf32>
      %540 = arith.addf %538, %539 : vector<8x128xf32>
      %541 = arith.mulf %151, %432 : vector<8x128xf32>
      %542 = arith.addf %540, %541 : vector<8x128xf32>
      %543 = arith.addf %67, %542 : vector<8x128xf32>
      %544 = arith.mulf %115, %397 : vector<8x128xf32>
      %545 = arith.mulf %127, %411 : vector<8x128xf32>
      %546 = arith.addf %544, %545 : vector<8x128xf32>
      %547 = arith.mulf %139, %425 : vector<8x128xf32>
      %548 = arith.addf %546, %547 : vector<8x128xf32>
      %549 = arith.mulf %151, %439 : vector<8x128xf32>
      %550 = arith.addf %548, %549 : vector<8x128xf32>
      %551 = arith.addf %70, %550 : vector<8x128xf32>
      %552 = arith.mulf %118, %390 : vector<8x128xf32>
      %553 = arith.mulf %130, %404 : vector<8x128xf32>
      %554 = arith.addf %552, %553 : vector<8x128xf32>
      %555 = arith.mulf %142, %418 : vector<8x128xf32>
      %556 = arith.addf %554, %555 : vector<8x128xf32>
      %557 = arith.mulf %154, %432 : vector<8x128xf32>
      %558 = arith.addf %556, %557 : vector<8x128xf32>
      %559 = arith.addf %73, %558 : vector<8x128xf32>
      %560 = arith.mulf %118, %397 : vector<8x128xf32>
      %561 = arith.mulf %130, %411 : vector<8x128xf32>
      %562 = arith.addf %560, %561 : vector<8x128xf32>
      %563 = arith.mulf %142, %425 : vector<8x128xf32>
      %564 = arith.addf %562, %563 : vector<8x128xf32>
      %565 = arith.mulf %154, %439 : vector<8x128xf32>
      %566 = arith.addf %564, %565 : vector<8x128xf32>
      %567 = arith.addf %76, %566 : vector<8x128xf32>
      %568 = arith.mulf %121, %390 : vector<8x128xf32>
      %569 = arith.mulf %133, %404 : vector<8x128xf32>
      %570 = arith.addf %568, %569 : vector<8x128xf32>
      %571 = arith.mulf %145, %418 : vector<8x128xf32>
      %572 = arith.addf %570, %571 : vector<8x128xf32>
      %573 = arith.mulf %157, %432 : vector<8x128xf32>
      %574 = arith.addf %572, %573 : vector<8x128xf32>
      %575 = arith.addf %79, %574 : vector<8x128xf32>
      %576 = arith.mulf %121, %397 : vector<8x128xf32>
      %577 = arith.mulf %133, %411 : vector<8x128xf32>
      %578 = arith.addf %576, %577 : vector<8x128xf32>
      %579 = arith.mulf %145, %425 : vector<8x128xf32>
      %580 = arith.addf %578, %579 : vector<8x128xf32>
      %581 = arith.mulf %157, %439 : vector<8x128xf32>
      %582 = arith.addf %580, %581 : vector<8x128xf32>
      %583 = arith.addf %82, %582 : vector<8x128xf32>
      %584 = arith.mulf %160, %390 : vector<8x128xf32>
      %585 = arith.mulf %166, %404 : vector<8x128xf32>
      %586 = arith.addf %584, %585 : vector<8x128xf32>
      %587 = arith.mulf %172, %418 : vector<8x128xf32>
      %588 = arith.addf %586, %587 : vector<8x128xf32>
      %589 = arith.mulf %178, %432 : vector<8x128xf32>
      %590 = arith.addf %588, %589 : vector<8x128xf32>
      %591 = arith.addf %85, %590 : vector<8x128xf32>
      %592 = arith.mulf %160, %397 : vector<8x128xf32>
      %593 = arith.mulf %166, %411 : vector<8x128xf32>
      %594 = arith.addf %592, %593 : vector<8x128xf32>
      %595 = arith.mulf %172, %425 : vector<8x128xf32>
      %596 = arith.addf %594, %595 : vector<8x128xf32>
      %597 = arith.mulf %178, %439 : vector<8x128xf32>
      %598 = arith.addf %596, %597 : vector<8x128xf32>
      %599 = arith.addf %88, %598 : vector<8x128xf32>
      %600 = arith.mulf %163, %397 : vector<8x128xf32>
      %601 = arith.mulf %169, %411 : vector<8x128xf32>
      %602 = arith.addf %600, %601 : vector<8x128xf32>
      %603 = arith.mulf %175, %425 : vector<8x128xf32>
      %604 = arith.addf %602, %603 : vector<8x128xf32>
      %605 = arith.mulf %181, %439 : vector<8x128xf32>
      %606 = arith.addf %604, %605 : vector<8x128xf32>
      %607 = arith.addf %91, %606 : vector<8x128xf32>
      %608 = arith.mulf %112, %arg24 : vector<8x128xf32>
      %609 = arith.mulf %124, %arg25 : vector<8x128xf32>
      %610 = arith.addf %608, %609 : vector<8x128xf32>
      %611 = arith.mulf %136, %arg26 : vector<8x128xf32>
      %612 = arith.addf %610, %611 : vector<8x128xf32>
      %613 = arith.mulf %148, %arg27 : vector<8x128xf32>
      %614 = arith.addf %612, %613 : vector<8x128xf32>
      %615 = arith.addf %211, %614 : vector<8x128xf32>
      %616 = arith.mulf %115, %arg24 : vector<8x128xf32>
      %617 = arith.mulf %127, %arg25 : vector<8x128xf32>
      %618 = arith.addf %616, %617 : vector<8x128xf32>
      %619 = arith.mulf %139, %arg26 : vector<8x128xf32>
      %620 = arith.addf %618, %619 : vector<8x128xf32>
      %621 = arith.mulf %151, %arg27 : vector<8x128xf32>
      %622 = arith.addf %620, %621 : vector<8x128xf32>
      %623 = arith.addf %223, %622 : vector<8x128xf32>
      %624 = arith.mulf %118, %arg24 : vector<8x128xf32>
      %625 = arith.mulf %130, %arg25 : vector<8x128xf32>
      %626 = arith.addf %624, %625 : vector<8x128xf32>
      %627 = arith.mulf %142, %arg26 : vector<8x128xf32>
      %628 = arith.addf %626, %627 : vector<8x128xf32>
      %629 = arith.mulf %154, %arg27 : vector<8x128xf32>
      %630 = arith.addf %628, %629 : vector<8x128xf32>
      %631 = arith.addf %235, %630 : vector<8x128xf32>
      %632 = arith.mulf %121, %arg24 : vector<8x128xf32>
      %633 = arith.mulf %133, %arg25 : vector<8x128xf32>
      %634 = arith.addf %632, %633 : vector<8x128xf32>
      %635 = arith.mulf %145, %arg26 : vector<8x128xf32>
      %636 = arith.addf %634, %635 : vector<8x128xf32>
      %637 = arith.mulf %157, %arg27 : vector<8x128xf32>
      %638 = arith.addf %636, %637 : vector<8x128xf32>
      %639 = arith.addf %247, %638 : vector<8x128xf32>
      %640 = arith.mulf %160, %arg24 : vector<8x128xf32>
      %641 = arith.mulf %166, %arg25 : vector<8x128xf32>
      %642 = arith.addf %640, %641 : vector<8x128xf32>
      %643 = arith.mulf %172, %arg26 : vector<8x128xf32>
      %644 = arith.addf %642, %643 : vector<8x128xf32>
      %645 = arith.mulf %178, %arg27 : vector<8x128xf32>
      %646 = arith.addf %644, %645 : vector<8x128xf32>
      %647 = arith.addf %259, %646 : vector<8x128xf32>
      %648 = arith.mulf %163, %arg24 : vector<8x128xf32>
      %649 = arith.mulf %169, %arg25 : vector<8x128xf32>
      %650 = arith.addf %648, %649 : vector<8x128xf32>
      %651 = arith.mulf %175, %arg26 : vector<8x128xf32>
      %652 = arith.addf %650, %651 : vector<8x128xf32>
      %653 = arith.mulf %181, %arg27 : vector<8x128xf32>
      %654 = arith.addf %652, %653 : vector<8x128xf32>
      %655 = arith.addf %271, %654 : vector<8x128xf32>
      %656 = tpu.reciprocal %591 {approx = true} : vector<8x128xf32> -> vector<8x128xf32>
      %657 = arith.mulf %591, %656 : vector<8x128xf32>
      %cst_247 = arith.constant 2.000000e+00 : f32
      %658 = vector.broadcast %cst_247 : f32 to vector<8x128xf32>
      %659 = arith.subf %658, %657 : vector<8x128xf32>
      %660 = arith.mulf %656, %659 : vector<8x128xf32>
      %661 = arith.mulf %599, %660 : vector<8x128xf32>
      %662 = arith.mulf %527, %660 : vector<8x128xf32>
      %663 = arith.mulf %543, %660 : vector<8x128xf32>
      %664 = arith.mulf %559, %660 : vector<8x128xf32>
      %665 = arith.mulf %575, %660 : vector<8x128xf32>
      %666 = arith.mulf %647, %660 : vector<8x128xf32>
      %667 = arith.mulf %599, %661 : vector<8x128xf32>
      %668 = arith.subf %607, %667 : vector<8x128xf32>
      %669 = arith.mulf %599, %662 : vector<8x128xf32>
      %670 = arith.subf %535, %669 : vector<8x128xf32>
      %671 = arith.mulf %599, %663 : vector<8x128xf32>
      %672 = arith.subf %551, %671 : vector<8x128xf32>
      %673 = arith.mulf %599, %664 : vector<8x128xf32>
      %674 = arith.subf %567, %673 : vector<8x128xf32>
      %675 = arith.mulf %599, %665 : vector<8x128xf32>
      %676 = arith.subf %583, %675 : vector<8x128xf32>
      %677 = arith.mulf %599, %666 : vector<8x128xf32>
      %678 = arith.subf %655, %677 : vector<8x128xf32>
      %679 = tpu.reciprocal %668 {approx = true} : vector<8x128xf32> -> vector<8x128xf32>
      %680 = arith.mulf %668, %679 : vector<8x128xf32>
      %cst_248 = arith.constant 2.000000e+00 : f32
      %681 = vector.broadcast %cst_248 : f32 to vector<8x128xf32>
      %682 = arith.subf %681, %680 : vector<8x128xf32>
      %683 = arith.mulf %679, %682 : vector<8x128xf32>
      %684 = arith.mulf %670, %683 : vector<8x128xf32>
      %685 = arith.mulf %672, %683 : vector<8x128xf32>
      %686 = arith.mulf %674, %683 : vector<8x128xf32>
      %687 = arith.mulf %676, %683 : vector<8x128xf32>
      %688 = arith.mulf %678, %683 : vector<8x128xf32>
      %689 = arith.mulf %661, %684 : vector<8x128xf32>
      %690 = arith.subf %662, %689 : vector<8x128xf32>
      %691 = arith.mulf %661, %685 : vector<8x128xf32>
      %692 = arith.subf %663, %691 : vector<8x128xf32>
      %693 = arith.mulf %661, %686 : vector<8x128xf32>
      %694 = arith.subf %664, %693 : vector<8x128xf32>
      %695 = arith.mulf %661, %687 : vector<8x128xf32>
      %696 = arith.subf %665, %695 : vector<8x128xf32>
      %697 = arith.mulf %661, %688 : vector<8x128xf32>
      %698 = arith.subf %666, %697 : vector<8x128xf32>
      %cst_249 = arith.constant 0.000000e+00 : f32
      %699 = vector.broadcast %cst_249 : f32 to vector<8x128xf32>
      %700 = arith.subf %699, %690 : vector<8x128xf32>
      %cst_250 = arith.constant 0.000000e+00 : f32
      %701 = vector.broadcast %cst_250 : f32 to vector<8x128xf32>
      %702 = arith.subf %701, %692 : vector<8x128xf32>
      %cst_251 = arith.constant 0.000000e+00 : f32
      %703 = vector.broadcast %cst_251 : f32 to vector<8x128xf32>
      %704 = arith.subf %703, %694 : vector<8x128xf32>
      %cst_252 = arith.constant 0.000000e+00 : f32
      %705 = vector.broadcast %cst_252 : f32 to vector<8x128xf32>
      %706 = arith.subf %705, %696 : vector<8x128xf32>
      %cst_253 = arith.constant 0.000000e+00 : f32
      %707 = vector.broadcast %cst_253 : f32 to vector<8x128xf32>
      %708 = arith.subf %707, %684 : vector<8x128xf32>
      %cst_254 = arith.constant 0.000000e+00 : f32
      %709 = vector.broadcast %cst_254 : f32 to vector<8x128xf32>
      %710 = arith.subf %709, %685 : vector<8x128xf32>
      %cst_255 = arith.constant 0.000000e+00 : f32
      %711 = vector.broadcast %cst_255 : f32 to vector<8x128xf32>
      %712 = arith.subf %711, %686 : vector<8x128xf32>
      %cst_256 = arith.constant 0.000000e+00 : f32
      %713 = vector.broadcast %cst_256 : f32 to vector<8x128xf32>
      %714 = arith.subf %713, %687 : vector<8x128xf32>
      %cst_257 = arith.constant 0.000000e+00 : f32
      %715 = vector.broadcast %cst_257 : f32 to vector<8x128xf32>
      %716 = arith.subf %715, %698 : vector<8x128xf32>
      %cst_258 = arith.constant 0.000000e+00 : f32
      %717 = vector.broadcast %cst_258 : f32 to vector<8x128xf32>
      %718 = arith.subf %717, %688 : vector<8x128xf32>
      %719 = arith.index_cast %28 : i32 to index
      %c0_259 = arith.constant 0 : index
      %c0_260 = arith.constant 0 : index
      %c0_261 = arith.constant 0 : index
      %c0_262 = arith.constant 0 : index
      %720 = vector.load %arg12[%719, %c0_259, %c0_260, %c0_261, %c0_262] : memref<8x2x5x8x128xf32, #tpu.memory_space<vmem>>, vector<1x1x1x8x128xf32>
      %721 = vector.shape_cast %720 : vector<1x1x1x8x128xf32> to vector<8x128xf32>
      %722 = vector.shape_cast %700 : vector<8x128xf32> to vector<1x1x1x8x128xf32>
      tpu.vector_store %arg12[%719, %c0_259, %c0_260, %c0_261, %c0_262], %722 {strides = array<i32>} : memref<8x2x5x8x128xf32, #tpu.memory_space<vmem>>, vector<1x1x1x8x128xf32>,
      %723 = arith.index_cast %28 : i32 to index
      %c0_263 = arith.constant 0 : index
      %c1_264 = arith.constant 1 : index
      %c0_265 = arith.constant 0 : index
      %c0_266 = arith.constant 0 : index
      %724 = vector.load %arg12[%723, %c0_263, %c1_264, %c0_265, %c0_266] : memref<8x2x5x8x128xf32, #tpu.memory_space<vmem>>, vector<1x1x1x8x128xf32>
      %725 = vector.shape_cast %724 : vector<1x1x1x8x128xf32> to vector<8x128xf32>
      %726 = vector.shape_cast %702 : vector<8x128xf32> to vector<1x1x1x8x128xf32>
      tpu.vector_store %arg12[%723, %c0_263, %c1_264, %c0_265, %c0_266], %726 {strides = array<i32>} : memref<8x2x5x8x128xf32, #tpu.memory_space<vmem>>, vector<1x1x1x8x128xf32>,
      %727 = arith.index_cast %28 : i32 to index
      %c0_267 = arith.constant 0 : index
      %c2_268 = arith.constant 2 : index
      %c0_269 = arith.constant 0 : index
      %c0_270 = arith.constant 0 : index
      %728 = vector.load %arg12[%727, %c0_267, %c2_268, %c0_269, %c0_270] : memref<8x2x5x8x128xf32, #tpu.memory_space<vmem>>, vector<1x1x1x8x128xf32>
      %729 = vector.shape_cast %728 : vector<1x1x1x8x128xf32> to vector<8x128xf32>
      %730 = vector.shape_cast %704 : vector<8x128xf32> to vector<1x1x1x8x128xf32>
      tpu.vector_store %arg12[%727, %c0_267, %c2_268, %c0_269, %c0_270], %730 {strides = array<i32>} : memref<8x2x5x8x128xf32, #tpu.memory_space<vmem>>, vector<1x1x1x8x128xf32>,
      %731 = arith.index_cast %28 : i32 to index
      %c0_271 = arith.constant 0 : index
      %c3_272 = arith.constant 3 : index
      %c0_273 = arith.constant 0 : index
      %c0_274 = arith.constant 0 : index
      %732 = vector.load %arg12[%731, %c0_271, %c3_272, %c0_273, %c0_274] : memref<8x2x5x8x128xf32, #tpu.memory_space<vmem>>, vector<1x1x1x8x128xf32>
      %733 = vector.shape_cast %732 : vector<1x1x1x8x128xf32> to vector<8x128xf32>
      %734 = vector.shape_cast %706 : vector<8x128xf32> to vector<1x1x1x8x128xf32>
      tpu.vector_store %arg12[%731, %c0_271, %c3_272, %c0_273, %c0_274], %734 {strides = array<i32>} : memref<8x2x5x8x128xf32, #tpu.memory_space<vmem>>, vector<1x1x1x8x128xf32>,
      %735 = arith.index_cast %28 : i32 to index
      %c0_275 = arith.constant 0 : index
      %c4_276 = arith.constant 4 : index
      %c0_277 = arith.constant 0 : index
      %c0_278 = arith.constant 0 : index
      %736 = vector.load %arg12[%735, %c0_275, %c4_276, %c0_277, %c0_278] : memref<8x2x5x8x128xf32, #tpu.memory_space<vmem>>, vector<1x1x1x8x128xf32>
      %737 = vector.shape_cast %736 : vector<1x1x1x8x128xf32> to vector<8x128xf32>
      %738 = vector.shape_cast %716 : vector<8x128xf32> to vector<1x1x1x8x128xf32>
      tpu.vector_store %arg12[%735, %c0_275, %c4_276, %c0_277, %c0_278], %738 {strides = array<i32>} : memref<8x2x5x8x128xf32, #tpu.memory_space<vmem>>, vector<1x1x1x8x128xf32>,
      %739 = arith.index_cast %28 : i32 to index
      %c1_279 = arith.constant 1 : index
      %c0_280 = arith.constant 0 : index
      %c0_281 = arith.constant 0 : index
      %c0_282 = arith.constant 0 : index
      %740 = vector.load %arg12[%739, %c1_279, %c0_280, %c0_281, %c0_282] : memref<8x2x5x8x128xf32, #tpu.memory_space<vmem>>, vector<1x1x1x8x128xf32>
      %741 = vector.shape_cast %740 : vector<1x1x1x8x128xf32> to vector<8x128xf32>
      %742 = vector.shape_cast %708 : vector<8x128xf32> to vector<1x1x1x8x128xf32>
      tpu.vector_store %arg12[%739, %c1_279, %c0_280, %c0_281, %c0_282], %742 {strides = array<i32>} : memref<8x2x5x8x128xf32, #tpu.memory_space<vmem>>, vector<1x1x1x8x128xf32>,
      %743 = arith.index_cast %28 : i32 to index
      %c1_283 = arith.constant 1 : index
      %c1_284 = arith.constant 1 : index
      %c0_285 = arith.constant 0 : index
      %c0_286 = arith.constant 0 : index
      %744 = vector.load %arg12[%743, %c1_283, %c1_284, %c0_285, %c0_286] : memref<8x2x5x8x128xf32, #tpu.memory_space<vmem>>, vector<1x1x1x8x128xf32>
      %745 = vector.shape_cast %744 : vector<1x1x1x8x128xf32> to vector<8x128xf32>
      %746 = vector.shape_cast %710 : vector<8x128xf32> to vector<1x1x1x8x128xf32>
      tpu.vector_store %arg12[%743, %c1_283, %c1_284, %c0_285, %c0_286], %746 {strides = array<i32>} : memref<8x2x5x8x128xf32, #tpu.memory_space<vmem>>, vector<1x1x1x8x128xf32>,
      %747 = arith.index_cast %28 : i32 to index
      %c1_287 = arith.constant 1 : index
      %c2_288 = arith.constant 2 : index
      %c0_289 = arith.constant 0 : index
      %c0_290 = arith.constant 0 : index
      %748 = vector.load %arg12[%747, %c1_287, %c2_288, %c0_289, %c0_290] : memref<8x2x5x8x128xf32, #tpu.memory_space<vmem>>, vector<1x1x1x8x128xf32>
      %749 = vector.shape_cast %748 : vector<1x1x1x8x128xf32> to vector<8x128xf32>
      %750 = vector.shape_cast %712 : vector<8x128xf32> to vector<1x1x1x8x128xf32>
      tpu.vector_store %arg12[%747, %c1_287, %c2_288, %c0_289, %c0_290], %750 {strides = array<i32>} : memref<8x2x5x8x128xf32, #tpu.memory_space<vmem>>, vector<1x1x1x8x128xf32>,
      %751 = arith.index_cast %28 : i32 to index
      %c1_291 = arith.constant 1 : index
      %c3_292 = arith.constant 3 : index
      %c0_293 = arith.constant 0 : index
      %c0_294 = arith.constant 0 : index
      %752 = vector.load %arg12[%751, %c1_291, %c3_292, %c0_293, %c0_294] : memref<8x2x5x8x128xf32, #tpu.memory_space<vmem>>, vector<1x1x1x8x128xf32>
      %753 = vector.shape_cast %752 : vector<1x1x1x8x128xf32> to vector<8x128xf32>
      %754 = vector.shape_cast %714 : vector<8x128xf32> to vector<1x1x1x8x128xf32>
      tpu.vector_store %arg12[%751, %c1_291, %c3_292, %c0_293, %c0_294], %754 {strides = array<i32>} : memref<8x2x5x8x128xf32, #tpu.memory_space<vmem>>, vector<1x1x1x8x128xf32>,
      %755 = arith.index_cast %28 : i32 to index
      %c1_295 = arith.constant 1 : index
      %c4_296 = arith.constant 4 : index
      %c0_297 = arith.constant 0 : index
      %c0_298 = arith.constant 0 : index
      %756 = vector.load %arg12[%755, %c1_295, %c4_296, %c0_297, %c0_298] : memref<8x2x5x8x128xf32, #tpu.memory_space<vmem>>, vector<1x1x1x8x128xf32>
      %757 = vector.shape_cast %756 : vector<1x1x1x8x128xf32> to vector<8x128xf32>
      %758 = vector.shape_cast %718 : vector<8x128xf32> to vector<1x1x1x8x128xf32>
      tpu.vector_store %arg12[%755, %c1_295, %c4_296, %c0_297, %c0_298], %758 {strides = array<i32>} : memref<8x2x5x8x128xf32, #tpu.memory_space<vmem>>, vector<1x1x1x8x128xf32>,
      %759 = arith.mulf %527, %700 : vector<8x128xf32>
      %760 = arith.mulf %535, %708 : vector<8x128xf32>
      %761 = arith.addf %759, %760 : vector<8x128xf32>
      %762 = arith.addf %447, %761 : vector<8x128xf32>
      %763 = arith.mulf %527, %702 : vector<8x128xf32>
      %764 = arith.mulf %535, %710 : vector<8x128xf32>
      %765 = arith.addf %763, %764 : vector<8x128xf32>
      %766 = arith.addf %455, %765 : vector<8x128xf32>
      %767 = arith.mulf %527, %704 : vector<8x128xf32>
      %768 = arith.mulf %535, %712 : vector<8x128xf32>
      %769 = arith.addf %767, %768 : vector<8x128xf32>
      %770 = arith.addf %463, %769 : vector<8x128xf32>
      %771 = arith.mulf %527, %706 : vector<8x128xf32>
      %772 = arith.mulf %535, %714 : vector<8x128xf32>
      %773 = arith.addf %771, %772 : vector<8x128xf32>
      %774 = arith.addf %471, %773 : vector<8x128xf32>
      %775 = arith.mulf %543, %702 : vector<8x128xf32>
      %776 = arith.mulf %551, %710 : vector<8x128xf32>
      %777 = arith.addf %775, %776 : vector<8x128xf32>
      %778 = arith.addf %479, %777 : vector<8x128xf32>
      %779 = arith.mulf %543, %704 : vector<8x128xf32>
      %780 = arith.mulf %551, %712 : vector<8x128xf32>
      %781 = arith.addf %779, %780 : vector<8x128xf32>
      %782 = arith.addf %487, %781 : vector<8x128xf32>
      %783 = arith.mulf %543, %706 : vector<8x128xf32>
      %784 = arith.mulf %551, %714 : vector<8x128xf32>
      %785 = arith.addf %783, %784 : vector<8x128xf32>
      %786 = arith.addf %495, %785 : vector<8x128xf32>
      %787 = arith.mulf %559, %704 : vector<8x128xf32>
      %788 = arith.mulf %567, %712 : vector<8x128xf32>
      %789 = arith.addf %787, %788 : vector<8x128xf32>
      %790 = arith.addf %503, %789 : vector<8x128xf32>
      %791 = arith.mulf %559, %706 : vector<8x128xf32>
      %792 = arith.mulf %567, %714 : vector<8x128xf32>
      %793 = arith.addf %791, %792 : vector<8x128xf32>
      %794 = arith.addf %511, %793 : vector<8x128xf32>
      %795 = arith.mulf %575, %706 : vector<8x128xf32>
      %796 = arith.mulf %583, %714 : vector<8x128xf32>
      %797 = arith.addf %795, %796 : vector<8x128xf32>
      %798 = arith.addf %519, %797 : vector<8x128xf32>
      %799 = arith.mulf %527, %716 : vector<8x128xf32>
      %800 = arith.mulf %535, %718 : vector<8x128xf32>
      %801 = arith.addf %799, %800 : vector<8x128xf32>
      %802 = arith.addf %615, %801 : vector<8x128xf32>
      %803 = arith.mulf %543, %716 : vector<8x128xf32>
      %804 = arith.mulf %551, %718 : vector<8x128xf32>
      %805 = arith.addf %803, %804 : vector<8x128xf32>
      %806 = arith.addf %623, %805 : vector<8x128xf32>
      %807 = arith.mulf %559, %716 : vector<8x128xf32>
      %808 = arith.mulf %567, %718 : vector<8x128xf32>
      %809 = arith.addf %807, %808 : vector<8x128xf32>
      %810 = arith.addf %631, %809 : vector<8x128xf32>
      %811 = arith.mulf %575, %716 : vector<8x128xf32>
      %812 = arith.mulf %583, %718 : vector<8x128xf32>
      %813 = arith.addf %811, %812 : vector<8x128xf32>
      %814 = arith.addf %639, %813 : vector<8x128xf32>
      scf.yield %762, %766, %770, %774, %778, %782, %786, %790, %794, %798, %802, %806, %810, %814 : vector<8x128xf32>, vector<8x128xf32>, vector<8x128xf32>, vector<8x128xf32>, vector<8x128xf32>, vector<8x128xf32>, vector<8x128xf32>, vector<8x128xf32>, vector<8x128xf32>, vector<8x128xf32>, vector<8x128xf32>, vector<8x128xf32>, vector<8x128xf32>, vector<8x128xf32>
    }
    %c8_i32_0 = arith.constant 8 : i32
    %c0 = arith.constant 0 : index
    %c0_1 = arith.constant 0 : index
    %c0_2 = arith.constant 0 : index
    %3 = vector.load %arg1[%c0, %c0_1, %c0_2] : memref<4x8x128xf32, #tpu.memory_space<vmem>>, vector<1x8x128xf32>
    %4 = vector.shape_cast %3 : vector<1x8x128xf32> to vector<8x128xf32>
    %c0_3 = arith.constant 0 : index
    %c0_4 = arith.constant 0 : index
    %c0_5 = arith.constant 0 : index
    %c0_6 = arith.constant 0 : index
    %5 = vector.load %arg6[%c0_3, %c0_4, %c0_5, %c0_6] : memref<8x4x8x128xf32, #tpu.memory_space<vmem>>, vector<1x1x8x128xf32>
    %6 = vector.shape_cast %5 : vector<1x1x8x128xf32> to vector<8x128xf32>
    %7 = arith.subf %4, %6 : vector<8x128xf32>
    %c1 = arith.constant 1 : index
    %c0_7 = arith.constant 0 : index
    %c0_8 = arith.constant 0 : index
    %8 = vector.load %arg1[%c1, %c0_7, %c0_8] : memref<4x8x128xf32, #tpu.memory_space<vmem>>, vector<1x8x128xf32>
    %9 = vector.shape_cast %8 : vector<1x8x128xf32> to vector<8x128xf32>
    %c0_9 = arith.constant 0 : index
    %c1_10 = arith.constant 1 : index
    %c0_11 = arith.constant 0 : index
    %c0_12 = arith.constant 0 : index
    %10 = vector.load %arg6[%c0_9, %c1_10, %c0_11, %c0_12] : memref<8x4x8x128xf32, #tpu.memory_space<vmem>>, vector<1x1x8x128xf32>
    %11 = vector.shape_cast %10 : vector<1x1x8x128xf32> to vector<8x128xf32>
    %12 = arith.subf %9, %11 : vector<8x128xf32>
    %c2 = arith.constant 2 : index
    %c0_13 = arith.constant 0 : index
    %c0_14 = arith.constant 0 : index
    %13 = vector.load %arg1[%c2, %c0_13, %c0_14] : memref<4x8x128xf32, #tpu.memory_space<vmem>>, vector<1x8x128xf32>
    %14 = vector.shape_cast %13 : vector<1x8x128xf32> to vector<8x128xf32>
    %c0_15 = arith.constant 0 : index
    %c2_16 = arith.constant 2 : index
    %c0_17 = arith.constant 0 : index
    %c0_18 = arith.constant 0 : index
    %15 = vector.load %arg6[%c0_15, %c2_16, %c0_17, %c0_18] : memref<8x4x8x128xf32, #tpu.memory_space<vmem>>, vector<1x1x8x128xf32>
    %16 = vector.shape_cast %15 : vector<1x1x8x128xf32> to vector<8x128xf32>
    %17 = arith.subf %14, %16 : vector<8x128xf32>
    %c3 = arith.constant 3 : index
    %c0_19 = arith.constant 0 : index
    %c0_20 = arith.constant 0 : index
    %18 = vector.load %arg1[%c3, %c0_19, %c0_20] : memref<4x8x128xf32, #tpu.memory_space<vmem>>, vector<1x8x128xf32>
    %19 = vector.shape_cast %18 : vector<1x8x128xf32> to vector<8x128xf32>
    %c0_21 = arith.constant 0 : index
    %c3_22 = arith.constant 3 : index
    %c0_23 = arith.constant 0 : index
    %c0_24 = arith.constant 0 : index
    %20 = vector.load %arg6[%c0_21, %c3_22, %c0_23, %c0_24] : memref<8x4x8x128xf32, #tpu.memory_space<vmem>>, vector<1x1x8x128xf32>
    %21 = vector.shape_cast %20 : vector<1x1x8x128xf32> to vector<8x128xf32>
    %22 = arith.subf %19, %21 : vector<8x128xf32>
    %c0_i32_25 = arith.constant 0 : i32
    %c8_i32_26 = arith.constant 8 : i32
    %23 = arith.addi %c0_i32_25, %c8_i32_26 : i32
    %c1_i32_27 = arith.constant 1 : i32
    %24:6 = scf.for %arg13 = %c0_i32_25 to %23 step %c1_i32_27 iter_args(%arg14 = %7, %arg15 = %12, %arg16 = %17, %arg17 = %22, %arg18 = %0, %arg19 = %0) -> (vector<8x128xf32>, vector<8x128xf32>, vector<8x128xf32>, vector<8x128xf32>, vector<8x128xf32>, vector<8x128xf32>)  : i32 {
      %28 = arith.index_cast %arg13 : i32 to index
      %c0_33 = arith.constant 0 : index
      %c0_34 = arith.constant 0 : index
      %c0_35 = arith.constant 0 : index
      %c0_36 = arith.constant 0 : index
      %29 = vector.load %arg2[%28, %c0_33, %c0_34, %c0_35, %c0_36] : memref<8x6x6x8x128xf32, #tpu.memory_space<vmem>>, vector<1x1x1x8x128xf32>
      %30 = vector.shape_cast %29 : vector<1x1x1x8x128xf32> to vector<8x128xf32>
      %31 = arith.index_cast %arg13 : i32 to index
      %c0_37 = arith.constant 0 : index
      %c1_38 = arith.constant 1 : index
      %c0_39 = arith.constant 0 : index
      %c0_40 = arith.constant 0 : index
      %32 = vector.load %arg2[%31, %c0_37, %c1_38, %c0_39, %c0_40] : memref<8x6x6x8x128xf32, #tpu.memory_space<vmem>>, vector<1x1x1x8x128xf32>
      %33 = vector.shape_cast %32 : vector<1x1x1x8x128xf32> to vector<8x128xf32>
      %34 = arith.index_cast %arg13 : i32 to index
      %c0_41 = arith.constant 0 : index
      %c2_42 = arith.constant 2 : index
      %c0_43 = arith.constant 0 : index
      %c0_44 = arith.constant 0 : index
      %35 = vector.load %arg2[%34, %c0_41, %c2_42, %c0_43, %c0_44] : memref<8x6x6x8x128xf32, #tpu.memory_space<vmem>>, vector<1x1x1x8x128xf32>
      %36 = vector.shape_cast %35 : vector<1x1x1x8x128xf32> to vector<8x128xf32>
      %37 = arith.index_cast %arg13 : i32 to index
      %c0_45 = arith.constant 0 : index
      %c3_46 = arith.constant 3 : index
      %c0_47 = arith.constant 0 : index
      %c0_48 = arith.constant 0 : index
      %38 = vector.load %arg2[%37, %c0_45, %c3_46, %c0_47, %c0_48] : memref<8x6x6x8x128xf32, #tpu.memory_space<vmem>>, vector<1x1x1x8x128xf32>
      %39 = vector.shape_cast %38 : vector<1x1x1x8x128xf32> to vector<8x128xf32>
      %40 = arith.index_cast %arg13 : i32 to index
      %c1_49 = arith.constant 1 : index
      %c1_50 = arith.constant 1 : index
      %c0_51 = arith.constant 0 : index
      %c0_52 = arith.constant 0 : index
      %41 = vector.load %arg2[%40, %c1_49, %c1_50, %c0_51, %c0_52] : memref<8x6x6x8x128xf32, #tpu.memory_space<vmem>>, vector<1x1x1x8x128xf32>
      %42 = vector.shape_cast %41 : vector<1x1x1x8x128xf32> to vector<8x128xf32>
      %43 = arith.index_cast %arg13 : i32 to index
      %c1_53 = arith.constant 1 : index
      %c2_54 = arith.constant 2 : index
      %c0_55 = arith.constant 0 : index
      %c0_56 = arith.constant 0 : index
      %44 = vector.load %arg2[%43, %c1_53, %c2_54, %c0_55, %c0_56] : memref<8x6x6x8x128xf32, #tpu.memory_space<vmem>>, vector<1x1x1x8x128xf32>
      %45 = vector.shape_cast %44 : vector<1x1x1x8x128xf32> to vector<8x128xf32>
      %46 = arith.index_cast %arg13 : i32 to index
      %c1_57 = arith.constant 1 : index
      %c3_58 = arith.constant 3 : index
      %c0_59 = arith.constant 0 : index
      %c0_60 = arith.constant 0 : index
      %47 = vector.load %arg2[%46, %c1_57, %c3_58, %c0_59, %c0_60] : memref<8x6x6x8x128xf32, #tpu.memory_space<vmem>>, vector<1x1x1x8x128xf32>
      %48 = vector.shape_cast %47 : vector<1x1x1x8x128xf32> to vector<8x128xf32>
      %49 = arith.index_cast %arg13 : i32 to index
      %c2_61 = arith.constant 2 : index
      %c2_62 = arith.constant 2 : index
      %c0_63 = arith.constant 0 : index
      %c0_64 = arith.constant 0 : index
      %50 = vector.load %arg2[%49, %c2_61, %c2_62, %c0_63, %c0_64] : memref<8x6x6x8x128xf32, #tpu.memory_space<vmem>>, vector<1x1x1x8x128xf32>
      %51 = vector.shape_cast %50 : vector<1x1x1x8x128xf32> to vector<8x128xf32>
      %52 = arith.index_cast %arg13 : i32 to index
      %c2_65 = arith.constant 2 : index
      %c3_66 = arith.constant 3 : index
      %c0_67 = arith.constant 0 : index
      %c0_68 = arith.constant 0 : index
      %53 = vector.load %arg2[%52, %c2_65, %c3_66, %c0_67, %c0_68] : memref<8x6x6x8x128xf32, #tpu.memory_space<vmem>>, vector<1x1x1x8x128xf32>
      %54 = vector.shape_cast %53 : vector<1x1x1x8x128xf32> to vector<8x128xf32>
      %55 = arith.index_cast %arg13 : i32 to index
      %c3_69 = arith.constant 3 : index
      %c3_70 = arith.constant 3 : index
      %c0_71 = arith.constant 0 : index
      %c0_72 = arith.constant 0 : index
      %56 = vector.load %arg2[%55, %c3_69, %c3_70, %c0_71, %c0_72] : memref<8x6x6x8x128xf32, #tpu.memory_space<vmem>>, vector<1x1x1x8x128xf32>
      %57 = vector.shape_cast %56 : vector<1x1x1x8x128xf32> to vector<8x128xf32>
      %58 = arith.index_cast %arg13 : i32 to index
      %c0_73 = arith.constant 0 : index
      %c4 = arith.constant 4 : index
      %c0_74 = arith.constant 0 : index
      %c0_75 = arith.constant 0 : index
      %59 = vector.load %arg2[%58, %c0_73, %c4, %c0_74, %c0_75] : memref<8x6x6x8x128xf32, #tpu.memory_space<vmem>>, vector<1x1x1x8x128xf32>
      %60 = vector.shape_cast %59 : vector<1x1x1x8x128xf32> to vector<8x128xf32>
      %61 = arith.index_cast %arg13 : i32 to index
      %c0_76 = arith.constant 0 : index
      %c5 = arith.constant 5 : index
      %c0_77 = arith.constant 0 : index
      %c0_78 = arith.constant 0 : index
      %62 = vector.load %arg2[%61, %c0_76, %c5, %c0_77, %c0_78] : memref<8x6x6x8x128xf32, #tpu.memory_space<vmem>>, vector<1x1x1x8x128xf32>
      %63 = vector.shape_cast %62 : vector<1x1x1x8x128xf32> to vector<8x128xf32>
      %64 = arith.index_cast %arg13 : i32 to index
      %c1_79 = arith.constant 1 : index
      %c4_80 = arith.constant 4 : index
      %c0_81 = arith.constant 0 : index
      %c0_82 = arith.constant 0 : index
      %65 = vector.load %arg2[%64, %c1_79, %c4_80, %c0_81, %c0_82] : memref<8x6x6x8x128xf32, #tpu.memory_space<vmem>>, vector<1x1x1x8x128xf32>
      %66 = vector.shape_cast %65 : vector<1x1x1x8x128xf32> to vector<8x128xf32>
      %67 = arith.index_cast %arg13 : i32 to index
      %c1_83 = arith.constant 1 : index
      %c5_84 = arith.constant 5 : index
      %c0_85 = arith.constant 0 : index
      %c0_86 = arith.constant 0 : index
      %68 = vector.load %arg2[%67, %c1_83, %c5_84, %c0_85, %c0_86] : memref<8x6x6x8x128xf32, #tpu.memory_space<vmem>>, vector<1x1x1x8x128xf32>
      %69 = vector.shape_cast %68 : vector<1x1x1x8x128xf32> to vector<8x128xf32>
      %70 = arith.index_cast %arg13 : i32 to index
      %c2_87 = arith.constant 2 : index
      %c4_88 = arith.constant 4 : index
      %c0_89 = arith.constant 0 : index
      %c0_90 = arith.constant 0 : index
      %71 = vector.load %arg2[%70, %c2_87, %c4_88, %c0_89, %c0_90] : memref<8x6x6x8x128xf32, #tpu.memory_space<vmem>>, vector<1x1x1x8x128xf32>
      %72 = vector.shape_cast %71 : vector<1x1x1x8x128xf32> to vector<8x128xf32>
      %73 = arith.index_cast %arg13 : i32 to index
      %c2_91 = arith.constant 2 : index
      %c5_92 = arith.constant 5 : index
      %c0_93 = arith.constant 0 : index
      %c0_94 = arith.constant 0 : index
      %74 = vector.load %arg2[%73, %c2_91, %c5_92, %c0_93, %c0_94] : memref<8x6x6x8x128xf32, #tpu.memory_space<vmem>>, vector<1x1x1x8x128xf32>
      %75 = vector.shape_cast %74 : vector<1x1x1x8x128xf32> to vector<8x128xf32>
      %76 = arith.index_cast %arg13 : i32 to index
      %c3_95 = arith.constant 3 : index
      %c4_96 = arith.constant 4 : index
      %c0_97 = arith.constant 0 : index
      %c0_98 = arith.constant 0 : index
      %77 = vector.load %arg2[%76, %c3_95, %c4_96, %c0_97, %c0_98] : memref<8x6x6x8x128xf32, #tpu.memory_space<vmem>>, vector<1x1x1x8x128xf32>
      %78 = vector.shape_cast %77 : vector<1x1x1x8x128xf32> to vector<8x128xf32>
      %79 = arith.index_cast %arg13 : i32 to index
      %c3_99 = arith.constant 3 : index
      %c5_100 = arith.constant 5 : index
      %c0_101 = arith.constant 0 : index
      %c0_102 = arith.constant 0 : index
      %80 = vector.load %arg2[%79, %c3_99, %c5_100, %c0_101, %c0_102] : memref<8x6x6x8x128xf32, #tpu.memory_space<vmem>>, vector<1x1x1x8x128xf32>
      %81 = vector.shape_cast %80 : vector<1x1x1x8x128xf32> to vector<8x128xf32>
      %82 = arith.index_cast %arg13 : i32 to index
      %c4_103 = arith.constant 4 : index
      %c4_104 = arith.constant 4 : index
      %c0_105 = arith.constant 0 : index
      %c0_106 = arith.constant 0 : index
      %83 = vector.load %arg2[%82, %c4_103, %c4_104, %c0_105, %c0_106] : memref<8x6x6x8x128xf32, #tpu.memory_space<vmem>>, vector<1x1x1x8x128xf32>
      %84 = vector.shape_cast %83 : vector<1x1x1x8x128xf32> to vector<8x128xf32>
      %85 = arith.index_cast %arg13 : i32 to index
      %c4_107 = arith.constant 4 : index
      %c5_108 = arith.constant 5 : index
      %c0_109 = arith.constant 0 : index
      %c0_110 = arith.constant 0 : index
      %86 = vector.load %arg2[%85, %c4_107, %c5_108, %c0_109, %c0_110] : memref<8x6x6x8x128xf32, #tpu.memory_space<vmem>>, vector<1x1x1x8x128xf32>
      %87 = vector.shape_cast %86 : vector<1x1x1x8x128xf32> to vector<8x128xf32>
      %88 = arith.index_cast %arg13 : i32 to index
      %c5_111 = arith.constant 5 : index
      %c5_112 = arith.constant 5 : index
      %c0_113 = arith.constant 0 : index
      %c0_114 = arith.constant 0 : index
      %89 = vector.load %arg2[%88, %c5_111, %c5_112, %c0_113, %c0_114] : memref<8x6x6x8x128xf32, #tpu.memory_space<vmem>>, vector<1x1x1x8x128xf32>
      %90 = vector.shape_cast %89 : vector<1x1x1x8x128xf32> to vector<8x128xf32>
      %91 = arith.index_cast %arg13 : i32 to index
      %c0_115 = arith.constant 0 : index
      %c0_116 = arith.constant 0 : index
      %c0_117 = arith.constant 0 : index
      %92 = vector.load %arg3[%91, %c0_115, %c0_116, %c0_117] : memref<8x6x8x128xf32, #tpu.memory_space<vmem>>, vector<1x1x8x128xf32>
      %93 = vector.shape_cast %92 : vector<1x1x8x128xf32> to vector<8x128xf32>
      %94 = arith.index_cast %arg13 : i32 to index
      %c1_118 = arith.constant 1 : index
      %c0_119 = arith.constant 0 : index
      %c0_120 = arith.constant 0 : index
      %95 = vector.load %arg3[%94, %c1_118, %c0_119, %c0_120] : memref<8x6x8x128xf32, #tpu.memory_space<vmem>>, vector<1x1x8x128xf32>
      %96 = vector.shape_cast %95 : vector<1x1x8x128xf32> to vector<8x128xf32>
      %97 = arith.index_cast %arg13 : i32 to index
      %c2_121 = arith.constant 2 : index
      %c0_122 = arith.constant 0 : index
      %c0_123 = arith.constant 0 : index
      %98 = vector.load %arg3[%97, %c2_121, %c0_122, %c0_123] : memref<8x6x8x128xf32, #tpu.memory_space<vmem>>, vector<1x1x8x128xf32>
      %99 = vector.shape_cast %98 : vector<1x1x8x128xf32> to vector<8x128xf32>
      %100 = arith.index_cast %arg13 : i32 to index
      %c3_124 = arith.constant 3 : index
      %c0_125 = arith.constant 0 : index
      %c0_126 = arith.constant 0 : index
      %101 = vector.load %arg3[%100, %c3_124, %c0_125, %c0_126] : memref<8x6x8x128xf32, #tpu.memory_space<vmem>>, vector<1x1x8x128xf32>
      %102 = vector.shape_cast %101 : vector<1x1x8x128xf32> to vector<8x128xf32>
      %103 = arith.index_cast %arg13 : i32 to index
      %c4_127 = arith.constant 4 : index
      %c0_128 = arith.constant 0 : index
      %c0_129 = arith.constant 0 : index
      %104 = vector.load %arg3[%103, %c4_127, %c0_128, %c0_129] : memref<8x6x8x128xf32, #tpu.memory_space<vmem>>, vector<1x1x8x128xf32>
      %105 = vector.shape_cast %104 : vector<1x1x8x128xf32> to vector<8x128xf32>
      %106 = arith.index_cast %arg13 : i32 to index
      %c5_130 = arith.constant 5 : index
      %c0_131 = arith.constant 0 : index
      %c0_132 = arith.constant 0 : index
      %107 = vector.load %arg3[%106, %c5_130, %c0_131, %c0_132] : memref<8x6x8x128xf32, #tpu.memory_space<vmem>>, vector<1x1x8x128xf32>
      %108 = vector.shape_cast %107 : vector<1x1x8x128xf32> to vector<8x128xf32>
      %109 = arith.index_cast %arg13 : i32 to index
      %c0_133 = arith.constant 0 : index
      %c0_134 = arith.constant 0 : index
      %c0_135 = arith.constant 0 : index
      %c0_136 = arith.constant 0 : index
      %110 = vector.load %arg4[%109, %c0_133, %c0_134, %c0_135, %c0_136] : memref<8x4x6x8x128xf32, #tpu.memory_space<vmem>>, vector<1x1x1x8x128xf32>
      %111 = vector.shape_cast %110 : vector<1x1x1x8x128xf32> to vector<8x128xf32>
      %112 = arith.index_cast %arg13 : i32 to index
      %c0_137 = arith.constant 0 : index
      %c1_138 = arith.constant 1 : index
      %c0_139 = arith.constant 0 : index
      %c0_140 = arith.constant 0 : index
      %113 = vector.load %arg4[%112, %c0_137, %c1_138, %c0_139, %c0_140] : memref<8x4x6x8x128xf32, #tpu.memory_space<vmem>>, vector<1x1x1x8x128xf32>
      %114 = vector.shape_cast %113 : vector<1x1x1x8x128xf32> to vector<8x128xf32>
      %115 = arith.index_cast %arg13 : i32 to index
      %c0_141 = arith.constant 0 : index
      %c2_142 = arith.constant 2 : index
      %c0_143 = arith.constant 0 : index
      %c0_144 = arith.constant 0 : index
      %116 = vector.load %arg4[%115, %c0_141, %c2_142, %c0_143, %c0_144] : memref<8x4x6x8x128xf32, #tpu.memory_space<vmem>>, vector<1x1x1x8x128xf32>
      %117 = vector.shape_cast %116 : vector<1x1x1x8x128xf32> to vector<8x128xf32>
      %118 = arith.index_cast %arg13 : i32 to index
      %c0_145 = arith.constant 0 : index
      %c3_146 = arith.constant 3 : index
      %c0_147 = arith.constant 0 : index
      %c0_148 = arith.constant 0 : index
      %119 = vector.load %arg4[%118, %c0_145, %c3_146, %c0_147, %c0_148] : memref<8x4x6x8x128xf32, #tpu.memory_space<vmem>>, vector<1x1x1x8x128xf32>
      %120 = vector.shape_cast %119 : vector<1x1x1x8x128xf32> to vector<8x128xf32>
      %121 = arith.index_cast %arg13 : i32 to index
      %c1_149 = arith.constant 1 : index
      %c0_150 = arith.constant 0 : index
      %c0_151 = arith.constant 0 : index
      %c0_152 = arith.constant 0 : index
      %122 = vector.load %arg4[%121, %c1_149, %c0_150, %c0_151, %c0_152] : memref<8x4x6x8x128xf32, #tpu.memory_space<vmem>>, vector<1x1x1x8x128xf32>
      %123 = vector.shape_cast %122 : vector<1x1x1x8x128xf32> to vector<8x128xf32>
      %124 = arith.index_cast %arg13 : i32 to index
      %c1_153 = arith.constant 1 : index
      %c1_154 = arith.constant 1 : index
      %c0_155 = arith.constant 0 : index
      %c0_156 = arith.constant 0 : index
      %125 = vector.load %arg4[%124, %c1_153, %c1_154, %c0_155, %c0_156] : memref<8x4x6x8x128xf32, #tpu.memory_space<vmem>>, vector<1x1x1x8x128xf32>
      %126 = vector.shape_cast %125 : vector<1x1x1x8x128xf32> to vector<8x128xf32>
      %127 = arith.index_cast %arg13 : i32 to index
      %c1_157 = arith.constant 1 : index
      %c2_158 = arith.constant 2 : index
      %c0_159 = arith.constant 0 : index
      %c0_160 = arith.constant 0 : index
      %128 = vector.load %arg4[%127, %c1_157, %c2_158, %c0_159, %c0_160] : memref<8x4x6x8x128xf32, #tpu.memory_space<vmem>>, vector<1x1x1x8x128xf32>
      %129 = vector.shape_cast %128 : vector<1x1x1x8x128xf32> to vector<8x128xf32>
      %130 = arith.index_cast %arg13 : i32 to index
      %c1_161 = arith.constant 1 : index
      %c3_162 = arith.constant 3 : index
      %c0_163 = arith.constant 0 : index
      %c0_164 = arith.constant 0 : index
      %131 = vector.load %arg4[%130, %c1_161, %c3_162, %c0_163, %c0_164] : memref<8x4x6x8x128xf32, #tpu.memory_space<vmem>>, vector<1x1x1x8x128xf32>
      %132 = vector.shape_cast %131 : vector<1x1x1x8x128xf32> to vector<8x128xf32>
      %133 = arith.index_cast %arg13 : i32 to index
      %c2_165 = arith.constant 2 : index
      %c0_166 = arith.constant 0 : index
      %c0_167 = arith.constant 0 : index
      %c0_168 = arith.constant 0 : index
      %134 = vector.load %arg4[%133, %c2_165, %c0_166, %c0_167, %c0_168] : memref<8x4x6x8x128xf32, #tpu.memory_space<vmem>>, vector<1x1x1x8x128xf32>
      %135 = vector.shape_cast %134 : vector<1x1x1x8x128xf32> to vector<8x128xf32>
      %136 = arith.index_cast %arg13 : i32 to index
      %c2_169 = arith.constant 2 : index
      %c1_170 = arith.constant 1 : index
      %c0_171 = arith.constant 0 : index
      %c0_172 = arith.constant 0 : index
      %137 = vector.load %arg4[%136, %c2_169, %c1_170, %c0_171, %c0_172] : memref<8x4x6x8x128xf32, #tpu.memory_space<vmem>>, vector<1x1x1x8x128xf32>
      %138 = vector.shape_cast %137 : vector<1x1x1x8x128xf32> to vector<8x128xf32>
      %139 = arith.index_cast %arg13 : i32 to index
      %c2_173 = arith.constant 2 : index
      %c2_174 = arith.constant 2 : index
      %c0_175 = arith.constant 0 : index
      %c0_176 = arith.constant 0 : index
      %140 = vector.load %arg4[%139, %c2_173, %c2_174, %c0_175, %c0_176] : memref<8x4x6x8x128xf32, #tpu.memory_space<vmem>>, vector<1x1x1x8x128xf32>
      %141 = vector.shape_cast %140 : vector<1x1x1x8x128xf32> to vector<8x128xf32>
      %142 = arith.index_cast %arg13 : i32 to index
      %c2_177 = arith.constant 2 : index
      %c3_178 = arith.constant 3 : index
      %c0_179 = arith.constant 0 : index
      %c0_180 = arith.constant 0 : index
      %143 = vector.load %arg4[%142, %c2_177, %c3_178, %c0_179, %c0_180] : memref<8x4x6x8x128xf32, #tpu.memory_space<vmem>>, vector<1x1x1x8x128xf32>
      %144 = vector.shape_cast %143 : vector<1x1x1x8x128xf32> to vector<8x128xf32>
      %145 = arith.index_cast %arg13 : i32 to index
      %c3_181 = arith.constant 3 : index
      %c0_182 = arith.constant 0 : index
      %c0_183 = arith.constant 0 : index
      %c0_184 = arith.constant 0 : index
      %146 = vector.load %arg4[%145, %c3_181, %c0_182, %c0_183, %c0_184] : memref<8x4x6x8x128xf32, #tpu.memory_space<vmem>>, vector<1x1x1x8x128xf32>
      %147 = vector.shape_cast %146 : vector<1x1x1x8x128xf32> to vector<8x128xf32>
      %148 = arith.index_cast %arg13 : i32 to index
      %c3_185 = arith.constant 3 : index
      %c1_186 = arith.constant 1 : index
      %c0_187 = arith.constant 0 : index
      %c0_188 = arith.constant 0 : index
      %149 = vector.load %arg4[%148, %c3_185, %c1_186, %c0_187, %c0_188] : memref<8x4x6x8x128xf32, #tpu.memory_space<vmem>>, vector<1x1x1x8x128xf32>
      %150 = vector.shape_cast %149 : vector<1x1x1x8x128xf32> to vector<8x128xf32>
      %151 = arith.index_cast %arg13 : i32 to index
      %c3_189 = arith.constant 3 : index
      %c2_190 = arith.constant 2 : index
      %c0_191 = arith.constant 0 : index
      %c0_192 = arith.constant 0 : index
      %152 = vector.load %arg4[%151, %c3_189, %c2_190, %c0_191, %c0_192] : memref<8x4x6x8x128xf32, #tpu.memory_space<vmem>>, vector<1x1x1x8x128xf32>
      %153 = vector.shape_cast %152 : vector<1x1x1x8x128xf32> to vector<8x128xf32>
      %154 = arith.index_cast %arg13 : i32 to index
      %c3_193 = arith.constant 3 : index
      %c3_194 = arith.constant 3 : index
      %c0_195 = arith.constant 0 : index
      %c0_196 = arith.constant 0 : index
      %155 = vector.load %arg4[%154, %c3_193, %c3_194, %c0_195, %c0_196] : memref<8x4x6x8x128xf32, #tpu.memory_space<vmem>>, vector<1x1x1x8x128xf32>
      %156 = vector.shape_cast %155 : vector<1x1x1x8x128xf32> to vector<8x128xf32>
      %157 = arith.index_cast %arg13 : i32 to index
      %c0_197 = arith.constant 0 : index
      %c4_198 = arith.constant 4 : index
      %c0_199 = arith.constant 0 : index
      %c0_200 = arith.constant 0 : index
      %158 = vector.load %arg4[%157, %c0_197, %c4_198, %c0_199, %c0_200] : memref<8x4x6x8x128xf32, #tpu.memory_space<vmem>>, vector<1x1x1x8x128xf32>
      %159 = vector.shape_cast %158 : vector<1x1x1x8x128xf32> to vector<8x128xf32>
      %160 = arith.index_cast %arg13 : i32 to index
      %c0_201 = arith.constant 0 : index
      %c5_202 = arith.constant 5 : index
      %c0_203 = arith.constant 0 : index
      %c0_204 = arith.constant 0 : index
      %161 = vector.load %arg4[%160, %c0_201, %c5_202, %c0_203, %c0_204] : memref<8x4x6x8x128xf32, #tpu.memory_space<vmem>>, vector<1x1x1x8x128xf32>
      %162 = vector.shape_cast %161 : vector<1x1x1x8x128xf32> to vector<8x128xf32>
      %163 = arith.index_cast %arg13 : i32 to index
      %c1_205 = arith.constant 1 : index
      %c4_206 = arith.constant 4 : index
      %c0_207 = arith.constant 0 : index
      %c0_208 = arith.constant 0 : index
      %164 = vector.load %arg4[%163, %c1_205, %c4_206, %c0_207, %c0_208] : memref<8x4x6x8x128xf32, #tpu.memory_space<vmem>>, vector<1x1x1x8x128xf32>
      %165 = vector.shape_cast %164 : vector<1x1x1x8x128xf32> to vector<8x128xf32>
      %166 = arith.index_cast %arg13 : i32 to index
      %c1_209 = arith.constant 1 : index
      %c5_210 = arith.constant 5 : index
      %c0_211 = arith.constant 0 : index
      %c0_212 = arith.constant 0 : index
      %167 = vector.load %arg4[%166, %c1_209, %c5_210, %c0_211, %c0_212] : memref<8x4x6x8x128xf32, #tpu.memory_space<vmem>>, vector<1x1x1x8x128xf32>
      %168 = vector.shape_cast %167 : vector<1x1x1x8x128xf32> to vector<8x128xf32>
      %169 = arith.index_cast %arg13 : i32 to index
      %c2_213 = arith.constant 2 : index
      %c4_214 = arith.constant 4 : index
      %c0_215 = arith.constant 0 : index
      %c0_216 = arith.constant 0 : index
      %170 = vector.load %arg4[%169, %c2_213, %c4_214, %c0_215, %c0_216] : memref<8x4x6x8x128xf32, #tpu.memory_space<vmem>>, vector<1x1x1x8x128xf32>
      %171 = vector.shape_cast %170 : vector<1x1x1x8x128xf32> to vector<8x128xf32>
      %172 = arith.index_cast %arg13 : i32 to index
      %c2_217 = arith.constant 2 : index
      %c5_218 = arith.constant 5 : index
      %c0_219 = arith.constant 0 : index
      %c0_220 = arith.constant 0 : index
      %173 = vector.load %arg4[%172, %c2_217, %c5_218, %c0_219, %c0_220] : memref<8x4x6x8x128xf32, #tpu.memory_space<vmem>>, vector<1x1x1x8x128xf32>
      %174 = vector.shape_cast %173 : vector<1x1x1x8x128xf32> to vector<8x128xf32>
      %175 = arith.index_cast %arg13 : i32 to index
      %c3_221 = arith.constant 3 : index
      %c4_222 = arith.constant 4 : index
      %c0_223 = arith.constant 0 : index
      %c0_224 = arith.constant 0 : index
      %176 = vector.load %arg4[%175, %c3_221, %c4_222, %c0_223, %c0_224] : memref<8x4x6x8x128xf32, #tpu.memory_space<vmem>>, vector<1x1x1x8x128xf32>
      %177 = vector.shape_cast %176 : vector<1x1x1x8x128xf32> to vector<8x128xf32>
      %178 = arith.index_cast %arg13 : i32 to index
      %c3_225 = arith.constant 3 : index
      %c5_226 = arith.constant 5 : index
      %c0_227 = arith.constant 0 : index
      %c0_228 = arith.constant 0 : index
      %179 = vector.load %arg4[%178, %c3_225, %c5_226, %c0_227, %c0_228] : memref<8x4x6x8x128xf32, #tpu.memory_space<vmem>>, vector<1x1x1x8x128xf32>
      %180 = vector.shape_cast %179 : vector<1x1x1x8x128xf32> to vector<8x128xf32>
      %181 = arith.index_cast %arg13 : i32 to index
      %c0_229 = arith.constant 0 : index
      %c0_230 = arith.constant 0 : index
      %c0_231 = arith.constant 0 : index
      %182 = vector.load %arg5[%181, %c0_229, %c0_230, %c0_231] : memref<8x4x8x128xf32, #tpu.memory_space<vmem>>, vector<1x1x8x128xf32>
      %183 = vector.shape_cast %182 : vector<1x1x8x128xf32> to vector<8x128xf32>
      %184 = arith.index_cast %arg13 : i32 to index
      %c1_232 = arith.constant 1 : index
      %c0_233 = arith.constant 0 : index
      %c0_234 = arith.constant 0 : index
      %185 = vector.load %arg5[%184, %c1_232, %c0_233, %c0_234] : memref<8x4x8x128xf32, #tpu.memory_space<vmem>>, vector<1x1x8x128xf32>
      %186 = vector.shape_cast %185 : vector<1x1x8x128xf32> to vector<8x128xf32>
      %187 = arith.index_cast %arg13 : i32 to index
      %c2_235 = arith.constant 2 : index
      %c0_236 = arith.constant 0 : index
      %c0_237 = arith.constant 0 : index
      %188 = vector.load %arg5[%187, %c2_235, %c0_236, %c0_237] : memref<8x4x8x128xf32, #tpu.memory_space<vmem>>, vector<1x1x8x128xf32>
      %189 = vector.shape_cast %188 : vector<1x1x8x128xf32> to vector<8x128xf32>
      %190 = arith.index_cast %arg13 : i32 to index
      %c3_238 = arith.constant 3 : index
      %c0_239 = arith.constant 0 : index
      %c0_240 = arith.constant 0 : index
      %191 = vector.load %arg5[%190, %c3_238, %c0_239, %c0_240] : memref<8x4x8x128xf32, #tpu.memory_space<vmem>>, vector<1x1x8x128xf32>
      %192 = vector.shape_cast %191 : vector<1x1x8x128xf32> to vector<8x128xf32>
      %193 = arith.index_cast %arg13 : i32 to index
      %c0_241 = arith.constant 0 : index
      %c0_242 = arith.constant 0 : index
      %c0_243 = arith.constant 0 : index
      %194 = vector.load %arg6[%193, %c0_241, %c0_242, %c0_243] : memref<8x4x8x128xf32, #tpu.memory_space<vmem>>, vector<1x1x8x128xf32>
      %195 = vector.shape_cast %194 : vector<1x1x8x128xf32> to vector<8x128xf32>
      %196 = arith.index_cast %arg13 : i32 to index
      %c1_244 = arith.constant 1 : index
      %c0_245 = arith.constant 0 : index
      %c0_246 = arith.constant 0 : index
      %197 = vector.load %arg6[%196, %c1_244, %c0_245, %c0_246] : memref<8x4x8x128xf32, #tpu.memory_space<vmem>>, vector<1x1x8x128xf32>
      %198 = vector.shape_cast %197 : vector<1x1x8x128xf32> to vector<8x128xf32>
      %199 = arith.index_cast %arg13 : i32 to index
      %c2_247 = arith.constant 2 : index
      %c0_248 = arith.constant 0 : index
      %c0_249 = arith.constant 0 : index
      %200 = vector.load %arg6[%199, %c2_247, %c0_248, %c0_249] : memref<8x4x8x128xf32, #tpu.memory_space<vmem>>, vector<1x1x8x128xf32>
      %201 = vector.shape_cast %200 : vector<1x1x8x128xf32> to vector<8x128xf32>
      %202 = arith.index_cast %arg13 : i32 to index
      %c3_250 = arith.constant 3 : index
      %c0_251 = arith.constant 0 : index
      %c0_252 = arith.constant 0 : index
      %203 = vector.load %arg6[%202, %c3_250, %c0_251, %c0_252] : memref<8x4x8x128xf32, #tpu.memory_space<vmem>>, vector<1x1x8x128xf32>
      %204 = vector.shape_cast %203 : vector<1x1x8x128xf32> to vector<8x128xf32>
      %205 = arith.index_cast %arg13 : i32 to index
      %c0_253 = arith.constant 0 : index
      %c0_254 = arith.constant 0 : index
      %c0_255 = arith.constant 0 : index
      %206 = vector.load %arg7[%205, %c0_253, %c0_254, %c0_255] : memref<8x2x8x128xf32, #tpu.memory_space<vmem>>, vector<1x1x8x128xf32>
      %207 = vector.shape_cast %206 : vector<1x1x8x128xf32> to vector<8x128xf32>
      %208 = arith.index_cast %arg13 : i32 to index
      %c1_256 = arith.constant 1 : index
      %c0_257 = arith.constant 0 : index
      %c0_258 = arith.constant 0 : index
      %209 = vector.load %arg7[%208, %c1_256, %c0_257, %c0_258] : memref<8x2x8x128xf32, #tpu.memory_space<vmem>>, vector<1x1x8x128xf32>
      %210 = vector.shape_cast %209 : vector<1x1x8x128xf32> to vector<8x128xf32>
      %211 = arith.index_cast %arg13 : i32 to index
      %c0_259 = arith.constant 0 : index
      %c0_260 = arith.constant 0 : index
      %c0_261 = arith.constant 0 : index
      %c0_262 = arith.constant 0 : index
      %212 = vector.load %arg12[%211, %c0_259, %c0_260, %c0_261, %c0_262] : memref<8x2x5x8x128xf32, #tpu.memory_space<vmem>>, vector<1x1x1x8x128xf32>
      %213 = vector.shape_cast %212 : vector<1x1x1x8x128xf32> to vector<8x128xf32>
      %214 = arith.index_cast %arg13 : i32 to index
      %c0_263 = arith.constant 0 : index
      %c1_264 = arith.constant 1 : index
      %c0_265 = arith.constant 0 : index
      %c0_266 = arith.constant 0 : index
      %215 = vector.load %arg12[%214, %c0_263, %c1_264, %c0_265, %c0_266] : memref<8x2x5x8x128xf32, #tpu.memory_space<vmem>>, vector<1x1x1x8x128xf32>
      %216 = vector.shape_cast %215 : vector<1x1x1x8x128xf32> to vector<8x128xf32>
      %217 = arith.index_cast %arg13 : i32 to index
      %c0_267 = arith.constant 0 : index
      %c2_268 = arith.constant 2 : index
      %c0_269 = arith.constant 0 : index
      %c0_270 = arith.constant 0 : index
      %218 = vector.load %arg12[%217, %c0_267, %c2_268, %c0_269, %c0_270] : memref<8x2x5x8x128xf32, #tpu.memory_space<vmem>>, vector<1x1x1x8x128xf32>
      %219 = vector.shape_cast %218 : vector<1x1x1x8x128xf32> to vector<8x128xf32>
      %220 = arith.index_cast %arg13 : i32 to index
      %c0_271 = arith.constant 0 : index
      %c3_272 = arith.constant 3 : index
      %c0_273 = arith.constant 0 : index
      %c0_274 = arith.constant 0 : index
      %221 = vector.load %arg12[%220, %c0_271, %c3_272, %c0_273, %c0_274] : memref<8x2x5x8x128xf32, #tpu.memory_space<vmem>>, vector<1x1x1x8x128xf32>
      %222 = vector.shape_cast %221 : vector<1x1x1x8x128xf32> to vector<8x128xf32>
      %223 = arith.index_cast %arg13 : i32 to index
      %c1_275 = arith.constant 1 : index
      %c0_276 = arith.constant 0 : index
      %c0_277 = arith.constant 0 : index
      %c0_278 = arith.constant 0 : index
      %224 = vector.load %arg12[%223, %c1_275, %c0_276, %c0_277, %c0_278] : memref<8x2x5x8x128xf32, #tpu.memory_space<vmem>>, vector<1x1x1x8x128xf32>
      %225 = vector.shape_cast %224 : vector<1x1x1x8x128xf32> to vector<8x128xf32>
      %226 = arith.index_cast %arg13 : i32 to index
      %c1_279 = arith.constant 1 : index
      %c1_280 = arith.constant 1 : index
      %c0_281 = arith.constant 0 : index
      %c0_282 = arith.constant 0 : index
      %227 = vector.load %arg12[%226, %c1_279, %c1_280, %c0_281, %c0_282] : memref<8x2x5x8x128xf32, #tpu.memory_space<vmem>>, vector<1x1x1x8x128xf32>
      %228 = vector.shape_cast %227 : vector<1x1x1x8x128xf32> to vector<8x128xf32>
      %229 = arith.index_cast %arg13 : i32 to index
      %c1_283 = arith.constant 1 : index
      %c2_284 = arith.constant 2 : index
      %c0_285 = arith.constant 0 : index
      %c0_286 = arith.constant 0 : index
      %230 = vector.load %arg12[%229, %c1_283, %c2_284, %c0_285, %c0_286] : memref<8x2x5x8x128xf32, #tpu.memory_space<vmem>>, vector<1x1x1x8x128xf32>
      %231 = vector.shape_cast %230 : vector<1x1x1x8x128xf32> to vector<8x128xf32>
      %232 = arith.index_cast %arg13 : i32 to index
      %c1_287 = arith.constant 1 : index
      %c3_288 = arith.constant 3 : index
      %c0_289 = arith.constant 0 : index
      %c0_290 = arith.constant 0 : index
      %233 = vector.load %arg12[%232, %c1_287, %c3_288, %c0_289, %c0_290] : memref<8x2x5x8x128xf32, #tpu.memory_space<vmem>>, vector<1x1x1x8x128xf32>
      %234 = vector.shape_cast %233 : vector<1x1x1x8x128xf32> to vector<8x128xf32>
      %235 = arith.index_cast %arg13 : i32 to index
      %c0_291 = arith.constant 0 : index
      %c4_292 = arith.constant 4 : index
      %c0_293 = arith.constant 0 : index
      %c0_294 = arith.constant 0 : index
      %236 = vector.load %arg12[%235, %c0_291, %c4_292, %c0_293, %c0_294] : memref<8x2x5x8x128xf32, #tpu.memory_space<vmem>>, vector<1x1x1x8x128xf32>
      %237 = vector.shape_cast %236 : vector<1x1x1x8x128xf32> to vector<8x128xf32>
      %238 = arith.index_cast %arg13 : i32 to index
      %c1_295 = arith.constant 1 : index
      %c4_296 = arith.constant 4 : index
      %c0_297 = arith.constant 0 : index
      %c0_298 = arith.constant 0 : index
      %239 = vector.load %arg12[%238, %c1_295, %c4_296, %c0_297, %c0_298] : memref<8x2x5x8x128xf32, #tpu.memory_space<vmem>>, vector<1x1x1x8x128xf32>
      %240 = vector.shape_cast %239 : vector<1x1x1x8x128xf32> to vector<8x128xf32>
      %241 = arith.mulf %213, %arg14 : vector<8x128xf32>
      %242 = arith.mulf %216, %arg15 : vector<8x128xf32>
      %243 = arith.addf %241, %242 : vector<8x128xf32>
      %244 = arith.mulf %219, %arg16 : vector<8x128xf32>
      %245 = arith.addf %243, %244 : vector<8x128xf32>
      %246 = arith.mulf %222, %arg17 : vector<8x128xf32>
      %247 = arith.addf %245, %246 : vector<8x128xf32>
      %248 = arith.addf %247, %237 : vector<8x128xf32>
      %249 = arith.mulf %225, %arg14 : vector<8x128xf32>
      %250 = arith.mulf %228, %arg15 : vector<8x128xf32>
      %251 = arith.addf %249, %250 : vector<8x128xf32>
      %252 = arith.mulf %231, %arg16 : vector<8x128xf32>
      %253 = arith.addf %251, %252 : vector<8x128xf32>
      %254 = arith.mulf %234, %arg17 : vector<8x128xf32>
      %255 = arith.addf %253, %254 : vector<8x128xf32>
      %256 = arith.addf %255, %240 : vector<8x128xf32>
      %257 = arith.addf %207, %248 : vector<8x128xf32>
      %258 = arith.addf %210, %256 : vector<8x128xf32>
      %259 = arith.addf %195, %arg14 : vector<8x128xf32>
      %260 = arith.addf %198, %arg15 : vector<8x128xf32>
      %261 = arith.addf %201, %arg16 : vector<8x128xf32>
      %262 = arith.addf %204, %arg17 : vector<8x128xf32>
      %263 = arith.index_cast %arg13 : i32 to index
      %c0_299 = arith.constant 0 : index
      %c0_300 = arith.constant 0 : index
      %c0_301 = arith.constant 0 : index
      %264 = vector.load %arg8[%263, %c0_299, %c0_300, %c0_301] : memref<8x4x8x128xf32, #tpu.memory_space<vmem>>, vector<1x1x8x128xf32>
      %265 = vector.shape_cast %264 : vector<1x1x8x128xf32> to vector<8x128xf32>
      %266 = vector.shape_cast %259 : vector<8x128xf32> to vector<1x1x8x128xf32>
      tpu.vector_store %arg8[%263, %c0_299, %c0_300, %c0_301], %266 {strides = array<i32>} : memref<8x4x8x128xf32, #tpu.memory_space<vmem>>, vector<1x1x8x128xf32>,
      %267 = arith.index_cast %arg13 : i32 to index
      %c1_302 = arith.constant 1 : index
      %c0_303 = arith.constant 0 : index
      %c0_304 = arith.constant 0 : index
      %268 = vector.load %arg8[%267, %c1_302, %c0_303, %c0_304] : memref<8x4x8x128xf32, #tpu.memory_space<vmem>>, vector<1x1x8x128xf32>
      %269 = vector.shape_cast %268 : vector<1x1x8x128xf32> to vector<8x128xf32>
      %270 = vector.shape_cast %260 : vector<8x128xf32> to vector<1x1x8x128xf32>
      tpu.vector_store %arg8[%267, %c1_302, %c0_303, %c0_304], %270 {strides = array<i32>} : memref<8x4x8x128xf32, #tpu.memory_space<vmem>>, vector<1x1x8x128xf32>,
      %271 = arith.index_cast %arg13 : i32 to index
      %c2_305 = arith.constant 2 : index
      %c0_306 = arith.constant 0 : index
      %c0_307 = arith.constant 0 : index
      %272 = vector.load %arg8[%271, %c2_305, %c0_306, %c0_307] : memref<8x4x8x128xf32, #tpu.memory_space<vmem>>, vector<1x1x8x128xf32>
      %273 = vector.shape_cast %272 : vector<1x1x8x128xf32> to vector<8x128xf32>
      %274 = vector.shape_cast %261 : vector<8x128xf32> to vector<1x1x8x128xf32>
      tpu.vector_store %arg8[%271, %c2_305, %c0_306, %c0_307], %274 {strides = array<i32>} : memref<8x4x8x128xf32, #tpu.memory_space<vmem>>, vector<1x1x8x128xf32>,
      %275 = arith.index_cast %arg13 : i32 to index
      %c3_308 = arith.constant 3 : index
      %c0_309 = arith.constant 0 : index
      %c0_310 = arith.constant 0 : index
      %276 = vector.load %arg8[%275, %c3_308, %c0_309, %c0_310] : memref<8x4x8x128xf32, #tpu.memory_space<vmem>>, vector<1x1x8x128xf32>
      %277 = vector.shape_cast %276 : vector<1x1x8x128xf32> to vector<8x128xf32>
      %278 = vector.shape_cast %262 : vector<8x128xf32> to vector<1x1x8x128xf32>
      tpu.vector_store %arg8[%275, %c3_308, %c0_309, %c0_310], %278 {strides = array<i32>} : memref<8x4x8x128xf32, #tpu.memory_space<vmem>>, vector<1x1x8x128xf32>,
      %279 = arith.index_cast %arg13 : i32 to index
      %c0_311 = arith.constant 0 : index
      %c0_312 = arith.constant 0 : index
      %c0_313 = arith.constant 0 : index
      %280 = vector.load %arg9[%279, %c0_311, %c0_312, %c0_313] : memref<8x2x8x128xf32, #tpu.memory_space<vmem>>, vector<1x1x8x128xf32>
      %281 = vector.shape_cast %280 : vector<1x1x8x128xf32> to vector<8x128xf32>
      %282 = vector.shape_cast %257 : vector<8x128xf32> to vector<1x1x8x128xf32>
      tpu.vector_store %arg9[%279, %c0_311, %c0_312, %c0_313], %282 {strides = array<i32>} : memref<8x2x8x128xf32, #tpu.memory_space<vmem>>, vector<1x1x8x128xf32>,
      %283 = arith.index_cast %arg13 : i32 to index
      %c1_314 = arith.constant 1 : index
      %c0_315 = arith.constant 0 : index
      %c0_316 = arith.constant 0 : index
      %284 = vector.load %arg9[%283, %c1_314, %c0_315, %c0_316] : memref<8x2x8x128xf32, #tpu.memory_space<vmem>>, vector<1x1x8x128xf32>
      %285 = vector.shape_cast %284 : vector<1x1x8x128xf32> to vector<8x128xf32>
      %286 = vector.shape_cast %258 : vector<8x128xf32> to vector<1x1x8x128xf32>
      tpu.vector_store %arg9[%283, %c1_314, %c0_315, %c0_316], %286 {strides = array<i32>} : memref<8x2x8x128xf32, #tpu.memory_space<vmem>>, vector<1x1x8x128xf32>,
      %287 = arith.mulf %30, %259 : vector<8x128xf32>
      %288 = arith.mulf %33, %260 : vector<8x128xf32>
      %289 = arith.addf %287, %288 : vector<8x128xf32>
      %290 = arith.mulf %36, %261 : vector<8x128xf32>
      %291 = arith.addf %289, %290 : vector<8x128xf32>
      %292 = arith.mulf %39, %262 : vector<8x128xf32>
      %293 = arith.addf %291, %292 : vector<8x128xf32>
      %294 = arith.mulf %60, %257 : vector<8x128xf32>
      %295 = arith.mulf %63, %258 : vector<8x128xf32>
      %296 = arith.addf %294, %295 : vector<8x128xf32>
      %297 = arith.addf %293, %296 : vector<8x128xf32>
      %298 = arith.mulf %33, %259 : vector<8x128xf32>
      %299 = arith.mulf %42, %260 : vector<8x128xf32>
      %300 = arith.addf %298, %299 : vector<8x128xf32>
      %301 = arith.mulf %45, %261 : vector<8x128xf32>
      %302 = arith.addf %300, %301 : vector<8x128xf32>
      %303 = arith.mulf %48, %262 : vector<8x128xf32>
      %304 = arith.addf %302, %303 : vector<8x128xf32>
      %305 = arith.mulf %66, %257 : vector<8x128xf32>
      %306 = arith.mulf %69, %258 : vector<8x128xf32>
      %307 = arith.addf %305, %306 : vector<8x128xf32>
      %308 = arith.addf %304, %307 : vector<8x128xf32>
      %309 = arith.mulf %36, %259 : vector<8x128xf32>
      %310 = arith.mulf %45, %260 : vector<8x128xf32>
      %311 = arith.addf %309, %310 : vector<8x128xf32>
      %312 = arith.mulf %51, %261 : vector<8x128xf32>
      %313 = arith.addf %311, %312 : vector<8x128xf32>
      %314 = arith.mulf %54, %262 : vector<8x128xf32>
      %315 = arith.addf %313, %314 : vector<8x128xf32>
      %316 = arith.mulf %72, %257 : vector<8x128xf32>
      %317 = arith.mulf %75, %258 : vector<8x128xf32>
      %318 = arith.addf %316, %317 : vector<8x128xf32>
      %319 = arith.addf %315, %318 : vector<8x128xf32>
      %320 = arith.mulf %39, %259 : vector<8x128xf32>
      %321 = arith.mulf %48, %260 : vector<8x128xf32>
      %322 = arith.addf %320, %321 : vector<8x128xf32>
      %323 = arith.mulf %54, %261 : vector<8x128xf32>
      %324 = arith.addf %322, %323 : vector<8x128xf32>
      %325 = arith.mulf %57, %262 : vector<8x128xf32>
      %326 = arith.addf %324, %325 : vector<8x128xf32>
      %327 = arith.mulf %78, %257 : vector<8x128xf32>
      %328 = arith.mulf %81, %258 : vector<8x128xf32>
      %329 = arith.addf %327, %328 : vector<8x128xf32>
      %330 = arith.addf %326, %329 : vector<8x128xf32>
      %331 = arith.mulf %60, %259 : vector<8x128xf32>
      %332 = arith.mulf %66, %260 : vector<8x128xf32>
      %333 = arith.addf %331, %332 : vector<8x128xf32>
      %334 = arith.mulf %72, %261 : vector<8x128xf32>
      %335 = arith.addf %333, %334 : vector<8x128xf32>
      %336 = arith.mulf %78, %262 : vector<8x128xf32>
      %337 = arith.addf %335, %336 : vector<8x128xf32>
      %338 = arith.mulf %84, %257 : vector<8x128xf32>
      %339 = arith.mulf %87, %258 : vector<8x128xf32>
      %340 = arith.addf %338, %339 : vector<8x128xf32>
      %341 = arith.addf %337, %340 : vector<8x128xf32>
      %342 = arith.mulf %63, %259 : vector<8x128xf32>
      %343 = arith.mulf %69, %260 : vector<8x128xf32>
      %344 = arith.addf %342, %343 : vector<8x128xf32>
      %345 = arith.mulf %75, %261 : vector<8x128xf32>
      %346 = arith.addf %344, %345 : vector<8x128xf32>
      %347 = arith.mulf %81, %262 : vector<8x128xf32>
      %348 = arith.addf %346, %347 : vector<8x128xf32>
      %349 = arith.mulf %87, %257 : vector<8x128xf32>
      %350 = arith.mulf %90, %258 : vector<8x128xf32>
      %351 = arith.addf %349, %350 : vector<8x128xf32>
      %352 = arith.addf %348, %351 : vector<8x128xf32>
      %353 = arith.mulf %259, %297 : vector<8x128xf32>
      %354 = arith.mulf %260, %308 : vector<8x128xf32>
      %355 = arith.addf %353, %354 : vector<8x128xf32>
      %356 = arith.mulf %261, %319 : vector<8x128xf32>
      %357 = arith.addf %355, %356 : vector<8x128xf32>
      %358 = arith.mulf %262, %330 : vector<8x128xf32>
      %359 = arith.addf %357, %358 : vector<8x128xf32>
      %360 = arith.mulf %257, %341 : vector<8x128xf32>
      %361 = arith.mulf %258, %352 : vector<8x128xf32>
      %362 = arith.addf %360, %361 : vector<8x128xf32>
      %363 = arith.addf %359, %362 : vector<8x128xf32>
      %364 = arith.mulf %93, %259 : vector<8x128xf32>
      %365 = arith.mulf %96, %260 : vector<8x128xf32>
      %366 = arith.addf %364, %365 : vector<8x128xf32>
      %367 = arith.mulf %99, %261 : vector<8x128xf32>
      %368 = arith.addf %366, %367 : vector<8x128xf32>
      %369 = arith.mulf %102, %262 : vector<8x128xf32>
      %370 = arith.addf %368, %369 : vector<8x128xf32>
      %371 = arith.mulf %105, %257 : vector<8x128xf32>
      %372 = arith.mulf %108, %258 : vector<8x128xf32>
      %373 = arith.addf %371, %372 : vector<8x128xf32>
      %374 = arith.addf %370, %373 : vector<8x128xf32>
      %cst_317 = arith.constant 5.000000e-01 : f32
      %375 = vector.broadcast %cst_317 : f32 to vector<8x128xf32>
      %376 = arith.mulf %375, %363 : vector<8x128xf32>
      %377 = arith.addf %arg18, %376 : vector<8x128xf32>
      %378 = arith.addf %377, %374 : vector<8x128xf32>
      %379 = arith.mulf %248, %248 : vector<8x128xf32>
      %380 = arith.mulf %256, %256 : vector<8x128xf32>
      %381 = arith.addf %379, %380 : vector<8x128xf32>
      %382 = arith.addf %arg19, %381 : vector<8x128xf32>
      %c1_i32_318 = arith.constant 1 : i32
      %383 = arith.addi %arg13, %c1_i32_318 : i32
      %c7_i32 = arith.constant 7 : i32
      %384 = arith.minsi %383, %c7_i32 : i32
      %385 = arith.mulf %111, %259 : vector<8x128xf32>
      %386 = arith.mulf %114, %260 : vector<8x128xf32>
      %387 = arith.addf %385, %386 : vector<8x128xf32>
      %388 = arith.mulf %117, %261 : vector<8x128xf32>
      %389 = arith.addf %387, %388 : vector<8x128xf32>
      %390 = arith.mulf %120, %262 : vector<8x128xf32>
      %391 = arith.addf %389, %390 : vector<8x128xf32>
      %392 = arith.mulf %159, %257 : vector<8x128xf32>
      %393 = arith.mulf %162, %258 : vector<8x128xf32>
      %394 = arith.addf %392, %393 : vector<8x128xf32>
      %395 = arith.addf %391, %394 : vector<8x128xf32>
      %396 = arith.addf %395, %183 : vector<8x128xf32>
      %397 = arith.mulf %123, %259 : vector<8x128xf32>
      %398 = arith.mulf %126, %260 : vector<8x128xf32>
      %399 = arith.addf %397, %398 : vector<8x128xf32>
      %400 = arith.mulf %129, %261 : vector<8x128xf32>
      %401 = arith.addf %399, %400 : vector<8x128xf32>
      %402 = arith.mulf %132, %262 : vector<8x128xf32>
      %403 = arith.addf %401, %402 : vector<8x128xf32>
      %404 = arith.mulf %165, %257 : vector<8x128xf32>
      %405 = arith.mulf %168, %258 : vector<8x128xf32>
      %406 = arith.addf %404, %405 : vector<8x128xf32>
      %407 = arith.addf %403, %406 : vector<8x128xf32>
      %408 = arith.addf %407, %186 : vector<8x128xf32>
      %409 = arith.mulf %135, %259 : vector<8x128xf32>
      %410 = arith.mulf %138, %260 : vector<8x128xf32>
      %411 = arith.addf %409, %410 : vector<8x128xf32>
      %412 = arith.mulf %141, %261 : vector<8x128xf32>
      %413 = arith.addf %411, %412 : vector<8x128xf32>
      %414 = arith.mulf %144, %262 : vector<8x128xf32>
      %415 = arith.addf %413, %414 : vector<8x128xf32>
      %416 = arith.mulf %171, %257 : vector<8x128xf32>
      %417 = arith.mulf %174, %258 : vector<8x128xf32>
      %418 = arith.addf %416, %417 : vector<8x128xf32>
      %419 = arith.addf %415, %418 : vector<8x128xf32>
      %420 = arith.addf %419, %189 : vector<8x128xf32>
      %421 = arith.mulf %147, %259 : vector<8x128xf32>
      %422 = arith.mulf %150, %260 : vector<8x128xf32>
      %423 = arith.addf %421, %422 : vector<8x128xf32>
      %424 = arith.mulf %153, %261 : vector<8x128xf32>
      %425 = arith.addf %423, %424 : vector<8x128xf32>
      %426 = arith.mulf %156, %262 : vector<8x128xf32>
      %427 = arith.addf %425, %426 : vector<8x128xf32>
      %428 = arith.mulf %177, %257 : vector<8x128xf32>
      %429 = arith.mulf %180, %258 : vector<8x128xf32>
      %430 = arith.addf %428, %429 : vector<8x128xf32>
      %431 = arith.addf %427, %430 : vector<8x128xf32>
      %432 = arith.addf %431, %192 : vector<8x128xf32>
      %433 = arith.index_cast %384 : i32 to index
      %c0_319 = arith.constant 0 : index
      %c0_320 = arith.constant 0 : index
      %c0_321 = arith.constant 0 : index
      %434 = vector.load %arg6[%433, %c0_319, %c0_320, %c0_321] : memref<8x4x8x128xf32, #tpu.memory_space<vmem>>, vector<1x1x8x128xf32>
      %435 = vector.shape_cast %434 : vector<1x1x8x128xf32> to vector<8x128xf32>
      %436 = arith.subf %396, %435 : vector<8x128xf32>
      %437 = arith.index_cast %384 : i32 to index
      %c1_322 = arith.constant 1 : index
      %c0_323 = arith.constant 0 : index
      %c0_324 = arith.constant 0 : index
      %438 = vector.load %arg6[%437, %c1_322, %c0_323, %c0_324] : memref<8x4x8x128xf32, #tpu.memory_space<vmem>>, vector<1x1x8x128xf32>
      %439 = vector.shape_cast %438 : vector<1x1x8x128xf32> to vector<8x128xf32>
      %440 = arith.subf %408, %439 : vector<8x128xf32>
      %441 = arith.index_cast %384 : i32 to index
      %c2_325 = arith.constant 2 : index
      %c0_326 = arith.constant 0 : index
      %c0_327 = arith.constant 0 : index
      %442 = vector.load %arg6[%441, %c2_325, %c0_326, %c0_327] : memref<8x4x8x128xf32, #tpu.memory_space<vmem>>, vector<1x1x8x128xf32>
      %443 = vector.shape_cast %442 : vector<1x1x8x128xf32> to vector<8x128xf32>
      %444 = arith.subf %420, %443 : vector<8x128xf32>
      %445 = arith.index_cast %384 : i32 to index
      %c3_328 = arith.constant 3 : index
      %c0_329 = arith.constant 0 : index
      %c0_330 = arith.constant 0 : index
      %446 = vector.load %arg6[%445, %c3_328, %c0_329, %c0_330] : memref<8x4x8x128xf32, #tpu.memory_space<vmem>>, vector<1x1x8x128xf32>
      %447 = vector.shape_cast %446 : vector<1x1x8x128xf32> to vector<8x128xf32>
      %448 = arith.subf %432, %447 : vector<8x128xf32>
      scf.yield %436, %440, %444, %448, %378, %382 : vector<8x128xf32>, vector<8x128xf32>, vector<8x128xf32>, vector<8x128xf32>, vector<8x128xf32>, vector<8x128xf32>
    }
    %c8_i32_28 = arith.constant 8 : i32
    %c0_29 = arith.constant 0 : index
    %c0_30 = arith.constant 0 : index
    %25 = vector.load %arg10[%c0_29, %c0_30] : memref<8x128xf32, #tpu.memory_space<vmem>>, vector<8x128xf32>
    tpu.vector_store %arg10[%c0_29, %c0_30], %24#4 {strides = array<i32>} : memref<8x128xf32, #tpu.memory_space<vmem>>, vector<8x128xf32>,
    %26 = math.sqrt %24#5 : vector<8x128xf32>
    %c0_31 = arith.constant 0 : index
    %c0_32 = arith.constant 0 : index
    %27 = vector.load %arg11[%c0_31, %c0_32] : memref<8x128xf32, #tpu.memory_space<vmem>>, vector<8x128xf32>
    tpu.vector_store %arg11[%c0_31, %c0_32], %26 {strides = array<i32>} : memref<8x128xf32, #tpu.memory_space<vmem>>, vector<8x128xf32>,
    return
  }
  func.func @transform_0(%arg0: i32) -> (i32, i32, i32) {
    %c0_i32 = arith.constant 0 : i32
    %c0_i32_0 = arith.constant 0 : i32
    %c0_i32_1 = arith.constant 0 : i32
    return %c0_i32, %arg0, %c0_i32_0 : i32, i32, i32
  }
  func.func @transform_1(%arg0: i32) -> (i32, i32, i32, i32, i32) {
    %c0_i32 = arith.constant 0 : i32
    %c0_i32_0 = arith.constant 0 : i32
    %c0_i32_1 = arith.constant 0 : i32
    %c0_i32_2 = arith.constant 0 : i32
    %c0_i32_3 = arith.constant 0 : i32
    %c0_i32_4 = arith.constant 0 : i32
    return %c0_i32, %c0_i32_0, %c0_i32_1, %c0_i32_2, %c0_i32_3 : i32, i32, i32, i32, i32
  }
  func.func @transform_2(%arg0: i32) -> (i32, i32, i32, i32) {
    %c0_i32 = arith.constant 0 : i32
    %c0_i32_0 = arith.constant 0 : i32
    %c0_i32_1 = arith.constant 0 : i32
    %c0_i32_2 = arith.constant 0 : i32
    return %c0_i32, %c0_i32_0, %arg0, %c0_i32_1 : i32, i32, i32, i32
  }
  func.func @transform_3(%arg0: i32) -> (i32, i32, i32, i32, i32) {
    %c0_i32 = arith.constant 0 : i32
    %c0_i32_0 = arith.constant 0 : i32
    %c0_i32_1 = arith.constant 0 : i32
    %c0_i32_2 = arith.constant 0 : i32
    %c0_i32_3 = arith.constant 0 : i32
    %c0_i32_4 = arith.constant 0 : i32
    return %c0_i32, %c0_i32_0, %c0_i32_1, %c0_i32_2, %c0_i32_3 : i32, i32, i32, i32, i32
  }
  func.func @transform_4(%arg0: i32) -> (i32, i32, i32, i32) {
    %c0_i32 = arith.constant 0 : i32
    %c0_i32_0 = arith.constant 0 : i32
    %c0_i32_1 = arith.constant 0 : i32
    %c0_i32_2 = arith.constant 0 : i32
    %c0_i32_3 = arith.constant 0 : i32
    return %c0_i32, %c0_i32_0, %c0_i32_1, %c0_i32_2 : i32, i32, i32, i32
  }
  func.func @transform_5(%arg0: i32) -> (i32, i32, i32, i32) {
    %c0_i32 = arith.constant 0 : i32
    %c0_i32_0 = arith.constant 0 : i32
    %c0_i32_1 = arith.constant 0 : i32
    %c0_i32_2 = arith.constant 0 : i32
    return %c0_i32, %c0_i32_0, %arg0, %c0_i32_1 : i32, i32, i32, i32
  }
  func.func @transform_6(%arg0: i32) -> (i32, i32, i32, i32) {
    %c0_i32 = arith.constant 0 : i32
    %c0_i32_0 = arith.constant 0 : i32
    %c0_i32_1 = arith.constant 0 : i32
    %c0_i32_2 = arith.constant 0 : i32
    return %c0_i32, %c0_i32_0, %arg0, %c0_i32_1 : i32, i32, i32, i32
  }
  func.func @transform_7(%arg0: i32) -> (i32, i32, i32, i32) {
    %c0_i32 = arith.constant 0 : i32
    %c0_i32_0 = arith.constant 0 : i32
    %c0_i32_1 = arith.constant 0 : i32
    %c0_i32_2 = arith.constant 0 : i32
    return %c0_i32, %c0_i32_0, %arg0, %c0_i32_1 : i32, i32, i32, i32
  }
  func.func @transform_8(%arg0: i32) -> (i32, i32, i32, i32) {
    %c0_i32 = arith.constant 0 : i32
    %c0_i32_0 = arith.constant 0 : i32
    %c0_i32_1 = arith.constant 0 : i32
    %c0_i32_2 = arith.constant 0 : i32
    return %c0_i32, %c0_i32_0, %arg0, %c0_i32_1 : i32, i32, i32, i32
  }
  func.func @transform_9(%arg0: i32) -> (i32, i32) {
    %c0_i32 = arith.constant 0 : i32
    %c0_i32_0 = arith.constant 0 : i32
    return %arg0, %c0_i32 : i32, i32
  }
  func.func @transform_10(%arg0: i32) -> (i32, i32) {
    %c0_i32 = arith.constant 0 : i32
    %c0_i32_0 = arith.constant 0 : i32
    return %arg0, %c0_i32 : i32, i32
  }
}

</mosaic_0001>

<bundles_post_ra>
// kernel: tpu_custom_call.1
= control target key start
LH: loop header
LB: loop body
LE: loop exit
PB: predicated region body
PF: predicated region fallthrough
CT: control target
= control target key end

     0   :  { %16 = vsyncpa [#allocation4], 0  ;;  %s4224_s0 = inlined_call_operand.hbm [shape: f32[4,8,128], index: 0, kind: input, shape index: {}]   ;;  %s4225_s1 = inlined_call_operand.hbm [shape: f32[8,6,6,8,128], index: 1, kind: input, shape index: {}]   ;;  %s4226_s2 = inlined_call_operand.hbm [shape: f32[8,6,8,128], index: 2, kind: input, shape index: {}]   ;;  %s4227_s3 = inlined_call_operand.hbm [shape: f32[8,4,6,8,128], index: 3, kind: input, shape index: {}]   ;;  %s4228_s4 = inlined_call_operand.hbm [shape: f32[8,4,8,128], index: 4, kind: input, shape index: {}]   ;;  %s4229_s5 = inlined_call_operand.hbm [shape: f32[8,4,8,128], index: 5, kind: input, shape index: {}]   ;;  %s4230_s6 = inlined_call_operand.hbm [shape: f32[8,2,8,128], index: 6, kind: input, shape index: {}]   ;;  %s4231_s7 = inlined_call_operand.hbm [shape: f32[8,4,8,128], index: 7, kind: output, shape index: {0}]   ;;  %s4232_s8 = inlined_call_operand.hbm [shape: f32[8,2,8,128], index: 8, kind: output, shape index: {1}]   ;;  %s4233_s9 = inlined_call_operand.hbm [shape: f32[8,128], index: 9, kind: output, shape index: {2}]   ;;  %s4234_s10 = inlined_call_operand.hbm [shape: f32[8,128], index: 10, kind: output, shape index: {3}]  }
   0x1   :  { %17 = vsyncpa [#allocation7], 0 }
   0x2   :  { %18 = vsyncpa [#allocation10], 0 }
   0x3   :  { %19 = vsyncpa [#allocation13], 0 }
   0x4   :  { %20 = vsyncpa [#allocation5], 0 }
   0x5   :  { %21 = vsyncpa [#allocation17], 0 }
   0x6   :  { %22 = vsyncpa [#allocation20], 0  ;;  %s40_s15 = sshll.u32 %s4225_s1, 4  ;;  %s2754_s16 = smov [#allocation6]   ;;  %s41_s15 = int_to_ptr.hbm [resolvable:$true] %s40_s15 }
   0x7   :  { %s42_s17 = sshll.u32 %s2754_s16, 4  ;;  %s66_s20 = sshll.u32 %s4227_s3, 4  ;;  %s43_s17 = int_to_ptr.vmem [resolvable:$true] %s42_s17  ;;  %s67_s20 = int_to_ptr.hbm [resolvable:$true] %s66_s20 }
   0x8   :  { %s2755_s21 = smov 128   ;;  %s2756_s22 = smov 8  }
   0x9   :  { %48 = dma.hbm_to_vmem [thread:$0]  %s41_s15, 36864, %s43_s17, [#allocation7], %s2755_s21, %s2755_s21, %s2756_s22  }
   0xa   :  { %s2757_s23 = smov [#allocation9]   ;;  %s92_s1 = sshll.u32 %s4229_s5, 4  ;;  %s93_s1 = int_to_ptr.hbm [resolvable:$true] %s92_s1 }
   0xb   :  { %s68_s24 = sshll.u32 %s2757_s23, 4  ;;  %s27_s28 = sshll.u32 %s4224_s0, 4  ;;  %s69_s24 = int_to_ptr.vmem [resolvable:$true] %s68_s24  ;;  %s28_s28 = int_to_ptr.hbm [resolvable:$true] %s27_s28 }
   0xc   :  { %74 = dma.hbm_to_vmem [thread:$0]  %s67_s20, 24576, %s69_s24, [#allocation10], %s2755_s21, %s2755_s21, %s2756_s22  }
   0xd   :  { %s2758_s29 = smov [#allocation12]   ;;  %s2759_s11 = smov [#allocation3]  }
   0xe   :  { %s94_s30 = sshll.u32 %s2758_s29, 4  ;;  %s29_s5 = sshll.u32 %s2759_s11, 4  ;;  %s95_s30 = int_to_ptr.vmem [resolvable:$true] %s94_s30  ;;  %s30_s5 = int_to_ptr.vmem [resolvable:$true] %s29_s5 }
   0xf   :  { %100 = dma.hbm_to_vmem [thread:$0]  %s93_s1, 4096, %s95_s30, [#allocation13], %s2755_s21, %s2755_s21, %s2756_s22  }
  0x10   :  { %s53_s14 = sshll.u32 %s4226_s2, 4  ;;  %s79_s16 = sshll.u32 %s4228_s4, 4  ;;  %s54_s14 = int_to_ptr.hbm [resolvable:$true] %s53_s14  ;;  %s80_s16 = int_to_ptr.hbm [resolvable:$true] %s79_s16 }
  0x11   :  { %35 = dma.hbm_to_vmem [thread:$0]  %s28_s28, 512, %s30_s5, [#allocation4], %s2755_s21, %s2755_s21, %s2756_s22  }
  0x12   :  { %s2760_s17 = smov [#allocation8]   ;;  %s2761_s19 = smov [#allocation11]  }
  0x13   :  { %s55_s18 = sshll.u32 %s2760_s17, 4  ;;  %s81_s2 = sshll.u32 %s2761_s19, 4  ;;  %s56_s18 = int_to_ptr.vmem [resolvable:$true] %s55_s18  ;;  %s82_s2 = int_to_ptr.vmem [resolvable:$true] %s81_s2 }
  0x14   :  { %61 = dma.hbm_to_vmem [thread:$0]  %s54_s14, 6144, %s56_s18, [#allocation7], %s2755_s21, %s2755_s21, %s2756_s22  }
  0x15   :  { %s105_s24 = sshll.u32 %s4230_s6, 4  ;;  %s2762_s4 = smov [#allocation14]   ;;  %s106_s24 = int_to_ptr.hbm [resolvable:$true] %s105_s24 }
  0x16   :  { %87 = dma.hbm_to_vmem [thread:$0]  %s80_s16, 4096, %s82_s2, [#allocation10], %s2755_s21, %s2755_s21, %s2756_s22  }
  0x17   :  { %s107_s25 = sshll.u32 %s2762_s4, 4  ;;  %s108_s25 = int_to_ptr.vmem [resolvable:$true] %s107_s25 }
  0x18   :  { %113 = dma.hbm_to_vmem [thread:$0]  %s106_s24, 2048, %s108_s25, [#allocation13], %s2755_s21, %s2755_s21, %s2756_s22  }
  0x19   :  { %2652 = dma.done.wait [#allocation4], 512  }
  0x1a   :  { %2653 = vsyncadd [#allocation4], 4294966784 }
  0x1b   :  { %2654 = dma.done.wait [#allocation7], 43008  }
  0x1c   :  { %2655 = vsyncadd [#allocation7], 4294924288 }
  0x1d   :  { %2656 = dma.done.wait [#allocation10], 28672  }
  0x1e   :  { %2657 = vsyncadd [#allocation10], 4294938624 }
  0x1f   :  { %2658 = dma.done.wait [#allocation13], 6144  }
  0x20   :  { %2659 = vsyncadd [#allocation13], 4294961152  ;;  %v2864_v0 = vmov 0.0   ;;  %v2866_v1 = vmov 0.0   ;;  %v2868_v2 = vmov 0.0   ;;  %v2870_v3 = vmov 0.0  }
  0x21   :  { %v2872_v4 = vmov 0.0   ;;  %v2874_v5 = vmov 0.0   ;;  %v2876_v6 = vmov 0.0   ;;  %v2878_v7 = vmov 0.0   ;;  %s2892_s6 = smov 0  }
  0x22   :  { %v2880_v8 = vmov 0.0   ;;  %v2882_v9 = vmov 0.0   ;;  %v2884_v10 = vmov 0.0   ;;  %v2886_v11 = vmov 0.0  }
  0x23   :  { %v2888_v12 = vmov 0.0   ;;  %v2890_v13 = vmov 0.0  }
  0x24 LB: > { %4285 = vst [vmem:[#allocation28_spill] sm:$0xff] %v2668_v0  ;;  %s2940_s26 = ssub.s32 7, %s2724_s6  ;;  %s147_s6 = sadd.s32 1, %s2724_s6   ;;  %s2724_s6 = sphi %s2892_s6, %s147_s6   ;;  %v2720_v13 = vphi %v2890_v13, %v874_v13   ;;  %v2716_v12 = vphi %v2888_v12, %v878_v12   ;;  %v2712_v11 = vphi %v2886_v11, %v4403_v11   ;;  %v2708_v10 = vphi %v2884_v10, %v886_v10   ;;  %v2704_v9 = vphi %v2882_v9, %v890_v9   ;;  %v2700_v8 = vphi %v2880_v8, %v894_v8   ;;  %v2696_v7 = vphi %v2878_v7, %v898_v7   ;;  %v2692_v6 = vphi %v2876_v6, %v902_v6   ;;  %v2688_v5 = vphi %v2874_v5, %v906_v5   ;;  %v2684_v4 = vphi %v2872_v4, %v910_v4   ;;  %v2680_v3 = vphi %v2870_v3, %v4402_v3   ;;  %v2676_v2 = vphi %v2868_v2, %v4401_v2   ;;  %v2672_v1 = vphi %v2866_v1, %v922_v1   ;;  %v2668_v0 = vphi %v2864_v0, %v926_v0  }
  0x25   : > { %4286 = vst [vmem:[#allocation29_spill] sm:$0xff] %v2672_v1  ;;  %s163_s1 = smul.u32 288, %s2940_s26  ;;  %s1993_s3 = sshll.u32 %s2940_s26, 5 }
  0x26   : > { %4287 = vst [vmem:[#allocation30_spill] sm:$0xff] %v2676_v2  ;;  %s244_s28 = smul.u32 192, %s2940_s26  ;;  %s2964_s29 = scalar_lea.vmem [#allocation12], %s1993_s3 }
  0x27   : > { %4288 = vst [vmem:[#allocation31_spill] sm:$0xff] %v2680_v3  ;;  %s2944_s27 = scalar_lea.vmem [#allocation6], %s163_s1  ;;  %v318_v21 = vld [vmem:[%s2964_s29] sm:$0xff]  ;;  %v1995_v22 = vld [vmem:[%s2964_s29 + $0x8] sm:$0xff]  ;;  %v1997_v37 = vld [vmem:[%s2964_s29 + $0x10] sm:$0xff]  ;;  %s2000_s11 = sshll.u32 %s2940_s26, 4 }
  0x28   : > { %4289 = vst [vmem:[#allocation32_spill] sm:$0xff] %v2684_v4  ;;  %v2947_v14 = vld [vmem:[%s2944_s27] sm:$0xff]  ;;  %v2950_v15 = vld [vmem:[%s2944_s27 + $0x8] sm:$0xff]  ;;  %v2953_v16 = vld [vmem:[%s2944_s27 + $0x10] sm:$0xff]  ;;  %s3000_s30 = scalar_lea.vmem [#allocation9], %s244_s28  ;;  %s226_s5 = smul.u32 48, %s2940_s26 }
  0x29   : > { %4290 = vst [vmem:[#allocation33_spill] sm:$0xff] %v2688_v5  ;;  %v1948_v17 = vld [vmem:[%s2944_s27 + $0x38] sm:$0xff]  ;;  %v1949_v19 = vld [vmem:[%s2944_s27 + $0x40] sm:$0xff]  ;;  %v2961_v20 = vld [vmem:[%s2944_s27 + $0x48] sm:$0xff]  ;;  %v334_v25 = vmul.f32 %v318_v21, %v2947_v14  ;;  %v335_v26 = vmul.f32 %v1995_v22, %v2950_v15  ;;  %v346_v27 = vmul.f32 %v2950_v15, %v318_v21  ;;  %v358_v32 = vmul.f32 %v2953_v16, %v318_v21  ;;  %s329_s12 = scalar_lea.vmem [#allocation14], %s2000_s11  ;;  %s841_s14 = smul.u32 80, %s2940_s26 }
  0x2a   : > { %4291 = vst [vmem:[#allocation34_spill] sm:$0xff] %v2692_v6  ;;  %v2957_v18 = vld [vmem:[%s2944_s27 + $0x18] sm:$0xff]  ;;  %v2969_v23 = vld [vmem:[%s2944_s27 + $0x20] sm:$0xff]  ;;  %v2972_v24 = vld [vmem:[%s2944_s27 + $0x50] sm:$0xff]  ;;  %v347_v28 = vmul.f32 %v1995_v22, %v1948_v17  ;;  %v359_v33 = vmul.f32 %v1995_v22, %v1949_v19  ;;  %v371_v35 = vmul.f32 %v1995_v22, %v2961_v20  ;;  %v337_v38 = vmul.f32 %v1997_v37, %v2953_v16  ;;  %s3118_s13 = scalar_lea.vmem [#allocation8], %s226_s5  ;;  %p3816_p0 = scmp.ge.s32.totalorder %s147_s6, 8  }
  0x2b   : > { %4292 = vst [vmem:[#allocation35_spill] sm:$0xff] %v2708_v10  ;;  %v1951_v29 = vld [vmem:[%s2944_s27 + $0x70] sm:$0xff]  ;;  %v2979_v30 = vld [vmem:[%s2944_s27 + $0x28] sm:$0xff]  ;;  %v2982_v31 = vld [vmem:[%s2944_s27 + $0x58] sm:$0xff]  ;;  %v370_v34 = vmul.f32 %v2957_v18, %v318_v21  ;;  %v349_v39 = vmul.f32 %v1997_v37, %v1949_v19  ;;  %v382_v40 = vmul.f32 %v2969_v23, %v318_v21  ;;  %v383_v41 = vmul.f32 %v1995_v22, %v2972_v24  ;;  %s3756_s0 = scalar_lea.vmem [#allocation2], %s841_s14  ;;  %s3864_s16 = smov (%p3816_p0), 0  }
  0x2c   : > { %4293 = vst [vmem:[#allocation36_spill] sm:$0xff] %v2720_v13  ;;  %v2988_v36 = vld [vmem:[%s2944_s27 + $0x78] sm:$0xff]  ;;  %v2995_v42 = vld [vmem:[%s2944_s27 + $0x80] sm:$0xff]  ;;  %v2998_v43 = vld [vmem:[%s2944_s27 + $0x88] sm:$0xff]  ;;  %v336_v45 = vadd.f32 %v335_v26, %v334_v25  ;;  %v361_v46 = vmul.f32 %v1997_v37, %v1951_v29  ;;  %v394_v47 = vmul.f32 %v2979_v30, %v318_v21  ;;  %v395_v48 = vmul.f32 %v1995_v22, %v2982_v31 }
  0x2d   : > { %4294 = vst [vmem:[#allocation37_spill] sm:$0xff] %v2947_v14  ;;  %v3003_v44 = vld [vmem:[%s3000_s30] sm:$0xff]  ;;  %v3008_v49 = vld [vmem:[%s3000_s30 + $0x8] sm:$0xff]  ;;  %v3011_v50 = vld [vmem:[%s3000_s30 + $0x30] sm:$0xff]  ;;  %v348_v52 = vadd.f32 %v347_v28, %v346_v27  ;;  %v360_v53 = vadd.f32 %v359_v33, %v358_v32  ;;  %v372_v54 = vadd.f32 %v371_v35, %v370_v34  ;;  %v373_v55 = vmul.f32 %v1997_v37, %v2988_v36 }
  0x2e   : > { %4295 = vst [vmem:[#allocation38_spill] sm:$0xff] %v2950_v15  ;;  %v3014_v51 = vld [vmem:[%s3000_s30 + $0x38] sm:$0xff]  ;;  %v3018_v56 = vld [vmem:[%s3000_s30 + $0x10] sm:$0xff]  ;;  %v3021_v57 = vld [vmem:[%s3000_s30 + $0x40] sm:$0xff]  ;;  %v406_v58 = vmul.f32 %v2720_v13, %v3003_v44  ;;  %v407_v59 = vmul.f32 %v2716_v12, %v3011_v50  ;;  %v413_v60 = vmul.f32 %v2720_v13, %v3008_v49  ;;  %v384_v62 = vadd.f32 %v383_v41, %v382_v40 }
  0x2f   : > { %4296 = vst [vmem:[#allocation39_spill] sm:$0xff] %v2953_v16  ;;  %v414_v61 = vmul.f32 %v2716_v12, %v3014_v51  ;;  %v385_v63 = vmul.f32 %v1997_v37, %v2995_v42  ;;  %v420_v17 = vmul.f32 %v2720_v13, %v3018_v56  ;;  %v421_v19 = vmul.f32 %v2716_v12, %v3021_v57  ;;  %v3037_v21 = vld [vmem:[%s3000_s30 + $0x18] sm:$0xff]  ;;  %v3040_v22 = vld [vmem:[%s3000_s30 + $0x60] sm:$0xff]  ;;  %v3045_v28 = vld [vmem:[%s3000_s30 + $0x48] sm:$0xff] }
  0x30   : > { %4297 = vst [vmem:[#allocation40_spill] sm:$0xff] %v2957_v18  ;;  %v338_v25 = vadd.f32 %v337_v38, %v336_v45  ;;  %v396_v26 = vadd.f32 %v395_v48, %v394_v47  ;;  %v397_v27 = vmul.f32 %v1997_v37, %v2998_v43  ;;  %v3048_v29 = vld [vmem:[%s3000_s30 + $0x68] sm:$0xff]  ;;  %v350_v32 = vadd.f32 %v349_v39, %v348_v52  ;;  %v3055_v38 = vld [vmem:[%s3000_s30 + $0x70] sm:$0xff]  ;;  %v1999_v45 = vld [vmem:[%s2964_s29 + $0x18] sm:$0xff] }
  0x31   : > { %4298 = vst [vmem:[#allocation41_spill] sm:$0xff] %v2969_v23  ;;  %v362_v33 = vadd.f32 %v361_v46, %v360_v53  ;;  %v409_v34 = vmul.f32 %v2712_v11, %v3040_v22  ;;  %v427_v35 = vmul.f32 %v2720_v13, %v3037_v21  ;;  %v408_v40 = vadd.f32 %v407_v59, %v406_v58  ;;  %v3068_v53 = vld [vmem:[%s3000_s30 + $0x90] sm:$0xff]  ;;  %v3071_v58 = vld [vmem:[%s3000_s30 + $0x98] sm:$0xff]  ;;  %v3074_v59 = vld [vmem:[%s3000_s30 + $0xa0] sm:$0xff] }
  0x32   : > { %4299 = vst [vmem:[#allocation42_spill] sm:$0xff] %v2972_v24  ;;  %v415_v37 = vadd.f32 %v414_v61, %v413_v60  ;;  %v416_v41 = vmul.f32 %v2712_v11, %v3048_v29  ;;  %v428_v39 = vmul.f32 %v2716_v12, %v3045_v28  ;;  %v374_v46 = vadd.f32 %v373_v55, %v372_v54  ;;  %v2002_v0 = vld [vmem:[%s329_s12 + $0x8] sm:$0xff]  ;;  %v3101_v16 = vld [vmem:[%s2944_s27 + $0xb0] sm:$0xff]  ;;  %v3109_v5 = vld [vmem:[%s2944_s27 + $0xb8] sm:$0xff] }
  0x33   : > { %4300 = vst [vmem:[#allocation43_spill] sm:$0xff] %v2979_v30  ;;  %v3062_v47 = vadd.f32 %v385_v63, %v384_v62  ;;  %v422_v48 = vadd.f32 %v421_v19, %v420_v17  ;;  %v423_v52 = vmul.f32 %v2712_v11, %v3055_v38  ;;  %v339_v60 = vmul.f32 %v1999_v45, %v2957_v18  ;;  %v3081_v62 = vld [vmem:[%s3000_s30 + $0x78] sm:$0xff]  ;;  %v3112_v6 = vld [vmem:[%s3000_s30 + $0xa8] sm:$0xff] }
  0x34   : > { %4301 = vst [vmem:[#allocation44_spill] sm:$0xff] %v2982_v31  ;;  %v351_v61 = vmul.f32 %v1999_v45, %v2961_v20  ;;  %v398_v54 = vadd.f32 %v397_v27, %v396_v26  ;;  %v434_v55 = vmul.f32 %v2716_v12, %v3003_v44  ;;  %v411_v63 = vmul.f32 %v2708_v10, %v3068_v53  ;;  %v3094_v26 = vld [vmem:[%s2944_s27 + $0xa8] sm:$0xff]  ;;  %v330_v27 = vld [vmem:[%s329_s12] sm:$0xff] }
  0x35   : > { %4302 = vst [vmem:[#allocation45_spill] sm:$0xff] %v2995_v42  ;;  %v418_v17 = vmul.f32 %v2708_v10, %v3071_v58  ;;  %v3089_v19 = vmul.f32 %v2708_v10, %v3074_v59  ;;  %v435_v20 = vmul.f32 %v2704_v9, %v3011_v50  ;;  %v410_v1 = vadd.f32 %v409_v34, %v408_v40 }
  0x36   : > { %4303 = vst [vmem:[#allocation46_spill] sm:$0xff] %v2998_v43  ;;  %v417_v2 = vadd.f32 %v416_v41, %v415_v37  ;;  %v429_v3 = vadd.f32 %v428_v39, %v427_v35  ;;  %v430_v18 = vmul.f32 %v2712_v11, %v3081_v62  ;;  %v342_v15 = vmul.f32 %v2969_v23, %v330_v27  ;;  %v228_v41 = vld [vmem:[%s3118_s13] sm:$0xff] }
  0x37   : > { %4304 = vst [vmem:[#allocation47_spill] sm:$0xff] %v3018_v56  ;;  %v343_v14 = vmul.f32 %v2002_v0, %v2979_v30  ;;  %v363_v4 = vmul.f32 %v1999_v45, %v2988_v36  ;;  %v3106_v13 = vadd.f32 %v423_v52, %v422_v48  ;;  %v340_v34 = vadd.f32 %v339_v60, %v338_v25  ;;  %v1965_v36 = vld [vmem:[%s3118_s13 + $0x8] sm:$0xff] }
  0x38   : > { %4305 = vst [vmem:[#allocation48_spill] sm:$0xff] %v3021_v57  ;;  %v352_v40 = vadd.f32 %v351_v61, %v350_v32  ;;  %v354_v35 = vmul.f32 %v2972_v24, %v330_v27  ;;  %v355_v37 = vmul.f32 %v2002_v0, %v2982_v31  ;;  %v375_v39 = vmul.f32 %v1999_v45, %v3094_v26 }
  0x39   : > { %4306 = vst [vmem:[#allocation49_spill] sm:$0xff] %v3037_v21  ;;  %v432_v48 = vmul.f32 %v2708_v10, %v3112_v6  ;;  %v436_v25 = vadd.f32 %v435_v20, %v434_v55  ;;  %v437_v32 = vmul.f32 %v2700_v8, %v3040_v22  ;;  %v366_v52 = vmul.f32 %v2995_v42, %v330_v27  ;;  %v1966_v55 = vld [vmem:[%s3118_s13 + $0x10] sm:$0xff] }
  0x3a   : > { %4307 = vst [vmem:[#allocation50_spill] sm:$0xff] %v3040_v22  ;;  %v367_v60 = vmul.f32 %v2002_v0, %v2998_v43  ;;  %v387_v61 = vmul.f32 %v1999_v45, %v3101_v16  ;;  %v3130_v31 = vadd.f32 %v411_v63, %v410_v1  ;;  %v344_v24 = vadd.f32 %v343_v14, %v342_v15  ;;  %v3138_v43 = vld [vmem:[%s2944_s27 + $0xe0] sm:$0xff]  ;;  %v3149_v15 = vld [vmem:[%s2944_s27 + $0x118] sm:$0xff] }
  0x3b   : > { %4308 = vst [vmem:[#allocation51_spill] sm:$0xff] %v3045_v28  ;;  %v399_v30 = vmul.f32 %v1999_v45, %v3109_v5  ;;  %v3133_v23 = vadd.f32 %v418_v17, %v417_v2  ;;  %v341_v20 = vadd.f32 %v340_v34, %v228_v41  ;;  %v353_v10 = vadd.f32 %v1965_v36, %v352_v40  ;;  %v1968_v40 = vld [vmem:[%s3118_s13 + $0x20] sm:$0xff]  ;;  %v1969_v36 = vld [vmem:[%s3118_s13 + $0x28] sm:$0xff] }
  0x3c   : > { %4309 = vst [vmem:[#allocation52_spill] sm:$0xff] %v3055_v38  ;;  %v356_v22 = vadd.f32 %v355_v37, %v354_v35  ;;  %v378_v42 = vmul.f32 %v3101_v16, %v330_v27  ;;  %v376_v1 = vadd.f32 %v375_v39, %v374_v46  ;;  %v379_v14 = vmul.f32 %v2002_v0, %v3109_v5 }
  0x3d   : > { %4310 = vst [vmem:[#allocation53_spill] sm:$0xff] %v3074_v59  ;;  %v442_v2 = vmul.f32 %v2704_v9, %v3014_v51  ;;  %v368_v45 = vadd.f32 %v367_v60, %v366_v52  ;;  %v388_v63 = vadd.f32 %v387_v61, %v3062_v47  ;;  %v390_v17 = vmul.f32 %v3138_v43, %v330_v27 }
  0x3e   : > { %4311 = vst [vmem:[#allocation54_spill] sm:$0xff] %v3081_v62  ;;  %v400_v35 = vadd.f32 %v399_v30, %v398_v54  ;;  %v403_v41 = vmul.f32 %v2002_v0, %v3149_v15  ;;  %v431_v39 = vadd.f32 %v430_v18, %v429_v3  ;;  %v448_v52 = vmul.f32 %v2716_v12, %v3018_v56 }
  0x3f   : > { %4312 = vst [vmem:[#allocation55_spill] sm:$0xff] %v3094_v26  ;;  %v364_v26 = vadd.f32 %v363_v4, %v362_v33  ;;  %v441_v4 = vmul.f32 %v2716_v12, %v3008_v49  ;;  %v1967_v33 = vld [vmem:[%s3118_s13 + $0x18] sm:$0xff]  ;;  %v449_v47 = vmul.f32 %v2704_v9, %v3021_v57  ;;  %v380_v61 = vadd.f32 %v379_v14, %v378_v42 }
  0x40   : > { %4313 = vst [vmem:[#allocation56_spill] sm:$0xff] %v3101_v16  ;;  %v377_v60 = vadd.f32 %v1967_v33, %v376_v1  ;;  %v444_v30 = vmul.f32 %v2700_v8, %v3048_v29  ;;  %v3167_v54 = vadd.f32 %v344_v24, %v341_v20  ;;  %v389_v3 = vadd.f32 %v1968_v40, %v388_v63 }
  0x41   : > { %4314 = vst [vmem:[#allocation57_spill] sm:$0xff] %v3109_v5  ;;  %v365_v46 = vadd.f32 %v1966_v55, %v364_v26  ;;  %v439_v5 = vmul.f32 %v2696_v7, %v3068_v53  ;;  %v443_v16 = vadd.f32 %v442_v2, %v441_v4  ;;  %v451_v1 = vmul.f32 %v2700_v8, %v3055_v38 }
  0x42   : > { %4315 = vst [vmem:[#allocation58_spill] sm:$0xff] %v3112_v6  ;;  %v3141_v6 = vld [vmem:[%s2944_s27 + $0xe8] sm:$0xff]  ;;  %v455_v42 = vmul.f32 %v2716_v12, %v3037_v21  ;;  %v456_v24 = vmul.f32 %v2704_v9, %v3045_v28  ;;  %v3179_v20 = vadd.f32 %v380_v61, %v377_v60  ;;  %v3189_v14 = vadd.f32 %v432_v48, %v431_v39 }
  0x43   : > { %4316 = vst [vmem:[#allocation59_spill] sm:$0xff] %v3138_v43  ;;  %v391_v34 = vmul.f32 %v2002_v0, %v3141_v6  ;;  %v402_v37 = vmul.f32 %v3141_v6, %v330_v27  ;;  %v3169_v0 = vadd.f32 %v356_v22, %v353_v10  ;;  %v3171_v26 = vadd.f32 %v368_v45, %v365_v46  ;;  %v4327_v46 = vld [vmem:[#allocation34_spill] sm:$0xff]  ;;  %v4329_v61 = vld [vmem:[#allocation35_spill] sm:$0xff] }
  0x44   : > { %4317 = vst [vmem:[#allocation60_spill] sm:$0xff] %v3141_v6  ;;  %v401_v27 = vadd.f32 %v1969_v36, %v400_v35  ;;  %v450_v6 = vadd.f32 %v449_v47, %v448_v52  ;;  %v3183_v10 = vadd.f32 %v3089_v19, %v3106_v13  ;;  %v445_v22 = vadd.f32 %v444_v30, %v443_v16 }
  0x45   : > { %4318 = vst [vmem:[#allocation61_spill] sm:$0xff] %v3149_v15  ;;  %v392_v18 = vadd.f32 %v391_v34, %v390_v17  ;;  %v404_v55 = vadd.f32 %v403_v41, %v402_v37  ;;  %v438_v15 = vadd.f32 %v437_v32, %v436_v25  ;;  %v446_v25 = vmul.f32 %v2696_v7, %v3071_v58  ;;  %v4328_v37 = vld [vmem:[#allocation33_spill] sm:$0xff] }
  0x46   : > { %4319 = vst [vmem:[#allocation62_spill] sm:$0xff] %v3167_v54  ;;  %v462_v4 = vmul.f32 %v2712_v11, %v3003_v44  ;;  %v463_v2 = vmul.f32 %v2700_v8, %v3011_v50  ;;  %v453_v13 = vmul.f32 %v2696_v7, %v3074_v59  ;;  %v458_v16 = vmul.f32 %v2700_v8, %v3081_v62 }
  0x47   : > { %4320 = vst [vmem:[#allocation63_spill] sm:$0xff] %v3169_v0  ;;  %v3187_v32 = vadd.f32 %v392_v18, %v389_v3  ;;  %v3195_v33 = vadd.f32 %v404_v55, %v401_v27  ;;  %v3197_v45 = vadd.f32 %v439_v5, %v438_v15  ;;  %v452_v19 = vadd.f32 %v451_v1, %v450_v6  ;;  %v4326_v15 = vld [vmem:[#allocation50_spill] sm:$0xff] }
  0x48   : > { %4321 = vst [vmem:[#allocation64_spill] sm:$0xff] %v3171_v26  ;;  %v457_v63 = vadd.f32 %v456_v24, %v455_v42  ;;  %v469_v48 = vmul.f32 %v2712_v11, %v3008_v49  ;;  %v470_v17 = vmul.f32 %v2700_v8, %v3014_v51  ;;  %v3207_v34 = vadd.f32 %v446_v25, %v445_v22 }
  0x49   : > { %4322 = vst [vmem:[#allocation65_spill] sm:$0xff] %v3179_v20  ;;  %v4325_v40 = vld [vmem:[#allocation58_spill] sm:$0xff]  ;;  %v465_v35 = vmul.f32 %v4327_v46, %v4326_v15  ;;  %v467_v41 = vmul.f32 %v4328_v37, %v3068_v53  ;;  %v464_v36 = vadd.f32 %v463_v2, %v462_v4  ;;  %v472_v6 = vmul.f32 %v4327_v46, %v3048_v29 }
  0x4a   : > { %4323 = vst [vmem:[#allocation66_spill] sm:$0xff] %v3187_v32  ;;  %v460_v5 = vmul.f32 %v2696_v7, %v4325_v40  ;;  %v476_v39 = vmul.f32 %v2712_v11, %v3018_v56  ;;  %v477_v52 = vmul.f32 %v2700_v8, %v3021_v57  ;;  %v483_v47 = vmul.f32 %v2712_v11, %v3037_v21  ;;  %v3265_v32 = vld [vmem:[%s3000_s30 + $0x58] sm:$0xff] }
  0x4b   : > { %4324 = vst [vmem:[#allocation67_spill] sm:$0xff] %v3195_v33  ;;  %v484_v60 = vmul.f32 %v2700_v8, %v3045_v28  ;;  %v490_v30 = vmul.f32 %v4329_v61, %v3003_v44  ;;  %v491_v3 = vmul.f32 %v2696_v7, %v3011_v50  ;;  %v3229_v18 = vadd.f32 %v453_v13, %v452_v19  ;;  %v3248_v19 = vld [vmem:[%s3000_s30 + $0x20] sm:$0xff]  ;;  %v3262_v33 = vld [vmem:[%s3000_s30 + $0x28] sm:$0xff] }
  0x4c   : > { %v459_v27 = vadd.f32 %v458_v16, %v457_v63  ;;  %v471_v55 = vadd.f32 %v470_v17, %v469_v48  ;;  %v474_v1 = vmul.f32 %v4328_v37, %v3071_v58  ;;  %v497_v42 = vmul.f32 %v4329_v61, %v3008_v49  ;;  %v3251_v63 = vld [vmem:[%s3000_s30 + $0x50] sm:$0xff]  ;;  %4330 = vst [vmem:[#allocation50_spill] sm:$0xff] %v3265_v32 }
  0x4d   : > { %v498_v24 = vmul.f32 %v2696_v7, %v3014_v51  ;;  %v504_v22 = vmul.f32 %v4329_v61, %v3018_v56  ;;  %v505_v25 = vmul.f32 %v2696_v7, %v3021_v57  ;;  %v478_v4 = vadd.f32 %v477_v52, %v476_v39  ;;  %v3289_v57 = vld [vmem:[%s3000_s30 + $0x88] sm:$0xff] }
  0x4e   : > { %v479_v2 = vmul.f32 %v4327_v46, %v3055_v38  ;;  %v511_v13 = vmul.f32 %v4329_v61, %v3037_v21  ;;  %v512_v16 = vmul.f32 %v2696_v7, %v3045_v28  ;;  %v485_v48 = vadd.f32 %v484_v60, %v483_v47  ;;  %4333 = vst [vmem:[#allocation34_spill] sm:$0xff] %v3289_v57 }
  0x4f   : > { %v486_v17 = vmul.f32 %v4327_v46, %v3081_v62  ;;  %v492_v20 = vadd.f32 %v491_v3, %v490_v30  ;;  %v493_v39 = vmul.f32 %v4328_v37, %v4326_v15  ;;  %v466_v52 = vadd.f32 %v465_v35, %v464_v36  ;;  %v4331_v3 = vld [vmem:[#allocation36_spill] sm:$0xff] }
  0x50   : > { %v473_v26 = vadd.f32 %v472_v6, %v471_v55  ;;  %v481_v0 = vmul.f32 %v4328_v37, %v3074_v59  ;;  %v488_v54 = vmul.f32 %v4328_v37, %v4325_v40  ;;  %v499_v47 = vadd.f32 %v498_v24, %v497_v42  ;;  %v3278_v42 = vld [vmem:[%s3000_s30 + $0x80] sm:$0xff] }
  0x51   : > { %v500_v60 = vmul.f32 %v4328_v37, %v3048_v29  ;;  %v506_v30 = vadd.f32 %v505_v25, %v504_v22  ;;  %v507_v35 = vmul.f32 %v4328_v37, %v3055_v38  ;;  %v513_v36 = vadd.f32 %v512_v16, %v511_v13  ;;  %v4332_v22 = vld [vmem:[#allocation32_spill] sm:$0xff] }
  0x52   : > { %v514_v6 = vmul.f32 %v4328_v37, %v3081_v62  ;;  %v518_v55 = vmul.f32 %v4331_v3, %v3248_v19  ;;  %v519_v43 = vmul.f32 %v2716_v12, %v3251_v63  ;;  %v480_v24 = vadd.f32 %v479_v2, %v478_v4 }
  0x53   : > { %v487_v28 = vadd.f32 %v486_v17, %v485_v48  ;;  %v494_v21 = vadd.f32 %v493_v39, %v492_v20  ;;  %v495_v25 = vmul.f32 %v4332_v22, %v3068_v53  ;;  %v3282_v13 = vadd.f32 %v460_v5, %v459_v27  ;;  %v3298_v27 = vld [vmem:[%s3000_s30 + $0xb0] sm:$0xff]  ;;  %v3303_v39 = vld [vmem:[%s3000_s30 + $0xb8] sm:$0xff] }
  0x54   : > { %v468_v16 = vadd.f32 %v467_v41, %v466_v52  ;;  %v525_v62 = vmul.f32 %v4331_v3, %v3262_v33  ;;  %v526_v38 = vmul.f32 %v2716_v12, %v3265_v32  ;;  %v501_v56 = vadd.f32 %v500_v60, %v499_v47 }
  0x55   : > { %v502_v4 = vmul.f32 %v4332_v22, %v3071_v58  ;;  %v509_v20 = vmul.f32 %v4332_v22, %v3074_v59  ;;  %v516_v5 = vmul.f32 %v4332_v22, %v4325_v40  ;;  %v508_v41 = vadd.f32 %v507_v35, %v506_v30 }
  0x56   : > { %v515_v2 = vadd.f32 %v514_v6, %v513_v36  ;;  %v520_v48 = vadd.f32 %v519_v43, %v518_v55  ;;  %v521_v17 = vmul.f32 %v2712_v11, %v3278_v42  ;;  %v3305_v52 = vadd.f32 %v474_v1, %v473_v26 }
  0x57   : > { %v3307_v47 = vadd.f32 %v481_v0, %v480_v24  ;;  %v3309_v60 = vadd.f32 %v488_v54, %v487_v28  ;;  %v496_v3 = vadd.f32 %v495_v25, %v494_v21  ;;  %v527_v59 = vadd.f32 %v526_v38, %v525_v62 }
  0x58   : > { %v528_v40 = vmul.f32 %v2712_v11, %v3289_v57  ;;  %v532_v30 = vmul.f32 %v2716_v12, %v3248_v19  ;;  %v533_v43 = vmul.f32 %v2704_v9, %v3251_v63  ;;  %v3317_v35 = vadd.f32 %v502_v4, %v501_v56 }
  0x59   : > { %v3321_v26 = vmul.f32 %v4329_v61, %v3298_v27  ;;  %v539_v28 = vmul.f32 %v2716_v12, %v3262_v33  ;;  %v540_v21 = vmul.f32 %v2704_v9, %v3265_v32  ;;  %v3327_v38 = vadd.f32 %v509_v20, %v508_v41 }
  0x5a   : > { %v3329_v62 = vadd.f32 %v516_v5, %v515_v2  ;;  %v522_v54 = vadd.f32 %v521_v17, %v520_v48  ;;  %v530_v0 = vmul.f32 %v4329_v61, %v3303_v39  ;;  %v535_v56 = vmul.f32 %v2700_v8, %v3278_v42 }
  0x5b   : > { %v537_v1 = vmul.f32 %v2696_v7, %v3298_v27  ;;  %v574_v12 = vmul.f32 %v3130_v31, %v3003_v44  ;;  %v575_v9 = vmul.f32 %v3011_v50, %v3197_v45  ;;  %v529_v36 = vadd.f32 %v528_v40, %v527_v59 }
  0x5c   : > { %v534_v6 = vadd.f32 %v533_v43, %v532_v30  ;;  %v546_v55 = vmul.f32 %v2712_v11, %v3248_v19  ;;  %v547_v24 = vmul.f32 %v2700_v8, %v3251_v63  ;;  %v541_v25 = vadd.f32 %v540_v21, %v539_v28 }
  0x5d   : > { %v542_v4 = vmul.f32 %v2700_v8, %v3289_v57  ;;  %v582_v20 = vmul.f32 %v3133_v23, %v3003_v44  ;;  %v583_v31 = vmul.f32 %v3011_v50, %v3207_v34  ;;  %v553_v59 = vmul.f32 %v2712_v11, %v3262_v33 }
  0x5e   : > { %v554_v45 = vmul.f32 %v2700_v8, %v3265_v32  ;;  %v560_v40 = vmul.f32 %v4329_v61, %v3248_v19  ;;  %v561_v5 = vmul.f32 %v2696_v7, %v3251_v63  ;;  %v567_v41 = vmul.f32 %v4329_v61, %v3262_v33 }
  0x5f   : > { %v568_v2 = vmul.f32 %v2696_v7, %v3265_v32  ;;  %v576_v48 = vadd.f32 %v575_v9, %v574_v12  ;;  %v577_v17 = vmul.f32 %v4326_v15, %v468_v16  ;;  %v536_v30 = vadd.f32 %v535_v56, %v534_v6 }
  0x60   : > { %v544_v11 = vmul.f32 %v2696_v7, %v3303_v39  ;;  %v548_v8 = vadd.f32 %v547_v24, %v546_v55  ;;  %v549_v43 = vmul.f32 %v4327_v46, %v3278_v42  ;;  %v584_v28 = vadd.f32 %v583_v31, %v582_v20 }
  0x61   : > { %v585_v21 = vmul.f32 %v4326_v15, %v3305_v52  ;;  %v590_v61 = vmul.f32 %v3183_v10, %v3003_v44  ;;  %v591_v12 = vmul.f32 %v3011_v50, %v3229_v18  ;;  %v555_v9 = vadd.f32 %v554_v45, %v553_v59 }
  0x62   : > { %v556_v16 = vmul.f32 %v4327_v46, %v3289_v57  ;;  %v562_v56 = vadd.f32 %v561_v5, %v560_v40  ;;  %v563_v7 = vmul.f32 %v4328_v37, %v3278_v42  ;;  %v569_v6 = vadd.f32 %v568_v2, %v567_v41 }
  0x63   : > { %v570_v55 = vmul.f32 %v4328_v37, %v3289_v57  ;;  %v578_v24 = vadd.f32 %v577_v17, %v576_v48  ;;  %v579_v20 = vmul.f32 %v3068_v53, %v496_v3  ;;  %v543_v31 = vadd.f32 %v542_v4, %v541_v25 }
  0x64   : > { %v551_v32 = vmul.f32 %v4328_v37, %v3298_v27  ;;  %v598_v59 = vmul.f32 %v3189_v14, %v3003_v44  ;;  %v599_v46 = vmul.f32 %v3011_v50, %v3282_v13  ;;  %v586_v45 = vadd.f32 %v585_v21, %v584_v28 }
  0x65   : > { %v587_v40 = vmul.f32 %v3068_v53, %v3317_v35  ;;  %v592_v5 = vadd.f32 %v591_v12, %v590_v61  ;;  %v593_v41 = vmul.f32 %v4326_v15, %v3307_v47  ;;  %v550_v2 = vadd.f32 %v549_v43, %v548_v8 }
  0x66   : > { %v557_v3 = vadd.f32 %v556_v16, %v555_v9  ;;  %v558_v25 = vmul.f32 %v4328_v37, %v3303_v39  ;;  %v565_v4 = vmul.f32 %v4332_v22, %v3298_v27  ;;  %v564_v48 = vadd.f32 %v563_v7, %v562_v56 }
  0x67   : > { %v571_v17 = vadd.f32 %v570_v55, %v569_v6  ;;  %v572_v28 = vmul.f32 %v4332_v22, %v3303_v39  ;;  %v580_v21 = vadd.f32 %v579_v20, %v578_v24  ;;  %v600_v57 = vadd.f32 %v599_v46, %v598_v59 }
  0x68   : > { %v601_v61 = vmul.f32 %v4326_v15, %v3309_v60  ;;  %v606_v8 = vmul.f32 %v3008_v49, %v3133_v23  ;;  %v607_v43 = vmul.f32 %v3014_v51, %v3207_v34  ;;  %v3404_v37 = vadd.f32 %v3321_v26, %v522_v54  ;;  %v4334_v54 = vld [vmem:[#allocation37_spill] sm:$0xff] }
  0x69   : > { %v588_v12 = vadd.f32 %v587_v40, %v586_v45  ;;  %v594_v9 = vadd.f32 %v593_v41, %v592_v5  ;;  %v595_v16 = vmul.f32 %v3068_v53, %v3327_v38  ;;  %v3408_v22 = vadd.f32 %v530_v0, %v529_v36  ;;  %v4338_v45 = vld [vmem:[#allocation47_spill] sm:$0xff] }
  0x6a   : > { %v3410_v56 = vadd.f32 %v537_v1, %v536_v30  ;;  %v3412_v7 = vadd.f32 %v544_v11, %v543_v31  ;;  %v3414_v6 = vadd.f32 %v551_v32, %v550_v2  ;;  %v3416_v23 = vadd.f32 %v558_v25, %v557_v3  ;;  %v4336_v30 = vld [vmem:[#allocation38_spill] sm:$0xff] }
  0x6b   : > { %v3418_v55 = vadd.f32 %v565_v4, %v564_v48  ;;  %v3420_v34 = vadd.f32 %v572_v28, %v571_v17  ;;  %v603_v26 = vmul.f32 %v3068_v53, %v3329_v62  ;;  %v3425_v24 = vadd.f32 %v580_v21, %v4334_v54  ;;  %v4340_v4 = vld [vmem:[#allocation49_spill] sm:$0xff] }
  0x6c   : > { %v602_v0 = vadd.f32 %v601_v61, %v600_v57  ;;  %v608_v36 = vadd.f32 %v607_v43, %v606_v8  ;;  %v609_v1 = vmul.f32 %v3048_v29, %v3305_v52  ;;  %v3430_v32 = vadd.f32 %v4336_v30, %v588_v12  ;;  %v4344_v30 = vld [vmem:[#allocation54_spill] sm:$0xff] }
  0x6d   : > { %4335 = vst [vmem:[#allocation33_spill] sm:$0xff] %v3425_v24  ;;  %v596_v11 = vadd.f32 %v595_v16, %v594_v9  ;;  %v611_v20 = vmul.f32 %v3071_v58, %v3317_v35  ;;  %v614_v31 = vmul.f32 %v3008_v49, %v3183_v10  ;;  %v615_v59 = vmul.f32 %v3014_v51, %v3229_v18  ;;  %v4339_v35 = vld [vmem:[#allocation48_spill] sm:$0xff] }
  0x6e   : > { %4337 = vst [vmem:[#allocation35_spill] sm:$0xff] %v3430_v32  ;;  %v617_v57 = vmul.f32 %v3048_v29, %v3307_v47  ;;  %v622_v46 = vmul.f32 %v3008_v49, %v3189_v14  ;;  %v623_v52 = vmul.f32 %v3014_v51, %v3282_v13  ;;  %v630_v40 = vmul.f32 %v4338_v45, %v3183_v10  ;;  %v4341_v10 = vld [vmem:[#allocation51_spill] sm:$0xff] }
  0x6f   : > { %v631_v5 = vmul.f32 %v4339_v35, %v3229_v18  ;;  %v718_v41 = vmul.f32 %v3248_v19, %v3404_v37  ;;  %v719_v2 = vmul.f32 %v3251_v63, %v3410_v56  ;;  %v638_v3 = vmul.f32 %v4338_v45, %v3189_v14 }
  0x70   : > { %v639_v25 = vmul.f32 %v4339_v35, %v3282_v13  ;;  %v646_v48 = vmul.f32 %v4340_v4, %v3189_v14  ;;  %v647_v17 = vmul.f32 %v4341_v10, %v3282_v13  ;;  %v604_v28 = vadd.f32 %v603_v26, %v602_v0  ;;  %v4343_v14 = vld [vmem:[#allocation52_spill] sm:$0xff] }
  0x71   : > { %v610_v18 = vadd.f32 %v609_v1, %v608_v36  ;;  %v720_v21 = vadd.f32 %v719_v2, %v718_v41  ;;  %v721_v61 = vmul.f32 %v3278_v42, %v3414_v6  ;;  %v616_v8 = vadd.f32 %v615_v59, %v614_v31  ;;  %v4345_v59 = vld [vmem:[#allocation39_spill] sm:$0xff] }
  0x72   : > { %v3464_v43 = vmul.f32 %v3071_v58, %v3327_v38  ;;  %v624_v12 = vadd.f32 %v623_v52, %v622_v46  ;;  %v625_v9 = vmul.f32 %v3048_v29, %v3309_v60  ;;  %v632_v16 = vadd.f32 %v631_v5, %v630_v40  ;;  %v4347_v52 = vld [vmem:[#allocation40_spill] sm:$0xff] }
  0x73   : > { %v633_v54 = vmul.f32 %v4343_v14, %v3307_v47  ;;  %v654_v13 = vmul.f32 %v3404_v37, %v3003_v44  ;;  %v655_v26 = vmul.f32 %v3011_v50, %v3410_v56  ;;  %v640_v0 = vadd.f32 %v639_v25, %v638_v3 }
  0x74   : > { %4342 = vst [vmem:[#allocation36_spill] sm:$0xff] %v3464_v43  ;;  %v641_v36 = vmul.f32 %v4343_v14, %v3309_v60  ;;  %v648_v1 = vadd.f32 %v647_v17, %v646_v48  ;;  %v649_v31 = vmul.f32 %v4344_v30, %v3309_v60  ;;  %v3479_v46 = vadd.f32 %v4345_v59, %v596_v11  ;;  %v4352_v60 = vld [vmem:[#allocation53_spill] sm:$0xff] }
  0x75   : > { %v3482_v40 = vadd.f32 %v4347_v52, %v604_v28  ;;  %v722_v47 = vadd.f32 %v721_v61, %v720_v21  ;;  %v723_v5 = vmul.f32 %v3298_v27, %v3418_v55  ;;  %v3486_v41 = vadd.f32 %v611_v20, %v610_v18  ;;  %v4359_v21 = vld [vmem:[#allocation58_spill] sm:$0xff]  ;;  %v4367_v43 = vld [vmem:[#allocation29_spill] sm:$0xff] }
  0x76   : > { %4346 = vst [vmem:[#allocation32_spill] sm:$0xff] %v3479_v46  ;;  %v3488_v2 = vadd.f32 %v617_v57, %v616_v8  ;;  %v3492_v3 = vmul.f32 %v3071_v58, %v3329_v62  ;;  %v3496_v25 = vmul.f32 %v4352_v60, %v3327_v38  ;;  %v3498_v11 = vadd.f32 %v625_v9, %v624_v12  ;;  %v4362_v46 = vld [vmem:[#allocation50_spill] sm:$0xff] }
  0x77   : > { %4348 = vst [vmem:[#allocation37_spill] sm:$0xff] %v3482_v40  ;;  %v3502_v48 = vmul.f32 %v4352_v60, %v3329_v62  ;;  %v656_v17 = vadd.f32 %v655_v26, %v654_v13  ;;  %v657_v20 = vmul.f32 %v4326_v15, %v3414_v6  ;;  %v3506_v57 = vadd.f32 %v633_v54, %v632_v16 }
  0x78   : > { %4349 = vst [vmem:[#allocation38_spill] sm:$0xff] %v3486_v41  ;;  %v3508_v28 = vadd.f32 %v641_v36, %v640_v0  ;;  %v3510_v18 = vadd.f32 %v649_v31, %v648_v1  ;;  %v3514_v38 = vmul.f32 %v4359_v21, %v3329_v62  ;;  %v659_v61 = vmul.f32 %v3068_v53, %v3418_v55 }
  0x79   : > { %4350 = vst [vmem:[#allocation47_spill] sm:$0xff] %v3488_v2  ;;  %v724_v8 = vadd.f32 %v723_v5, %v722_v47  ;;  %v726_v12 = vmul.f32 %v3248_v19, %v3408_v22  ;;  %v727_v9 = vmul.f32 %v3251_v63, %v3412_v7  ;;  %v662_v16 = vmul.f32 %v3408_v22, %v3003_v44  ;;  %v4361_v5 = vld [vmem:[#allocation59_spill] sm:$0xff] }
  0x7a   : > { %4351 = vst [vmem:[#allocation48_spill] sm:$0xff] %v3492_v3  ;;  %v663_v54 = vmul.f32 %v3011_v50, %v3412_v7  ;;  %v670_v62 = vmul.f32 %v3008_v49, %v3404_v37  ;;  %v671_v13 = vmul.f32 %v3014_v51, %v3410_v56  ;;  %v658_v26 = vadd.f32 %v657_v20, %v656_v17 }
  0x7b   : > { %4353 = vst [vmem:[#allocation49_spill] sm:$0xff] %v3496_v25  ;;  %v665_v0 = vmul.f32 %v4326_v15, %v3416_v23  ;;  %v678_v36 = vmul.f32 %v3008_v49, %v3408_v22  ;;  %v679_v1 = vmul.f32 %v3014_v51, %v3412_v7  ;;  %v667_v31 = vmul.f32 %v3068_v53, %v3420_v34  ;;  %v4364_v25 = vld [vmem:[#allocation31_spill] sm:$0xff] }
  0x7c   : > { %4354 = vst [vmem:[#allocation51_spill] sm:$0xff] %v3498_v11  ;;  %v686_v59 = vmul.f32 %v4338_v45, %v3404_v37  ;;  %v687_v52 = vmul.f32 %v4339_v35, %v3410_v56  ;;  %v729_v47 = vmul.f32 %v3278_v42, %v3416_v23  ;;  %v725_v17 = vadd.f32 %v4361_v5, %v724_v8 }
  0x7d   : > { %4355 = vst [vmem:[#allocation52_spill] sm:$0xff] %v3502_v48  ;;  %v728_v20 = vadd.f32 %v727_v9, %v726_v12  ;;  %v734_v40 = vmul.f32 %v3262_v33, %v3408_v22  ;;  %v735_v32 = vmul.f32 %v4362_v46, %v3412_v7  ;;  %v664_v24 = vadd.f32 %v663_v54, %v662_v16 }
  0x7e   : > { %4356 = vst [vmem:[#allocation54_spill] sm:$0xff] %v3506_v57  ;;  %v672_v41 = vadd.f32 %v671_v13, %v670_v62  ;;  %v660_v48 = vadd.f32 %v659_v61, %v658_v26  ;;  %v681_v8 = vmul.f32 %v3048_v29, %v3416_v23  ;;  %v689_v12 = vmul.f32 %v4343_v14, %v3414_v6  ;;  %v4363_v61 = vld [vmem:[#allocation34_spill] sm:$0xff]  ;;  %v4366_v57 = vld [vmem:[#allocation41_spill] sm:$0xff] }
  0x7f   : > { %4357 = vst [vmem:[#allocation39_spill] sm:$0xff] %v3508_v28  ;;  %v680_v28 = vadd.f32 %v679_v1, %v678_v36  ;;  %v688_v9 = vadd.f32 %v687_v52, %v686_v59  ;;  %v702_v5 = vmul.f32 %v4340_v4, %v3404_v37  ;;  %v703_v16 = vmul.f32 %v4341_v10, %v3410_v56  ;;  %v4365_v52 = vld [vmem:[#allocation30_spill] sm:$0xff] }
  0x80   : > { %4358 = vst [vmem:[#allocation40_spill] sm:$0xff] %v3510_v18  ;;  %v675_v18 = vmul.f32 %v3071_v58, %v3418_v55  ;;  %v731_v54 = vmul.f32 %v3298_v27, %v3420_v34  ;;  %v730_v62 = vadd.f32 %v729_v47, %v728_v20  ;;  %v736_v13 = vadd.f32 %v735_v32, %v734_v40 }
  0x81   : > { %4360 = vst [vmem:[#allocation53_spill] sm:$0xff] %v3514_v38  ;;  %v673_v38 = vmul.f32 %v3048_v29, %v3414_v6  ;;  %v737_v26 = vmul.f32 %v4363_v61, %v3416_v23  ;;  %2289 = vrcp.f32 %v725_v17  ;;  %v666_v36 = vadd.f32 %v665_v0, %v664_v24 }
  0x82   : > { %v774_v59 = vmul.f32 %v4364_v25, %v3248_v19  ;;  %v775_v37 = vmul.f32 %v4365_v52, %v3251_v63  ;;  %v3570_v3 = vadd.f32 %v4366_v57, %v660_v48  ;;  %v683_v56 = vmul.f32 %v3071_v58, %v3420_v34 }
  0x83   : > { %v674_v1 = vadd.f32 %v673_v38, %v672_v41  ;;  %v694_v32 = vmul.f32 %v4338_v45, %v3408_v22  ;;  %v695_v40 = vmul.f32 %v4339_v35, %v3412_v7  ;;  %v682_v24 = vadd.f32 %v681_v8, %v680_v28 }
  0x84   : > { %v691_v41 = vmul.f32 %v4352_v60, %v3418_v55  ;;  %v704_v19 = vadd.f32 %v703_v16, %v702_v5  ;;  %v705_v63 = vmul.f32 %v4344_v30, %v3414_v6  ;;  %v690_v38 = vadd.f32 %v689_v12, %v688_v9 }
  0x85   : > { %v732_v48 = vadd.f32 %v731_v54, %v730_v62  ;;  %v738_v57 = vadd.f32 %v737_v26, %v736_v13  ;;  %v739_v0 = vmul.f32 %v3303_v39, %v3420_v34  ;;  %v668_v47 = vadd.f32 %v667_v31, %v666_v36  ;;  %v4368_v62 = vld [vmem:[#allocation60_spill] sm:$0xff] }
  0x86   : > { %v676_v20 = vadd.f32 %v675_v18, %v674_v1  ;;  %v776_v11 = vadd.f32 %v775_v37, %v774_v59  ;;  %v777_v2 = vmul.f32 %v4367_v43, %v3278_v42  ;;  %v696_v8 = vadd.f32 %v695_v40, %v694_v32  ;;  %v4369_v26 = vld [vmem:[#allocation28_spill] sm:$0xff]  ;;  %v4370_v32 = vld [vmem:[#allocation43_spill] sm:$0xff] }
  0x87   : > { %v2290_v28 = vpop.eup %2289  ;;  %v697_v5 = vmul.f32 %v4343_v14, %v3416_v23  ;;  %v710_v6 = vmul.f32 %v4340_v4, %v3408_v22  ;;  %v711_v12 = vmul.f32 %v4341_v10, %v3412_v7  ;;  %v684_v9 = vadd.f32 %v683_v56, %v682_v24  ;;  %v4372_v24 = vld [vmem:[#allocation44_spill] sm:$0xff] }
  0x88   : > { %v706_v16 = vadd.f32 %v705_v63, %v704_v19  ;;  %v707_v18 = vmul.f32 %v4359_v21, %v3418_v55  ;;  %v791_v31 = vmul.f32 %v2290_v28, %v725_v17  ;;  %v692_v54 = vadd.f32 %v691_v41, %v690_v38  ;;  %v4374_v38 = vld [vmem:[#allocation61_spill] sm:$0xff] }
  0x89   : > { %v3595_v42 = vadd.f32 %v4368_v62, %v732_v48  ;;  %v740_v13 = vadd.f32 %v739_v0, %v738_v57  ;;  %v779_v36 = vmul.f32 %v4369_v26, %v3298_v27  ;;  %v778_v1 = vadd.f32 %v777_v2, %v776_v11  ;;  %v4371_v27 = vld [vmem:[#allocation42_spill] sm:$0xff] }
  0x8a   : > { %v782_v22 = vmul.f32 %v4364_v25, %v3262_v33  ;;  %v783_v7 = vmul.f32 %v4365_v52, %v4362_v46  ;;  %v792_v59 = vsub.f32 2.0, %v791_v31  ;;  %v698_v37 = vadd.f32 %v697_v5, %v696_v8  ;;  %v4373_v46 = vld [vmem:[#allocation45_spill] sm:$0xff]  ;;  %v4376_v31 = vld [vmem:[#allocation66_spill] sm:$0xff] }
  0x8b   : > { %v699_v55 = vmul.f32 %v4352_v60, %v3420_v34  ;;  %v712_v17 = vadd.f32 %v711_v12, %v710_v6  ;;  %v713_v56 = vmul.f32 %v4344_v30, %v3416_v23  ;;  %v3608_v40 = vadd.f32 %v4370_v32, %v668_v47  ;;  %v4375_v6 = vld [vmem:[#allocation56_spill] sm:$0xff] }
  0x8c   : > { %v3611_v2 = vadd.f32 %v4371_v27, %v676_v20  ;;  %v708_v11 = vadd.f32 %v707_v18, %v706_v16  ;;  %v793_v33 = vmul.f32 %v2290_v28, %v792_v59  ;;  %v3614_v41 = vadd.f32 %v4372_v24, %v684_v9  ;;  %v4377_v59 = vld [vmem:[#allocation46_spill] sm:$0xff] }
  0x8d   : > { %v3617_v19 = vadd.f32 %v4373_v46, %v692_v54  ;;  %v715_v63 = vmul.f32 %v4359_v21, %v3420_v34  ;;  %v741_v48 = vadd.f32 %v4374_v38, %v740_v13  ;;  %v780_v23 = vadd.f32 %v779_v36, %v778_v1 }
  0x8e   : > { %v784_v57 = vadd.f32 %v783_v7, %v782_v22  ;;  %v785_v0 = vmul.f32 %v4367_v43, %v4363_v61  ;;  %v3625_v47 = vmul.f32 %v793_v33, %v3595_v42  ;;  %v700_v20 = vadd.f32 %v699_v55, %v698_v37  ;;  %v4378_v55 = vld [vmem:[#allocation57_spill] sm:$0xff] }
  0x8f   : > { %v714_v28 = vadd.f32 %v713_v56, %v712_v17  ;;  %v742_v8 = vmul.f32 %v4364_v25, %v3003_v44  ;;  %v743_v5 = vmul.f32 %v4365_v52, %v3011_v50  ;;  %v3632_v34 = vadd.f32 %v4375_v6, %v708_v11  ;;  %v4384_v6 = vld [vmem:[#allocation54_spill] sm:$0xff] }
  0x90   : > { %v750_v12 = vmul.f32 %v4364_v25, %v3008_v49  ;;  %v751_v61 = vmul.f32 %v4365_v52, %v3014_v51  ;;  %v800_v9 = vmul.f32 %v3625_v47, %v3595_v42  ;;  %v758_v16 = vmul.f32 %v4364_v25, %v4338_v45 }
  0x91   : > { %v759_v44 = vmul.f32 %v4365_v52, %v4339_v35  ;;  %v766_v50 = vmul.f32 %v4364_v25, %v4340_v4  ;;  %v767_v18 = vmul.f32 %v4365_v52, %v4341_v10  ;;  %v781_v49 = vadd.f32 %v780_v23, %v4376_v31 }
  0x92   : > { %v786_v54 = vadd.f32 %v785_v0, %v784_v57  ;;  %v787_v51 = vmul.f32 %v4369_v26, %v3303_v39  ;;  %v801_v62 = vsub.f32 %v741_v48, %v800_v9  ;;  %v716_v13 = vadd.f32 %v715_v63, %v714_v28  ;;  %v4379_v48 = vld [vmem:[#allocation67_spill] sm:$0xff]  ;;  %v4381_v0 = vld [vmem:[#allocation36_spill] sm:$0xff] }
  0x93   : > { %v744_v36 = vadd.f32 %v743_v5, %v742_v8  ;;  %v745_v45 = vmul.f32 %v4367_v43, %v4326_v15  ;;  %v753_v35 = vmul.f32 %v4367_v43, %v3048_v29  ;;  %v752_v1 = vadd.f32 %v751_v61, %v750_v12  ;;  %v4380_v57 = vld [vmem:[#allocation47_spill] sm:$0xff]  ;;  %v4383_v8 = vld [vmem:[#allocation48_spill] sm:$0xff]  ;;  %v4385_v12 = vld [vmem:[#allocation49_spill] sm:$0xff] }
  0x94   : > { %v761_v4 = vmul.f32 %v4367_v43, %v4343_v14  ;;  %v3658_v10 = vmul.f32 %v793_v33, %v3570_v3  ;;  %2291 = vrcp.f32 %v801_v62  ;;  %v760_v25 = vadd.f32 %v759_v44, %v758_v16  ;;  %v4382_v28 = vld [vmem:[#allocation51_spill] sm:$0xff]  ;;  %v4387_v44 = vld [vmem:[#allocation52_spill] sm:$0xff] }
  0x95   : > { %v3661_v39 = vmul.f32 %v793_v33, %v3611_v2  ;;  %v3664_v52 = vmul.f32 %v793_v33, %v3617_v19  ;;  %v3667_v15 = vmul.f32 %v793_v33, %v3632_v34  ;;  %v768_v22 = vadd.f32 %v767_v18, %v766_v50  ;;  %v4386_v16 = vld [vmem:[#allocation39_spill] sm:$0xff]  ;;  %v4389_v50 = vld [vmem:[#allocation53_spill] sm:$0xff] }
  0x96   : > { %v769_v29 = vmul.f32 %v4367_v43, %v4344_v30  ;;  %v788_v7 = vadd.f32 %v787_v51, %v786_v54  ;;  %v3671_v14 = vmul.f32 %v793_v33, %v781_v49  ;;  %v3674_v37 = vadd.f32 %v4377_v59, %v700_v20 }
  0x97   : > { %v3677_v17 = vadd.f32 %v4378_v55, %v716_v13  ;;  %v747_v56 = vmul.f32 %v4369_v26, %v3068_v53  ;;  %v755_v32 = vmul.f32 %v4369_v26, %v3071_v58  ;;  %v746_v27 = vadd.f32 %v745_v45, %v744_v36 }
  0x98   : > { %v754_v11 = vadd.f32 %v753_v35, %v752_v1  ;;  %v763_v43 = vmul.f32 %v4369_v26, %v4352_v60  ;;  %v802_v30 = vmul.f32 %v3658_v10, %v3595_v42  ;;  %v762_v33 = vadd.f32 %v761_v4, %v760_v25  ;;  %v2293_v1 = vld [vmem:[%s2944_s27 + $0x38] sm:$0xff]  ;;  %v4390_v4 = vld [vmem:[#allocation38_spill] sm:$0xff] }
  0x99   : > { %v804_v24 = vmul.f32 %v3661_v39, %v3595_v42  ;;  %v806_v46 = vmul.f32 %v3664_v52, %v3595_v42  ;;  %v808_v53 = vmul.f32 %v3667_v15, %v3595_v42  ;;  %v770_v58 = vadd.f32 %v769_v29, %v768_v22  ;;  %v2294_v22 = vld [vmem:[%s2944_s27 + $0x40] sm:$0xff] }
  0x9a   : > { %v2292_v63 = vpop.eup %2291  ;;  %v771_v38 = vmul.f32 %v4369_v26, %v4359_v21  ;;  %v789_v60 = vadd.f32 %v788_v7, %v4379_v48  ;;  %v810_v23 = vmul.f32 %v3671_v14, %v3595_v42  ;;  %v620_v20 = vadd.f32 %v4381_v0, %v4380_v57  ;;  %v4388_v26 = vld [vmem:[#allocation40_spill] sm:$0xff]  ;;  %v2295_v7 = vld [vmem:[%s2944_s27 + $0x48] sm:$0xff]  ;;  %v4395_v57 = vld [vmem:[#allocation65_spill] sm:$0xff] }
  0x9b   : > { %v628_v5 = vadd.f32 %v4383_v8, %v4382_v28  ;;  %v636_v61 = vadd.f32 %v4385_v12, %v4384_v6  ;;  %v813_v9 = vmul.f32 %v2292_v63, %v801_v62  ;;  %v644_v21 = vadd.f32 %v4387_v44, %v4386_v16  ;;  %v4393_v48 = vld [vmem:[#allocation63_spill] sm:$0xff] }
  0x9c   : > { %v652_v18 = vadd.f32 %v4389_v50, %v4388_v26  ;;  %v748_v42 = vadd.f32 %v747_v56, %v746_v27  ;;  %v803_v31 = vsub.f32 %v3608_v40, %v802_v30  ;;  %v805_v49 = vsub.f32 %v3614_v41, %v804_v24  ;;  %v2296_v56 = vld [vmem:[%s2944_s27 + $0x70] sm:$0xff]  ;;  %v2297_v30 = vld [vmem:[%s2944_s27 + $0x78] sm:$0xff] }
  0x9d   : > { %v807_v54 = vsub.f32 %v3674_v37, %v806_v46  ;;  %v809_v51 = vsub.f32 %v3677_v17, %v808_v53  ;;  %v814_v62 = vsub.f32 2.0, %v813_v9  ;;  %v756_v13 = vadd.f32 %v755_v32, %v754_v11  ;;  %v4391_v11 = vld [vmem:[#allocation55_spill] sm:$0xff] }
  0x9e   : > { %v764_v36 = vadd.f32 %v763_v43, %v762_v33  ;;  %v772_v45 = vadd.f32 %v771_v38, %v770_v58  ;;  %v811_v35 = vsub.f32 %v789_v60, %v810_v23  ;;  %v3714_v25 = vadd.f32 %v2293_v1, %v4390_v4  ;;  %v4392_v33 = vld [vmem:[#allocation62_spill] sm:$0xff] }
  0x9f   : > { %v3717_v29 = vadd.f32 %v2294_v22, %v620_v20  ;;  %v3720_v59 = vadd.f32 %v2295_v7, %v628_v5  ;;  %v815_v55 = vmul.f32 %v2292_v63, %v814_v62  ;;  %v3724_v27 = vadd.f32 %v2296_v56, %v636_v61  ;;  %v4394_v63 = vld [vmem:[#allocation64_spill] sm:$0xff] }
  0xa0   : > { %v3727_v32 = vadd.f32 %v2297_v30, %v644_v21  ;;  %v3730_v43 = vadd.f32 %v4391_v11, %v652_v18  ;;  %v3733_v24 = vadd.f32 %v748_v42, %v4392_v33  ;;  %v3736_v60 = vadd.f32 %v756_v13, %v4393_v48  ;;  %v4398_v48 = vld [vmem:[#allocation32_spill] sm:$0xff] }
  0xa1   : > { %v816_v46 = vmul.f32 %v815_v55, %v803_v31  ;;  %v817_v53 = vmul.f32 %v815_v55, %v805_v49  ;;  %v818_v58 = vmul.f32 %v815_v55, %v807_v54  ;;  %v819_v38 = vmul.f32 %v815_v55, %v809_v51 }
  0xa2   : > { %v3739_v23 = vadd.f32 %v764_v36, %v4394_v63  ;;  %v3742_v0 = vadd.f32 %v772_v45, %v4395_v57  ;;  %v820_v20 = vmul.f32 %v815_v55, %v811_v35  ;;  %v4399_v57 = vld [vmem:[#allocation37_spill] sm:$0xff] }
  0xa3   : > { %v821_v28 = vmul.f32 %v816_v46, %v3625_v47  ;;  %v823_v8 = vmul.f32 %v817_v53, %v3625_v47  ;;  %v825_v5 = vmul.f32 %v818_v58, %v3625_v47  ;;  %v827_v6 = vmul.f32 %v819_v38, %v3625_v47 }
  0xa4   : > { %v829_v12 = vmul.f32 %v820_v20, %v3625_v47  ;;  %v835_v61 = vsub.f32 0.0, %v816_v46  ;;  %v836_v9 = vsub.f32 0.0, %v817_v53  ;;  %v837_v16 = vsub.f32 0.0, %v818_v58  ;;  %v4396_v58 = vld [vmem:[#allocation33_spill] sm:$0xff] }
  0xa5   : > { %v822_v44 = vsub.f32 %v3658_v10, %v821_v28  ;;  %v824_v21 = vsub.f32 %v3661_v39, %v823_v8  ;;  %v826_v26 = vsub.f32 %v3664_v52, %v825_v5  ;;  %v828_v50 = vsub.f32 %v3667_v15, %v827_v6 }
  0xa6   : > { %v830_v18 = vsub.f32 %v3671_v14, %v829_v12  ;;  %v838_v42 = vsub.f32 0.0, %v819_v38  ;;  %v3754_v31 = vsub.f32 0.0, %v820_v20  ;;  %2007 = vst [vmem:[%s3756_s0 + $0x28] sm:$0xff] %v835_v61  ;;  %v872_v47 = vmul.f32 %v835_v61, %v3608_v40  ;;  %v4397_v38 = vld [vmem:[#allocation35_spill] sm:$0xff] }
  0xa7   : > { %v831_v10 = vsub.f32 0.0, %v822_v44  ;;  %v832_v39 = vsub.f32 0.0, %v824_v21  ;;  %v833_v52 = vsub.f32 0.0, %v826_v26  ;;  %v834_v49 = vsub.f32 0.0, %v828_v50  ;;  %2008 = vst [vmem:[%s3756_s0 + $0x30] sm:$0xff] %v836_v9 }
  0xa8   : > { %v839_v15 = vsub.f32 0.0, %v830_v18  ;;  %2009 = vst [vmem:[%s3756_s0 + $0x38] sm:$0xff] %v837_v16  ;;  %v876_v14 = vmul.f32 %v836_v9, %v3608_v40  ;;  %v880_v54 = vmul.f32 %v837_v16, %v3608_v40  ;;  %v884_v51 = vmul.f32 %v838_v42, %v3608_v40 }
  0xa9   : > { %843 = vst [vmem:[%s3756_s0] sm:$0xff] %v831_v10  ;;  %v871_v62 = vmul.f32 %v831_v10, %v3570_v3  ;;  %v875_v13 = vmul.f32 %v832_v39, %v3570_v3  ;;  %v879_v36 = vmul.f32 %v833_v52, %v3570_v3  ;;  %v883_v45 = vmul.f32 %v834_v49, %v3570_v3 }
  0xaa   : > { %2003 = vst [vmem:[%s3756_s0 + $0x8] sm:$0xff] %v832_v39  ;;  %v887_v35 = vmul.f32 %v832_v39, %v3611_v2  ;;  %v888_v1 = vmul.f32 %v836_v9, %v3614_v41  ;;  %v891_v4 = vmul.f32 %v833_v52, %v3611_v2  ;;  %v892_v22 = vmul.f32 %v837_v16, %v3614_v41 }
  0xab   : > { %2004 = vst [vmem:[%s3756_s0 + $0x10] sm:$0xff] %v833_v52  ;;  %v873_v7 = vadd.f32 %v872_v47, %v871_v62  ;;  %v877_v55 = vadd.f32 %v876_v14, %v875_v13  ;;  %v881_v56 = vadd.f32 %v880_v54, %v879_v36  ;;  %v885_v30 = vadd.f32 %v884_v51, %v883_v45 }
  0xac   : > { %2005 = vst [vmem:[%s3756_s0 + $0x18] sm:$0xff] %v834_v49  ;;  %v889_v11 = vadd.f32 %v888_v1, %v887_v35  ;;  %v893_v33 = vadd.f32 %v892_v22, %v891_v4  ;;  %v895_v46 = vmul.f32 %v834_v49, %v3611_v2  ;;  %v896_v53 = vmul.f32 %v838_v42, %v3614_v41 }
  0xad   : > { %2006 = vst [vmem:[%s3756_s0 + $0x20] sm:$0xff] %v839_v15  ;;  %v874_v13 = vadd.f32 %v873_v7, %v4396_v58   ;;  %v878_v12 = vadd.f32 %v877_v55, %v4397_v38   ;;  %v882_v63 = vadd.f32 %v881_v56, %v4398_v48   ;;  %v886_v10 = vadd.f32 %v885_v30, %v4399_v57  }
  0xae   : > { %2010 = vst [vmem:[%s3756_s0 + $0x40] sm:$0xff] %v838_v42  ;;  %v890_v9 = vadd.f32 %v889_v11, %v3714_v25   ;;  %v894_v8 = vadd.f32 %v893_v33, %v3717_v29   ;;  %v897_v20 = vadd.f32 %v896_v53, %v895_v46  ;;  %v899_v28 = vmul.f32 %v833_v52, %v3617_v19 }
  0xaf   : > { %2011 = vst [vmem:[%s3756_s0 + $0x48] sm:$0xff] %v3754_v31  ;;  %v900_v5 = vmul.f32 %v837_v16, %v3674_v37  ;;  %v903_v6 = vmul.f32 %v834_v49, %v3617_v19  ;;  %v904_v61 = vmul.f32 %v838_v42, %v3674_v37  ;;  %v907_v44 = vmul.f32 %v834_v49, %v3632_v34  ;;  %v941_v49 = vld [vmem:[#allocation3 + $0x18] sm:$0xff] (%p3816_p0) }
  0xb0   : > { %v898_v7 = vadd.f32 %v897_v20, %v3720_v59   ;;  %v908_v21 = vmul.f32 %v838_v42, %v3677_v17  ;;  %v911_v25 = vmul.f32 %v839_v15, %v3570_v3  ;;  %v912_v29 = vmul.f32 %v3754_v31, %v3608_v40 }
  0xb1   : > { %v901_v26 = vadd.f32 %v900_v5, %v899_v28  ;;  %v905_v50 = vadd.f32 %v904_v61, %v903_v6  ;;  %v915_v18 = vmul.f32 %v839_v15, %v3611_v2  ;;  %v916_v16 = vmul.f32 %v3754_v31, %v3614_v41 }
  0xb2   : > { %v909_v47 = vadd.f32 %v908_v21, %v907_v44  ;;  %v913_v39 = vadd.f32 %v912_v29, %v911_v25  ;;  %v919_v52 = vmul.f32 %v839_v15, %v3617_v19  ;;  %v920_v59 = vmul.f32 %v3754_v31, %v3674_v37 }
  0xb3   : > { %v902_v6 = vadd.f32 %v901_v26, %v3724_v27   ;;  %v906_v5 = vadd.f32 %v905_v50, %v3727_v32   ;;  %v917_v3 = vadd.f32 %v916_v16, %v915_v18  ;;  %v923_v40 = vmul.f32 %v839_v15, %v3632_v34  ;;  %v927_v34 = vld [vmem:[#allocation3] sm:$0xff] (%p3816_p0)  ;;  %v931_v27 = vld [vmem:[#allocation3 + $0x8] sm:$0xff] (%p3816_p0)  ;;  %v943_v15 = vld [vmem:[#allocation12 + $0x18] sm:$0xff] (%p3816_p0) }
  0xb4   : > { %v910_v4 = vadd.f32 %v909_v47, %v3730_v43   ;;  %v914_v42 = vadd.f32 %v913_v39, %v3733_v24   ;;  %v921_v2 = vadd.f32 %v920_v59, %v919_v52  ;;  %v924_v41 = vmul.f32 %v3754_v31, %v3677_v17  ;;  %146 = sbr.rel (!%p3816_p0) target bundleno = 36 (0x24), region = 268  ;;  %v928_v17 = vld [vmem:[#allocation12] sm:$0xff] (%p3816_p0)  ;;  %v933_v43 = vld [vmem:[#allocation12 + $0x8] sm:$0xff] (%p3816_p0)  ;;  %v936_v24 = vld [vmem:[#allocation3 + $0x10] sm:$0xff] (%p3816_p0) }
  0xb5   : > { %v918_v19 = vadd.f32 %v917_v3, %v3736_v60   ;;  %v4403_v11 = vmov %v882_v63  ;;  %v929_v32 = vsub.f32 (%p3816_p0), %v927_v34, %v928_v17   ;;  %v938_v60 = vld [vmem:[#allocation12 + $0x10] sm:$0xff] (%p3816_p0)  ;;  %v944_v14 = vsub.f32 (%p3816_p0), %v941_v49, %v943_v15  }
  0xb6   : > { %v922_v1 = vadd.f32 %v921_v2, %v3739_v23   ;;  %v925_v37 = vadd.f32 %v924_v41, %v923_v40  ;;  %v4402_v3 = vmov %v914_v42  ;;  %v934_v23 = vsub.f32 (%p3816_p0), %v931_v27, %v933_v43  }
  0xb7   : > { %v4401_v2 = vmov %v918_v19  ;;  %v939_v31 = vsub.f32 (%p3816_p0), %v936_v24, %v938_v60   ;;  %v3852_v54 = vmov (%p3816_p0), 0.0   ;;  %v3854_v51 = vmov (%p3816_p0), 0.0  }
  0xb8   : > { %v926_v0 = vadd.f32 %v925_v37, %v3742_v0  }
  0xb9 LB: > { %s957_s17 = smul.u32 288, %s2752_s16  ;;  %s3889_s18 = sshll.u32 %s2752_s16, 5  ;;  %s2752_s16 = sphi %s3864_s16, %s4407_s16   ;;  %v2748_v32 = vphi %v929_v32, %v1349_v32   ;;  %v2744_v23 = vphi %v934_v23, %v1353_v23   ;;  %v2740_v31 = vphi %v939_v31, %v1357_v31   ;;  %v2736_v14 = vphi %v944_v14, %v1361_v14   ;;  %v2732_v51 = vphi %v3854_v51, %v4406_v51   ;;  %v2728_v54 = vphi %v3852_v54, %v4405_v54  }
  0xba   : > { %s1020_s19 = smul.u32 48, %s2752_s16  ;;  %s1122_s23 = scalar_lea.vmem [#allocation12], %s3889_s18 }
  0xbb   : > { %s1038_s2 = smul.u32 192, %s2752_s16  ;;  %s3893_s20 = scalar_lea.vmem [#allocation6], %s957_s17  ;;  %v1123_v36 = vld [vmem:[%s1122_s23] sm:$0xff]  ;;  %v2068_v45 = vld [vmem:[%s1122_s23 + $0x8] sm:$0xff]  ;;  %v2070_v1 = vld [vmem:[%s1122_s23 + $0x10] sm:$0xff] }
  0xbc   : > { %v959_v0 = vld [vmem:[%s3893_s20] sm:$0xff]  ;;  %v2012_v8 = vld [vmem:[%s3893_s20 + $0x8] sm:$0xff]  ;;  %v2013_v12 = vld [vmem:[%s3893_s20 + $0x10] sm:$0xff]  ;;  %v3909_v22 = vadd.f32 %v2748_v32, %v1123_v36  ;;  %v3912_v7 = vadd.f32 %v2744_v23, %v2068_v45  ;;  %s3917_s24 = scalar_lea.vmem [#allocation8], %s1020_s19  ;;  %v3922_v11 = vadd.f32 %v2740_v31, %v2070_v1  ;;  %s1188_s25 = scalar_lea.vmem [#allocation15], %s3889_s18 }
  0xbd   : > { %v2015_v9 = vld [vmem:[%s3893_s20 + $0x38] sm:$0xff]  ;;  %v2016_v10 = vld [vmem:[%s3893_s20 + $0x40] sm:$0xff]  ;;  %v3904_v13 = vld [vmem:[%s3893_s20 + $0x48] sm:$0xff]  ;;  %s3926_s4 = scalar_lea.vmem [#allocation9], %s1038_s2  ;;  %s1136_s6 = smul.u32 80, %s2752_s16 }
  0xbe   : > { %v3901_v62 = vld [vmem:[%s3893_s20 + $0x18] sm:$0xff]  ;;  %v2018_v35 = vld [vmem:[%s3893_s20 + $0x70] sm:$0xff]  ;;  %v1022_v56 = vld [vmem:[%s3917_s24] sm:$0xff]  ;;  %1189 = vst [vmem:[%s1188_s25] sm:$0xff] %v3909_v22  ;;  %v1200_v38 = vmul.f32 %v3909_v22, %v959_v0  ;;  %v1201_v48 = vmul.f32 %v2012_v8, %v3912_v7  ;;  %v1211_v63 = vmul.f32 %v2012_v8, %v3909_v22  ;;  %v1203_v5 = vmul.f32 %v2013_v12, %v3922_v11  ;;  %s2073_s1 = sshll.u32 %s2752_s16, 4  ;;  %s4083_s27 = sadd.s32 1, %s2752_s16  }
  0xbf   : > { %v2072_v4 = vld [vmem:[%s1122_s23 + $0x18] sm:$0xff]  ;;  %v2032_v30 = vld [vmem:[%s3917_s24 + $0x8] sm:$0xff]  ;;  %v2033_v33 = vld [vmem:[%s3917_s24 + $0x10] sm:$0xff]  ;;  %v1212_v6 = vmul.f32 %v2015_v9, %v3912_v7  ;;  %v1214_v61 = vmul.f32 %v2016_v10, %v3922_v11  ;;  %v1222_v44 = vmul.f32 %v2013_v12, %v3909_v22  ;;  %2086 = vst [vmem:[%s1188_s25 + $0x8] sm:$0xff] %v3912_v7  ;;  %v1223_v26 = vmul.f32 %v2016_v10, %v3912_v7  ;;  %s4012_s26 = scalar_lea.vmem [#allocation2], %s1136_s6  ;;  %s1131_s3 = scalar_lea.vmem [#allocation14], %s2073_s1 }
  0xc0   : > { %v3915_v55 = vld [vmem:[%s3893_s20 + $0x78] sm:$0xff]  ;;  %v1040_v53 = vld [vmem:[%s3926_s4] sm:$0xff]  ;;  %v3930_v58 = vadd.f32 %v2736_v14, %v2072_v4  ;;  %v2037_v57 = vld [vmem:[%s3926_s4 + $0x8] sm:$0xff]  ;;  %v3951_v50 = vmul.f32 %v2018_v35, %v3922_v11  ;;  %v1233_v18 = vmul.f32 %v3901_v62, %v3909_v22  ;;  %v1234_v16 = vmul.f32 %v3904_v13, %v3912_v7  ;;  %2088 = vst [vmem:[%s1188_s25 + $0x10] sm:$0xff] %v3922_v11  ;;  %p1296_p1 = scmp.lt.s32.totalorder %s4083_s27, 7  ;;  %s1196_s28 = scalar_lea.vmem [#allocation16], %s2073_s1 }
  0xc1   : > { %v2034_v46 = vld [vmem:[%s3917_s24 + $0x18] sm:$0xff]  ;;  %v2038_v20 = vld [vmem:[%s3926_s4 + $0x10] sm:$0xff]  ;;  %v2042_v25 = vld [vmem:[%s3926_s4 + $0x40] sm:$0xff]  ;;  %v1236_v59 = vmul.f32 %v3915_v55, %v3922_v11  ;;  %v1277_v3 = vmul.f32 %v3909_v22, %v1022_v56  ;;  %v1278_v40 = vmul.f32 %v2032_v30, %v3912_v7  ;;  %v1280_v42 = vmul.f32 %v2033_v33, %v3922_v11  ;;  %s4164_s11 = scalar_lea.vmem [#allocation11], %s3889_s18  ;;  %p947_p2 = scmp.ge.s32.totalorder %s4083_s27, 8  }
  0xc2   : > { %v2040_v28 = vld [vmem:[%s3926_s4 + $0x30] sm:$0xff]  ;;  %v2041_v21 = vld [vmem:[%s3926_s4 + $0x38] sm:$0xff]  ;;  %v2044_v29 = vld [vmem:[%s3926_s4 + $0x60] sm:$0xff]  ;;  %2090 = vst [vmem:[%s1188_s25 + $0x18] sm:$0xff] %v3930_v58  ;;  %v1282_v19 = vmul.f32 %v2034_v46, %v3930_v58  ;;  %v3971_v37 = vmul.f32 %v3909_v22, %v1040_v53  ;;  %v3974_v34 = vmul.f32 %v2037_v57, %v3912_v7  ;;  %v3977_v17 = vmul.f32 %v2038_v20, %v3922_v11  ;;  %s4127_s29 = scalar_select %p1296_p1, %s4083_s27, 7 }
  0xc3   : > { %v2045_v47 = vld [vmem:[%s3926_s4 + $0x68] sm:$0xff]  ;;  %v2046_v39 = vld [vmem:[%s3926_s4 + $0x70] sm:$0xff]  ;;  %v2049_v2 = vld [vmem:[%s3926_s4 + $0x98] sm:$0xff]  ;;  %v1279_v27 = vadd.f32 %v1278_v40, %v1277_v3  ;;  %v3980_v43 = vmul.f32 %v2040_v28, %v3909_v22  ;;  %v3983_v24 = vmul.f32 %v2041_v21, %v3912_v7  ;;  %v3986_v60 = vmul.f32 %v2042_v25, %v3922_v11  ;;  %s4407_s16 = smov %s4083_s27  ;;  %s1395_s14 = sshll.u32 (%p947_p2), %s4232_s8, 4  ;;  %s1396_s14 = int_to_ptr.hbm [resolvable:$true] %s1395_s14 }
  0xc4   : > { %v2048_v52 = vld [vmem:[%s3926_s4 + $0x90] sm:$0xff]  ;;  %v2050_v41 = vld [vmem:[%s3926_s4 + $0xa0] sm:$0xff]  ;;  %v3989_v49 = vmul.f32 %v2044_v29, %v3909_v22  ;;  %v3992_v15 = vmul.f32 %v2045_v47, %v3912_v7  ;;  %v3995_v0 = vmul.f32 %v2046_v39, %v3922_v11  ;;  %v4001_v9 = vmul.f32 %v2049_v2, %v3912_v7  ;;  %v2020_v45 = vld [vmem:[%s3893_s20 + $0xa8] sm:$0xff]  ;;  %s2093_s30 = sshll.u32 %s4127_s29, 5  ;;  %s2763_s0 = smov (%p947_p2), [#allocation16]  }
  0xc5   : > { %v3998_v8 = vmul.f32 %v2048_v52, %v3909_v22  ;;  %v1281_v12 = vadd.f32 %v1280_v42, %v1279_v27  ;;  %v4004_v10 = vmul.f32 %v2050_v41, %v3922_v11  ;;  %v1202_v36 = vadd.f32 %v1201_v48, %v1200_v38  ;;  %v4008_v35 = vld [vmem:[%s3893_s20 + $0x20] sm:$0xff]  ;;  %v2076_v46 = vld [vmem:[%s4012_s26 + $0x8] sm:$0xff]  ;;  %v2077_v53 = vld [vmem:[%s4012_s26 + $0x10] sm:$0xff]  ;;  %s1347_s5 = scalar_lea.vmem [#allocation12], %s2093_s30  ;;  %s1393_s15 = sshll.u32 (%p947_p2), %s2763_s0, 4  ;;  %s1394_s15 = int_to_ptr.vmem [resolvable:$true] %s1393_s15 }
  0xc6   : > { %v1138_v1 = vld [vmem:[%s4012_s26] sm:$0xff]  ;;  %v1205_v4 = vmul.f32 %v3901_v62, %v3930_v58  ;;  %v1213_v56 = vadd.f32 %v1212_v6, %v1211_v63  ;;  %v1216_v30 = vmul.f32 %v3904_v13, %v3930_v58  ;;  %v1224_v33 = vadd.f32 %v1223_v26, %v1222_v44  ;;  %v2078_v38 = vld [vmem:[%s4012_s26 + $0x18] sm:$0xff]  ;;  %v2079_v13 = vld [vmem:[%s4012_s26 + $0x28] sm:$0xff]  ;;  %s2764_s16 = smov (%p947_p2), [#allocation15]   ;;  %s1382_s2 = sshll.u32 (%p947_p2), %s4231_s7, 4  ;;  %s1383_s2 = int_to_ptr.hbm [resolvable:$true] %s1382_s2 }
  0xc7   : > { %v1166_v48 = vmul.f32 %v2748_v32, %v1138_v1  ;;  %v1204_v57 = vadd.f32 %v1203_v5, %v1202_v36  ;;  %v1227_v20 = vmul.f32 %v3915_v55, %v3930_v58  ;;  %v1235_v28 = vadd.f32 %v1234_v16, %v1233_v18  ;;  %v2080_v63 = vld [vmem:[%s4012_s26 + $0x30] sm:$0xff]  ;;  %v2081_v6 = vld [vmem:[%s4012_s26 + $0x38] sm:$0xff]  ;;  %v4036_v5 = vld [vmem:[%s3893_s20 + $0x80] sm:$0xff]  ;;  %s1380_s17 = sshll.u32 (%p947_p2), %s2764_s16, 4  ;;  %s1409_s23 = sshll.u32 (%p947_p2), %s4233_s9, 4  ;;  %s1381_s17 = int_to_ptr.vmem [resolvable:$true] %s1380_s17  ;;  %s1410_s23 = int_to_ptr.hbm [resolvable:$true] %s1409_s23 }
  0xc8   : > { %v4025_v62 = vadd.f32 %v1282_v19, %v1281_v12  ;;  %v1167_v44 = vmul.f32 %v2744_v23, %v2076_v46  ;;  %v1169_v21 = vmul.f32 %v2740_v31, %v2077_v53  ;;  %v1215_v25 = vadd.f32 %v1214_v61, %v1213_v56  ;;  %v4033_v29 = vld [vmem:[%s3893_s20 + $0x50] sm:$0xff]  ;;  %v2082_v55 = vld [vmem:[%s4012_s26 + $0x40] sm:$0xff]  ;;  %v4045_v39 = vld [vmem:[%s3893_s20 + $0x28] sm:$0xff]  ;;  %s2766_s7 = smov (%p947_p2), [#allocation19]   ;;  %s1420_s6 = sshll.u32 (%p947_p2), %s4234_s10, 4  ;;  %s1421_s6 = int_to_ptr.hbm [resolvable:$true] %s1420_s6 }
  0xc9   : > { %v1171_v26 = vmul.f32 %v2736_v14, %v2078_v38  ;;  %v1174_v18 = vmul.f32 %v2748_v32, %v2079_v13  ;;  %v1175_v16 = vmul.f32 %v2744_v23, %v2080_v63  ;;  %v1177_v47 = vmul.f32 %v2740_v31, %v2081_v6  ;;  %v2027_v52 = vld [vmem:[%s3893_s20 + $0xb0] sm:$0xff]  ;;  %v2024_v2 = vld [vmem:[%s3893_s20 + $0x58] sm:$0xff]  ;;  %v2026_v41 = vld [vmem:[%s3893_s20 + $0x88] sm:$0xff] }
  0xca   : > { %v1168_v61 = vadd.f32 %v1167_v44, %v1166_v48  ;;  %v1179_v3 = vmul.f32 %v2736_v14, %v2082_v55  ;;  %v4049_v40 = vadd.f32 %v1205_v4, %v1204_v57  ;;  %v1226_v42 = vadd.f32 %v3951_v50, %v1224_v33  ;;  %v2028_v27 = vld [vmem:[%s3893_s20 + $0xb8] sm:$0xff]  ;;  %v2083_v1 = vld [vmem:[%s4012_s26 + $0x20] sm:$0xff]  ;;  %v2043_v46 = vld [vmem:[%s3926_s4 + $0x48] sm:$0xff] }
  0xcb   : > { %v1176_v32 = vadd.f32 %v1175_v16, %v1174_v18  ;;  %v1237_v23 = vadd.f32 %v1236_v59, %v1235_v28  ;;  %v1238_v31 = vmul.f32 %v2020_v45, %v3930_v58  ;;  %v1244_v19 = vmul.f32 %v4008_v35, %v3909_v22  ;;  %v2039_v33 = vld [vmem:[%s3926_s4 + $0x18] sm:$0xff]  ;;  %v2084_v53 = vld [vmem:[%s4012_s26 + $0x48] sm:$0xff]  ;;  %v1132_v28 = vld [vmem:[%s1131_s3] sm:$0xff] }
  0xcc   : > { %v1170_v12 = vadd.f32 %v1169_v21, %v1168_v61  ;;  %v4058_v14 = vadd.f32 %v1216_v30, %v1215_v25  ;;  %v1245_v50 = vmul.f32 %v4033_v29, %v3912_v7  ;;  %v1247_v36 = vmul.f32 %v4036_v5, %v3922_v11  ;;  %v2075_v44 = vld [vmem:[%s1131_s3 + $0x8] sm:$0xff] }
  0xcd   : > { %v1178_v4 = vadd.f32 %v1177_v47, %v1176_v32  ;;  %v4065_v56 = vadd.f32 %v1227_v20, %v1226_v42  ;;  %v1249_v59 = vmul.f32 %v2027_v52, %v3930_v58  ;;  %v1255_v45 = vmul.f32 %v4045_v39, %v3909_v22  ;;  %v2030_v42 = vld [vmem:[%s3893_s20 + $0xe8] sm:$0xff] }
  0xce   : > { %v1172_v30 = vadd.f32 %v1171_v26, %v1170_v12  ;;  %v1246_v38 = vadd.f32 %v1245_v50, %v1244_v19  ;;  %v1256_v48 = vmul.f32 %v2024_v2, %v3912_v7  ;;  %v1258_v57 = vmul.f32 %v2026_v41, %v3922_v11  ;;  %v2035_v50 = vld [vmem:[%s3917_s24 + $0x20] sm:$0xff] }
  0xcf   : > { %v1180_v20 = vadd.f32 %v1179_v3, %v1178_v4  ;;  %v1239_v13 = vadd.f32 %v1238_v31, %v1237_v23  ;;  %v1260_v63 = vmul.f32 %v2028_v27, %v3930_v58  ;;  %v1300_v6 = vadd.f32 %v3974_v34, %v3971_v37  ;;  %1388 = dma.vmem_to_hbm [thread:$0]  (%p947_p2), %s1381_s17, 4096, %s1383_s2, [#allocation5], %s2755_s21, %s2755_s21, %s2756_s22  }
  0xd0   : > { %v1173_v21 = vadd.f32 %v2083_v1, %v1172_v30  ;;  %v1248_v25 = vadd.f32 %v1247_v36, %v1246_v38  ;;  %v1257_v55 = vadd.f32 %v1256_v48, %v1255_v45  ;;  %v1312_v26 = vadd.f32 %v3983_v24, %v3980_v43  ;;  %v2029_v24 = vld [vmem:[%s3893_s20 + $0xe0] sm:$0xff]  ;;  %v2031_v36 = vld [vmem:[%s3893_s20 + $0x118] sm:$0xff] }
  0xd1   : > { %v1181_v18 = vadd.f32 %v2084_v53, %v1180_v20  ;;  %v1302_v16 = vadd.f32 %v3977_v17, %v1300_v6  ;;  %v1303_v47 = vmul.f32 %v2039_v33, %v3930_v58  ;;  %v4088_v61 = vmul.f32 %v2043_v46, %v3930_v58  ;;  %v2052_v20 = vld [vmem:[%s3926_s4 + $0x20] sm:$0xff] }
  0xd2   : > { %v4090_v37 = vadd.f32 %v1173_v21, %v1132_v28  ;;  %v1250_v34 = vadd.f32 %v1249_v59, %v1248_v25  ;;  %v1259_v3 = vadd.f32 %v1258_v57, %v1257_v55  ;;  %v4094_v43 = vadd.f32 %v3992_v15, %v3989_v49  ;;  %v2054_v55 = vld [vmem:[%s3926_s4 + $0x50] sm:$0xff] }
  0xd3   : > { %v4098_v32 = vadd.f32 %v2075_v44, %v1181_v18  ;;  %v1291_v17 = vmul.f32 %v1173_v21, %v1173_v21  ;;  %v1292_v23 = vmul.f32 %v1181_v18, %v1181_v18  ;;  %v1314_v31 = vadd.f32 %v3986_v60, %v1312_v26  ;;  %v2036_v60 = vld [vmem:[%s3917_s24 + $0x28] sm:$0xff]  ;;  %v2055_v26 = vld [vmem:[%s3926_s4 + $0x58] sm:$0xff]  ;;  %s2765_s24 = smov (%p947_p2), [#allocation18]  }
  0xd4   : > { %1197 = vst [vmem:[%s1196_s28] sm:$0xff] %v4090_v37  ;;  %v1207_v19 = vmul.f32 %v4008_v35, %v4090_v37  ;;  %v1218_v49 = vmul.f32 %v4033_v29, %v4090_v37  ;;  %v1229_v15 = vmul.f32 %v4036_v5, %v4090_v37  ;;  %v1240_v12 = vmul.f32 %v2027_v52, %v4090_v37 }
  0xd5   : > { %v1208_v1 = vmul.f32 %v4045_v39, %v4098_v32  ;;  %v1219_v4 = vmul.f32 %v2024_v2, %v4098_v32  ;;  %v1230_v35 = vmul.f32 %v2026_v41, %v4098_v32  ;;  %v1241_v59 = vmul.f32 %v2028_v27, %v4098_v32  ;;  %2092 = vst [vmem:[%s1196_s28 + $0x8] sm:$0xff] %v4098_v32 }
  0xd6   : > { %v1251_v29 = vmul.f32 %v2029_v24, %v4090_v37  ;;  %v1252_v5 = vmul.f32 %v2030_v42, %v4098_v32  ;;  %v1261_v52 = vadd.f32 %v1260_v63, %v1259_v3  ;;  %v1262_v45 = vmul.f32 %v2030_v42, %v4090_v37  ;;  %v2053_v63 = vld [vmem:[%s3926_s4 + $0x28] sm:$0xff] }
  0xd7   : > { %v1209_v33 = vadd.f32 %v1208_v1, %v1207_v19  ;;  %v1220_v46 = vadd.f32 %v1219_v4, %v1218_v49  ;;  %v1231_v39 = vadd.f32 %v1230_v35, %v1229_v15  ;;  %v1242_v53 = vadd.f32 %v1241_v59, %v1240_v12  ;;  %v2058_v12 = vld [vmem:[%s3926_s4 + $0xb0] sm:$0xff] }
  0xd8   : > { %v1253_v2 = vadd.f32 %v1252_v5, %v1251_v29  ;;  %v1263_v41 = vmul.f32 %v2031_v36, %v4098_v32  ;;  %v1284_v27 = vmul.f32 %v2035_v50, %v4090_v37  ;;  %v1285_v30 = vmul.f32 %v2036_v60, %v4098_v32  ;;  %1401 = dma.vmem_to_hbm [thread:$0]  (%p947_p2), %s1394_s15, 2048, %s1396_s14, [#allocation17], %s2755_s21, %s2755_s21, %s2756_s22  }
  0xd9   : > { %v1210_v38 = vadd.f32 %v1209_v33, %v4049_v40  ;;  %v1221_v48 = vadd.f32 %v1220_v46, %v4058_v14  ;;  %v1232_v57 = vadd.f32 %v1231_v39, %v4065_v56  ;;  %v1243_v28 = vadd.f32 %v1242_v53, %v1239_v13  ;;  %v2047_v56 = vld [vmem:[%s3926_s4 + $0x78] sm:$0xff]  ;;  %v2056_v13 = vld [vmem:[%s3926_s4 + $0x80] sm:$0xff]  ;;  %s1418_s21 = sshll.u32 (%p947_p2), %s2766_s7, 4  ;;  %s1419_s21 = int_to_ptr.vmem [resolvable:$true] %s1418_s21 }
  0xda   : > { %v1254_v6 = vadd.f32 %v1253_v2, %v1250_v34  ;;  %v1264_v44 = vadd.f32 %v1263_v41, %v1262_v45  ;;  %v1293_v21 = vadd.f32 %v1292_v23, %v1291_v17  ;;  %v1304_v25 = vadd.f32 %v1303_v47, %v1302_v16  ;;  %v2051_v23 = vld [vmem:[%s3926_s4 + $0xa8] sm:$0xff]  ;;  %v1348_v33 = vld [vmem:[%s1347_s5] sm:$0xff]  ;;  %v2064_v41 = vld [vmem:[%s4164_s11 + $0x10] sm:$0xff] }
  0xdb   : > { %v1266_v18 = vmul.f32 %v1210_v38, %v3909_v22  ;;  %v1267_v40 = vmul.f32 %v1221_v48, %v3912_v7  ;;  %v1269_v14 = vmul.f32 %v1232_v57, %v3922_v11  ;;  %v1286_v3 = vadd.f32 %v1285_v30, %v1284_v27  ;;  %v2057_v22 = vld [vmem:[%s3926_s4 + $0x88] sm:$0xff] }
  0xdc   : > { %v1265_v24 = vadd.f32 %v1264_v44, %v1261_v52  ;;  %v1271_v34 = vmul.f32 %v1243_v28, %v3930_v58  ;;  %v1273_v42 = vmul.f32 %v1254_v6, %v4090_v37  ;;  %v4148_v54 = vadd.f32 %v2728_v54, %v1293_v21   ;;  %v2095_v27 = vld [vmem:[%s1347_s5 + $0x8] sm:$0xff]  ;;  %v2066_v6 = vld [vmem:[%s4164_s11 + $0x18] sm:$0xff] }
  0xdd   : > { %v1268_v47 = vadd.f32 %v1267_v40, %v1266_v18  ;;  %v1305_v7 = vmul.f32 %v2052_v20, %v4090_v37  ;;  %v1306_v11 = vmul.f32 %v2053_v63, %v4098_v32  ;;  %v1316_v17 = vadd.f32 %v4088_v61, %v1314_v31  ;;  %v1112_v61 = vld [vmem:[%s4164_s11] sm:$0xff]  ;;  %v2059_v31 = vld [vmem:[%s3926_s4 + $0xb8] sm:$0xff]  ;;  %s1407_s4 = sshll.u32 (%p947_p2), %s2765_s24, 4  ;;  %s1408_s4 = int_to_ptr.vmem [resolvable:$true] %s1407_s4 }
  0xde   : > { %v4404_v16 = vmov %v4148_v54  ;;  %v1274_v19 = vmul.f32 %v1265_v24, %v4098_v32  ;;  %v1317_v49 = vmul.f32 %v2054_v55, %v4090_v37  ;;  %v1318_v15 = vmul.f32 %v2055_v26, %v4098_v32  ;;  %v2099_v21 = vld [vmem:[%s1347_s5 + $0x18] sm:$0xff] }
  0xdf   : > { %v1326_v54 = vadd.f32 %v3995_v0, %v4094_v43  ;;  %v1270_v50 = vadd.f32 %v1269_v14, %v1268_v47  ;;  %v1307_v60 = vadd.f32 %v1306_v11, %v1305_v7  ;;  %v1327_v36 = vmul.f32 %v2047_v56, %v3930_v58  ;;  %v2062_v43 = vld [vmem:[%s4164_s11 + $0x8] sm:$0xff] }
  0xe0   : > { %v1329_v1 = vmul.f32 %v2056_v13, %v4090_v37  ;;  %v1275_v4 = vadd.f32 %v1274_v19, %v1273_v42  ;;  %v1319_v35 = vadd.f32 %v1318_v15, %v1317_v49  ;;  %v1330_v59 = vmul.f32 %v2057_v22, %v4098_v32 }
  0xe1   : > { %v1336_v0 = vadd.f32 %v4001_v9, %v3998_v8  ;;  %v1272_v29 = vadd.f32 %v1271_v34, %v1270_v50  ;;  %v1308_v5 = vadd.f32 %v1307_v60, %v1304_v25  ;;  %v1328_v52 = vadd.f32 %v1327_v36, %v1326_v54 }
  0xe2   : > { %v1339_v45 = vmul.f32 %v2051_v23, %v3930_v58  ;;  %v1320_v46 = vadd.f32 %v1319_v35, %v1316_v17  ;;  %v1331_v39 = vadd.f32 %v1330_v59, %v1329_v1  ;;  %v1341_v2 = vmul.f32 %v2058_v12, %v4090_v37  ;;  %v2097_v58 = vld [vmem:[%s1347_s5 + $0x10] sm:$0xff] }
  0xe3   : > { %v1338_v53 = vadd.f32 %v4004_v10, %v1336_v0  ;;  %v1276_v30 = vadd.f32 %v1275_v4, %v1272_v29  ;;  %v1309_v8 = vadd.f32 %v1308_v5, %v1112_v61  ;;  %v1342_v9 = vmul.f32 %v2059_v31, %v4098_v32 }
  0xe4   : > { %v1321_v38 = vadd.f32 %v2062_v43, %v1320_v46  ;;  %v1332_v48 = vadd.f32 %v1331_v39, %v1328_v52  ;;  %v1287_v28 = vadd.f32 %v1286_v3, %v4025_v62  ;;  %v4405_v54 = vmov %v4404_v16 }
  0xe5   : > { %v1340_v57 = vadd.f32 %v1339_v45, %v1338_v53  ;;  %v1288_v20 = vmul.f32 0.5, %v1276_v30  ;;  %v1343_v63 = vadd.f32 %v1342_v9, %v1341_v2  ;;  %v1349_v32 = vsub.f32 %v1309_v8, %v1348_v33  }
  0xe6   : > { %v1333_v44 = vadd.f32 %v2064_v41, %v1332_v48  ;;  %v1353_v23 = vsub.f32 %v1321_v38, %v2095_v27   ;;  %2298 = vrsqrt.f32 (%p947_p2), %v4404_v16  ;;  %vm1370_vm0 = vcmp.eq.f32.partialorder (%p947_p2), %v4404_v16, inf }
  0xe7   : > { %v1289_v10 = vadd.f32 %v2732_v51, %v1288_v20  ;;  %v1344_v37 = vadd.f32 %v1343_v63, %v1340_v57  ;;  %949 = sbr.rel (!%p947_p2) target bundleno = 185 (0xb9), region = 279  ;;  %vm1372_vm1 = vcmp.eq.f32.partialorder (%p947_p2), %v4404_v16, 0.0 }
  0xe8   : > { %v1357_v31 = vsub.f32 %v1333_v44, %v2097_v58  }
  0xe9   : > { %v1290_v25 = vadd.f32 %v1289_v10, %v1287_v28   ;;  %v1345_v55 = vadd.f32 %v2066_v6, %v1344_v37 }
  0xeb   : > { %v1361_v14 = vsub.f32 %v1345_v55, %v2099_v21   ;;  %v4406_v51 = vmov %v1290_v25  ;;  %1362 = vst [vmem:[#allocation18] sm:$0xff] (%p947_p2), %v1290_v25 }
  0xec   :  { %v2299_v51 = vpop.eup %2298  ;;  %1412 = dma.vmem_to_hbm [thread:$0]  %s1408_s4, 128, %s1410_s23, [#allocation17]   ;;  %v1373_v14 = vand.u32 2147483648, %v4404_v16 }
  0xed   :  { %v1364_v62 = vmul.f32 %v2299_v51, %v4404_v16 }
  0xef   :  { %v1365_v32 = vmul.f32 %v2299_v51, %v1364_v62 }
  0xf1   :  { %v1366_v26 = vmul.f32 0.5, %v1365_v32 }
  0xf3   :  { %v1367_v18 = vsub.f32 1.5, %v1366_v26 }
  0xf5   :  { %v1368_v40 = vmul.f32 %v2299_v51, %v1367_v18 }
  0xf7   :  { %v1369_v3 = vmul.f32 %v1368_v40, %v4404_v16 }
  0xf9   :  { %v1371_v56 = vsel %vm1370_vm0, %v4404_v16, %v1369_v3 }
  0xfa   :  { %v1374_v13 = vsel %vm1372_vm1, %v1373_v14, %v1371_v56 }
  0xfb   :  { %1375 = vst [vmem:[#allocation19] sm:$0xff] %v1374_v13 }
  0xfc   :  { %1423 = dma.vmem_to_hbm [thread:$0]  %s1419_s21, 128, %s1421_s6, [#allocation20]  }
  0xfd   :  { %2660 = dma.done.wait [#allocation5], 4096  }
  0xfe   :  { %2661 = vsyncadd [#allocation5], 4294963200 }
  0xff   :  { %2662 = dma.done.wait [#allocation17], 2176  }
 0x100   :  { %2663 = vsyncadd [#allocation17], 4294965120 }
 0x101   :  { %2664 = dma.done.wait [#allocation20], 128  }
 0x102   :  { %2665 = vsyncadd [#allocation20], 4294967168 }
 0x103   :  { %1440 = vsyncpa [#allocation4], 1 }
 0x104   :  { %1441 = vsyncpa [#allocation7], 1 }
 0x105   :  { %1442 = vsyncpa [#allocation10], 1 }
 0x106   :  { %1443 = vsyncpa [#allocation13], 1 }
 0x107   :  { %1444 = vsyncpa [#allocation5], 1 }
 0x108   :  { %1445 = vsyncpa [#allocation17], 1 }
 0x109   :  { %1446 = vsyncpa [#allocation20], 1 }

</bundles_post_ra>
